<compile_context>
chip_gen: v6e
topology: v6e:2x2x1
jax: 0.10.0
libtpu: 0.0.40
codegen_flags: <defaults>
</compile_context>

<pallas_src>
import jax
import jax.numpy as jnp
from jax.experimental import pallas as pl
from jax.experimental.pallas import tpu as pltpu


# ---------------------------------------------------------------------------
# VMEM budget (per-generation) used for vmem_limit_bytes and tile sizing.
# ---------------------------------------------------------------------------

def _vmem_budget_bytes():
    """~3/4 of physical VMEM, capped at 96 MiB (=> ~48 MiB on v7x's 64 MiB,
    96 MiB on v5e/v6e's 128 MiB)."""
    try:
        cap = int(pltpu.get_tpu_info().vmem_capacity_bytes)
    except Exception:
        cap = 64 << 20          # conservative fallback (v7x-sized)
    return int(min((cap * 3) // 4, 96 << 20))


# ---------------------------------------------------------------------------
# Kernels
# ---------------------------------------------------------------------------

def _make_conv_stats_kernel(wd, pre_bn):
    """Conv3x3(pad=1) as 3 MXU matmuls over a VMEM-resident kw-shifted patch
    slab + per-image partial BN statistics.  If `pre_bn`, the previous block's
    BatchNorm+ReLU is applied to the incoming bf16 pre-activation in VMEM
    (fusion: no intermediate activation ever hits HBM)."""

    def kernel(*refs):
        if pre_bn:
            (x_ref, scale_ref, shift_ref, w_ref,
             z_ref, sum_ref, sq_ref, slab_ref) = refs
        else:
            x_ref, w_ref, z_ref, sum_ref, sq_ref, slab_ref = refs

        cin = x_ref.shape[1]
        m = x_ref.shape[2]
        cout = z_ref.shape[1]

        act = x_ref[0].astype(jnp.float32)                       # (cin, m)
        if pre_bn:
            act = jnp.maximum(act * scale_ref[...] + shift_ref[...], 0.0)

        # w-coordinate of every flattened spatial position (lane index % W).
        col = jax.lax.broadcasted_iota(jnp.int32, (1, m), 1) % wd
        zero = jnp.zeros_like(act)

        # Build the 3x (kw-shifted) im2col slab entirely in VMEM scratch:
        #   slab[(kw, ci), q] = act[ci, q - (wd + 1 - kw)]
        # Conv zero-padding comes from the zeroed margins plus the per-row
        # boundary masks (positions that would wrap across a row).
        slab_ref[...] = jnp.zeros_like(slab_ref)
        slab_ref[0 * cin:1 * cin, wd + 1:wd + 1 + m] = (
            jnp.where(col == wd - 1, zero, act))                 # kw = 0
        slab_ref[1 * cin:2 * cin, wd:wd + m] = act               # kw = 1
        slab_ref[2 * cin:3 * cin, wd - 1:wd - 1 + m] = (
            jnp.where(col == 0, zero, act))                      # kw = 2

        # out[:, h*wd + w] = sum_kh  W_kh @ slab[:, (h+kh)*wd + w]
        acc = jnp.zeros((cout, m), jnp.float32)
        for kh in range(3):
            operand = slab_ref[:, kh * wd:kh * wd + m].astype(jnp.bfloat16)
            acc = acc + jnp.dot(w_ref[kh], operand,
                                preferred_element_type=jnp.float32)

        z_ref[0] = acc.astype(z_ref.dtype)                       # bf16, lane-dense
        sum_ref[0] = jnp.sum(acc, axis=1, keepdims=True)         # (cout, 1) f32
        sq_ref[0] = jnp.sum(acc * acc, axis=1, keepdims=True)

    return kernel


def _bn_relu_pool_kernel(zf_ref, z6_ref, scale_ref, shift_ref, out_ref, pool_ref):
    """Last block: BN affine + ReLU with the 2x2/stride-2 max-pool fused in.

    zf_ref:  (1, C, tm)            bf16  flat view (lane-dense processed store)
    z6_ref:  (1, C, th, 2, W/2, 2) bf16  free row-major view of the same data
    out_ref: (1, C, tm)            f32
    pool_ref:(1, C, th, W/2)       f32
    scale/shift: (C, 1)            f32
    """
    scale = scale_ref[...]
    shift = shift_ref[...]
    # Lane-dense processed path.
    y = jnp.maximum(zf_ref[0].astype(jnp.float32) * scale + shift, 0.0)
    out_ref[0] = y
    # Pool path (same affine, pooling-friendly view).
    s6 = scale[:, :, None, None, None]
    b6 = shift[:, :, None, None, None]
    y6 = jnp.maximum(z6_ref[0].astype(jnp.float32) * s6 + b6, 0.0)
    pool_ref[0] = jnp.max(jnp.max(y6, axis=2), axis=3)


# ---------------------------------------------------------------------------
# Wrappers (pallas_call plumbing + tiny scalar math)
# ---------------------------------------------------------------------------

def _conv_stats(x, w_slab, scale, shift, wd, budget):
    """One encoder block's conv (+ fused previous BN+ReLU) + partial BN stats."""
    n, c_in, m = x.shape
    _, c_out, k = w_slab.shape
    pre_bn = scale is not None
    kernel = _make_conv_stats_kernel(wd, pre_bn)

    in_specs = [pl.BlockSpec((1, c_in, m), lambda i: (i, 0, 0))]
    args = [x]
    if pre_bn:
        in_specs += [pl.BlockSpec((c_in, 1), lambda i: (0, 0)),
                     pl.BlockSpec((c_in, 1), lambda i: (0, 0))]
        args += [scale, shift]
    in_specs.append(pl.BlockSpec((3, c_out, k), lambda i: (0, 0, 0)))
    args.append(w_slab)

    return pl.pallas_call(
        kernel,
        out_shape=(jax.ShapeDtypeStruct((n, c_out, m), jnp.bfloat16),
                   jax.ShapeDtypeStruct((n, c_out, 1), jnp.float32),
                   jax.ShapeDtypeStruct((n, c_out, 1), jnp.float32)),
        grid=(n,),
        in_specs=in_specs,
        out_specs=(pl.BlockSpec((1, c_out, m), lambda i: (i, 0, 0)),
                   pl.BlockSpec((1, c_out, 1), lambda i: (i, 0, 0)),
                   pl.BlockSpec((1, c_out, 1), lambda i: (i, 0, 0))),
        scratch_shapes=[pltpu.VMEM((k, m + 2 * wd), jnp.float32)],
        compiler_params=pltpu.CompilerParams(
            dimension_semantics=("parallel",),      # per-tile stats => no accum
            vmem_limit_bytes=budget),
    )(*args)


def _bn_affine_from_partials(psum, psq, n_per_tile, gamma, beta, eps=1e-5):
    """Training-mode BN scale/shift from per-tile partial sums.

    Two-level (Chan) combine of per-tile (sum, sumsq) -> numerically safer
    than a single global E[z^2] - E[z]^2.  The conv bias cancels exactly under
    batch-statistic BN, so it never appears here.
    """
    n_t = float(n_per_tile)
    total = n_t * psum.shape[0]
    mean_t = psum / n_t                                      # (T, C, 1)
    m2_t = jnp.maximum(psq - n_t * mean_t * mean_t, 0.0)     # per-tile sum sq dev
    mean = jnp.sum(psum, axis=0) / total                     # (C, 1)
    m2 = jnp.sum(m2_t, axis=0) + n_t * jnp.sum((mean_t - mean) ** 2, axis=0)
    var = jnp.maximum(m2 / total, 0.0)
    scale = gamma[:, None] * jax.lax.rsqrt(var + eps)        # (C, 1)
    shift = beta[:, None] - mean * scale
    return scale, shift


def _pick_h2_tile(c, h2, wd, budget_bytes):
    """Largest H/2 tile for the fused BN+ReLU+pool kernel that fits the VMEM
    budget and satisfies the (8, 128) block constraints."""
    w2 = wd // 2

    def step_bytes(th):
        tm = 2 * wd * th
        # double-buffered: z flat (bf16) + z 6-D view (bf16) + processed (f32)
        # + pooled (f32)
        return 2 * (c * tm * 2 + c * tm * 2 + c * tm * 4 + c * th * w2 * 4)

    divisors = [d for d in range(h2, 0, -1) if h2 % d == 0]
    for th in divisors:
        tm = 2 * wd * th
        ok_shape = (th == h2) or (tm % 128 == 0 and th % 8 == 0)
        if ok_shape and step_bytes(th) <= budget_bytes:
            return th
    return divisors[-1]


def _bn_relu_pool(z, scale, shift, h, wd, budget):
    """Last block: BN affine + ReLU fused with the 2x2 max-pool."""
    n, c, m = z.shape
    h2, w2 = h // 2, wd // 2
    th = _pick_h2_tile(c, h2, wd, budget)
    tm = 2 * wd * th
    z6 = z.reshape(n, c, h2, 2, w2, 2)          # free row-major view (HBM)

    processed, pooled = pl.pallas_call(
        _bn_relu_pool_kernel,
        out_shape=(jax.ShapeDtypeStruct((n, c, m), jnp.float32),
                   jax.ShapeDtypeStruct((n, c, h2, w2), jnp.float32)),
        grid=(n, h2 // th),
        in_specs=[pl.BlockSpec((1, c, tm), lambda i, j: (i, 0, j)),
                  pl.BlockSpec((1, c, th, 2, w2, 2),
                               lambda i, j: (i, 0, j, 0, 0, 0)),
                  pl.BlockSpec((c, 1), lambda i, j: (0, 0)),
                  pl.BlockSpec((c, 1), lambda i, j: (0, 0))],
        out_specs=(pl.BlockSpec((1, c, tm), lambda i, j: (i, 0, j)),
                   pl.BlockSpec((1, c, th, w2), lambda i, j: (i, 0, j, 0))),
        compiler_params=pltpu.CompilerParams(
            dimension_semantics=("parallel", "parallel"),
            vmem_limit_bytes=budget),
    )(z, z6, scale, shift)
    return processed, pooled


# ---------------------------------------------------------------------------
# Parameters / forward
# ---------------------------------------------------------------------------

def init_encoder_params(key, input_channels, output_channels, depth=2):
    """Synthetic params matching the module's shapes.

    Per block: Conv2d weight (Cout, Cin, 3, 3) + bias (Cout,),
    BN weight (Cout,) = 1, BN bias (Cout,) = 0 (PyTorch defaults).
    """
    params = []
    cin = input_channels
    for _ in range(depth):
        key, kw_, kb = jax.random.split(key, 3)
        fan_in = cin * 9
        w = jax.random.normal(kw_, (output_channels, cin, 3, 3), jnp.float32)
        w = w / jnp.sqrt(float(fan_in))
        b = 0.1 * jax.random.normal(kb, (output_channels,), jnp.float32)
        gamma = jnp.ones((output_channels,), jnp.float32)
        beta = jnp.zeros((output_channels,), jnp.float32)
        params.append((w, b, gamma, beta))
        cin = output_channels
    return params


def encoder_forward(x_nchw, params):
    """Encoder.forward: returns (processed, pooled), both NCHW."""
    n, c0, h, wd = x_nchw.shape
    m = h * wd
    budget = _vmem_budget_bytes()

    # Channels-first flat layout; no NCHW<->NHWC transposes anywhere.
    cur = x_nchw.reshape(n, c0, m).astype(jnp.bfloat16)
    scale = shift = None
    for (w, _b, gamma, beta) in params:          # conv bias cancels under BN
        c_out, c_in = w.shape[0], w.shape[1]
        # (Cout, Cin, 3, 3) -> (kh, Cout, kw*Cin + ci), matching the slab order.
        w_slab = (jnp.transpose(w, (2, 0, 3, 1))
                  .reshape(3, c_out, 3 * c_in).astype(jnp.bfloat16))
        z, psum, psq = _conv_stats(cur, w_slab, scale, shift, wd, budget)
        scale, shift = _bn_affine_from_partials(psum, psq, m, gamma, beta)
        cur = z

    processed, pooled = _bn_relu_pool(cur, scale, shift, h, wd, budget)
    return processed.reshape(n, -1, h, wd), pooled


# ---------------------------------------------------------------------------
# Pure-JAX reference (for correctness check)
# ---------------------------------------------------------------------------

def reference_forward(x_nchw, params):
    h = x_nchw.astype(jnp.float32)
    for (w, b, gamma, beta) in params:
        z = jax.lax.conv_general_dilated(
            h, w, window_strides=(1, 1), padding="SAME",
            dimension_numbers=("NCHW", "OIHW", "NCHW"))
        z = z + b[None, :, None, None]
        mean = jnp.mean(z, axis=(0, 2, 3), keepdims=True)
        var = jnp.var(z, axis=(0, 2, 3), keepdims=True)
        zn = (z - mean) * jax.lax.rsqrt(var + 1e-5)
        h = jnp.maximum(zn * gamma[None, :, None, None]
                        + beta[None, :, None, None], 0.0)
    processed = h
    pooled = jax.lax.reduce_window(processed, -jnp.inf, jax.lax.max,
                                   (1, 1, 2, 2), (1, 1, 2, 2), "VALID")
    return processed, pooled


if __name__ == "__main__":
    key = jax.random.PRNGKey(0)
    kx, kp = jax.random.split(key)

    # Small shapes consistent with the module: batch=2, in_ch=4, spatial=16x16,
    # out_ch=8, depth=2 (default), activation='relu' (default).
    x = jax.random.normal(kx, (2, 4, 16, 16), jnp.float32)        # NCHW
    params = init_encoder_params(kp, input_channels=4, output_channels=8,
                                 depth=2)

    fwd = jax.jit(encoder_forward)
    processed, pooled = jax.block_until_ready(fwd(x, params))

    assert processed.shape == (2, 8, 16, 16), processed.shape
    assert pooled.shape == (2, 8, 8, 8), pooled.shape
    assert bool(jnp.all(jnp.isfinite(processed)))
    assert bool(jnp.all(jnp.isfinite(pooled)))
    # ReLU => non-negative outputs; pooling of non-negatives stays non-negative.
    assert bool(jnp.all(processed >= 0)) and bool(jnp.all(pooled >= 0))

    # Compare against a pure-JAX f32 reference (bf16 matmul operands & bf16
    # intermediate z => loose tolerance).
    ref_p, ref_q = reference_forward(x, params)
    assert bool(jnp.allclose(processed, ref_p, atol=1e-1, rtol=1e-1)), (
        float(jnp.max(jnp.abs(processed - ref_p))))
    assert bool(jnp.allclose(pooled, ref_q, atol=1e-1, rtol=1e-1)), (
        float(jnp.max(jnp.abs(pooled - ref_q))))

    print("KERNEL_OK")
</pallas_src>

<mosaic_0001>
module attributes {stable_mosaic.version = 11 : i64} {
  func.func @kernel(%arg0: i32, %arg1: memref<1x4x256xbf16, #tpu.memory_space<vmem>>, %arg2: memref<3x8x12xbf16, #tpu.memory_space<vmem>>, %arg3: memref<1x8x256xbf16, #tpu.memory_space<vmem>>, %arg4: memref<1x8x1xf32, #tpu.memory_space<vmem>>, %arg5: memref<1x8x1xf32, #tpu.memory_space<vmem>>, %arg6: memref<12x288xf32, #tpu.memory_space<vmem>>) attributes {dimension_semantics = [#tpu.dimension_semantics<parallel>], iteration_bounds = array<i64: 2>, scalar_prefetch = 0 : i64, scratch_operands = 1 : i64, tpu.core_type = #tpu.core_type<tc>, window_params = [{transform_indices = @transform_0, window_bounds = array<i64: 1, 4, 256>}, {pipeline_mode = #tpu.pipeline_mode<synchronous>, transform_indices = @transform_1, window_bounds = array<i64: 3, 8, 12>}, {transform_indices = @transform_2, window_bounds = array<i64: 1, 8, 256>}, {transform_indices = @transform_3, window_bounds = array<i64: 1, 8, 1>}, {transform_indices = @transform_4, window_bounds = array<i64: 1, 8, 1>}]} {
    %c0 = arith.constant 0 : index
    %c0_0 = arith.constant 0 : index
    %c0_1 = arith.constant 0 : index
    %0 = vector.load %arg1[%c0, %c0_0, %c0_1] : memref<1x4x256xbf16, #tpu.memory_space<vmem>>, vector<1x4x256xbf16>
    %1 = vector.shape_cast %0 : vector<1x4x256xbf16> to vector<4x256xbf16>
    %2 = arith.extf %1 : vector<4x256xbf16> to vector<4x256xf32>
    %3 = tpu.iota {dimensions = array<i32: 1>} : vector<1x256xi32>
    %c16_i32 = arith.constant 16 : i32
    %c0_i32 = arith.constant 0 : i32
    %4 = arith.cmpi eq, %c16_i32, %c0_i32 : i32
    %c1_i32 = arith.constant 1 : i32
    %5 = arith.select %4, %c1_i32, %c16_i32 : i32
    %6 = vector.broadcast %5 : i32 to vector<1x256xi32>
    %7 = arith.remsi %3, %6 : vector<1x256xi32>
    %c0_i32_2 = arith.constant 0 : i32
    %8 = vector.broadcast %c0_i32_2 : i32 to vector<1x256xi32>
    %9 = arith.cmpi ne, %7, %8 : vector<1x256xi32>
    %c0_i32_3 = arith.constant 0 : i32
    %10 = vector.broadcast %c0_i32_3 : i32 to vector<1x256xi32>
    %11 = arith.cmpi slt, %7, %10 : vector<1x256xi32>
    %c0_i32_4 = arith.constant 0 : i32
    %12 = arith.cmpi slt, %5, %c0_i32_4 : i32
    %13 = vector.broadcast %12 : i1 to vector<1x256xi1>
    %14 = vector.broadcast %13 : vector<1x256xi1> to vector<1x256xi1>
    %15 = arith.xori %11, %14 : vector<1x256xi1>
    %16 = arith.andi %15, %9 : vector<1x256xi1>
    %17 = vector.broadcast %5 : i32 to vector<1x256xi32>
    %18 = arith.addi %7, %17 : vector<1x256xi32>
    %19 = arith.select %16, %18, %7 : vector<1x256xi1>, vector<1x256xi32>
    %cst = arith.constant 0.000000e+00 : f32
    %20 = vector.broadcast %cst : f32 to vector<4x256xf32>
    %cst_5 = arith.constant 0.000000e+00 : f32
    %21 = vector.broadcast %cst_5 : f32 to vector<12x288xf32>
    %c0_6 = arith.constant 0 : index
    %c0_7 = arith.constant 0 : index
    %22 = vector.load %arg6[%c0_6, %c0_7] : memref<12x288xf32, #tpu.memory_space<vmem>>, vector<12x288xf32>
    tpu.vector_store %arg6[%c0_6, %c0_7], %21 {strides = array<i32>} : memref<12x288xf32, #tpu.memory_space<vmem>>, vector<12x288xf32>,
    %c15_i32 = arith.constant 15 : i32
    %23 = vector.broadcast %c15_i32 : i32 to vector<1x256xi32>
    %24 = arith.cmpi eq, %19, %23 : vector<1x256xi32>
    %25 = vector.shape_cast %24 : vector<1x256xi1> to vector<1x256xi1>
    %26 = vector.broadcast %25 : vector<1x256xi1> to vector<4x256xi1>
    %27 = arith.select %26, %20, %2 : vector<4x256xi1>, vector<4x256xf32>
    %c0_8 = arith.constant 0 : index
    %c17 = arith.constant 17 : index
    %28 = vector.load %arg6[%c0_8, %c17] : memref<12x288xf32, #tpu.memory_space<vmem>>, vector<4x256xf32>
    tpu.vector_store %arg6[%c0_8, %c17], %27 {strides = array<i32>} : memref<12x288xf32, #tpu.memory_space<vmem>>, vector<4x256xf32>,
    %c4 = arith.constant 4 : index
    %c16 = arith.constant 16 : index
    %29 = vector.load %arg6[%c4, %c16] : memref<12x288xf32, #tpu.memory_space<vmem>>, vector<4x256xf32>
    tpu.vector_store %arg6[%c4, %c16], %2 {strides = array<i32>} : memref<12x288xf32, #tpu.memory_space<vmem>>, vector<4x256xf32>,
    %c0_i32_9 = arith.constant 0 : i32
    %30 = vector.broadcast %c0_i32_9 : i32 to vector<1x256xi32>
    %31 = arith.cmpi eq, %19, %30 : vector<1x256xi32>
    %32 = vector.shape_cast %31 : vector<1x256xi1> to vector<1x256xi1>
    %33 = vector.broadcast %32 : vector<1x256xi1> to vector<4x256xi1>
    %34 = arith.select %33, %20, %2 : vector<4x256xi1>, vector<4x256xf32>
    %c8 = arith.constant 8 : index
    %c15 = arith.constant 15 : index
    %35 = vector.load %arg6[%c8, %c15] : memref<12x288xf32, #tpu.memory_space<vmem>>, vector<4x256xf32>
    tpu.vector_store %arg6[%c8, %c15], %34 {strides = array<i32>} : memref<12x288xf32, #tpu.memory_space<vmem>>, vector<4x256xf32>,
    %cst_10 = arith.constant 0.000000e+00 : f32
    %36 = vector.broadcast %cst_10 : f32 to vector<8x256xf32>
    %c0_11 = arith.constant 0 : index
    %c0_12 = arith.constant 0 : index
    %37 = vector.load %arg6[%c0_11, %c0_12] : memref<12x288xf32, #tpu.memory_space<vmem>>, vector<12x256xf32>
    %38 = arith.truncf %37 : vector<12x256xf32> to vector<12x256xbf16>
    %c0_13 = arith.constant 0 : index
    %c0_14 = arith.constant 0 : index
    %c0_15 = arith.constant 0 : index
    %39 = vector.load %arg2[%c0_13, %c0_14, %c0_15] : memref<3x8x12xbf16, #tpu.memory_space<vmem>>, vector<1x8x12xbf16>
    %40 = vector.shape_cast %39 : vector<1x8x12xbf16> to vector<8x12xbf16>
    %cst_16 = arith.constant dense<0.000000e+00> : vector<8x256xf32>
    %41 = tpu.matmul %40, %38, %cst_16 {dimension_numbers = #tpu.dot_dimension_numbers<[1], [0], [0], [1], [0, 0, 1, 1], [], []>} : vector<8x12xbf16>, vector<12x256xbf16>, vector<8x256xf32> -> vector<8x256xf32>
    %42 = arith.addf %36, %41 : vector<8x256xf32>
    %c0_17 = arith.constant 0 : index
    %c16_18 = arith.constant 16 : index
    %43 = vector.load %arg6[%c0_17, %c16_18] : memref<12x288xf32, #tpu.memory_space<vmem>>, vector<12x256xf32>
    %44 = arith.truncf %43 : vector<12x256xf32> to vector<12x256xbf16>
    %c1 = arith.constant 1 : index
    %c0_19 = arith.constant 0 : index
    %c0_20 = arith.constant 0 : index
    %45 = vector.load %arg2[%c1, %c0_19, %c0_20] : memref<3x8x12xbf16, #tpu.memory_space<vmem>>, vector<1x8x12xbf16>
    %46 = vector.shape_cast %45 : vector<1x8x12xbf16> to vector<8x12xbf16>
    %cst_21 = arith.constant dense<0.000000e+00> : vector<8x256xf32>
    %47 = tpu.matmul %46, %44, %cst_21 {dimension_numbers = #tpu.dot_dimension_numbers<[1], [0], [0], [1], [0, 0, 1, 1], [], []>} : vector<8x12xbf16>, vector<12x256xbf16>, vector<8x256xf32> -> vector<8x256xf32>
    %48 = arith.addf %42, %47 : vector<8x256xf32>
    %c0_22 = arith.constant 0 : index
    %c32 = arith.constant 32 : index
    %49 = vector.load %arg6[%c0_22, %c32] : memref<12x288xf32, #tpu.memory_space<vmem>>, vector<12x256xf32>
    %50 = arith.truncf %49 : vector<12x256xf32> to vector<12x256xbf16>
    %c2 = arith.constant 2 : index
    %c0_23 = arith.constant 0 : index
    %c0_24 = arith.constant 0 : index
    %51 = vector.load %arg2[%c2, %c0_23, %c0_24] : memref<3x8x12xbf16, #tpu.memory_space<vmem>>, vector<1x8x12xbf16>
    %52 = vector.shape_cast %51 : vector<1x8x12xbf16> to vector<8x12xbf16>
    %cst_25 = arith.constant dense<0.000000e+00> : vector<8x256xf32>
    %53 = tpu.matmul %52, %50, %cst_25 {dimension_numbers = #tpu.dot_dimension_numbers<[1], [0], [0], [1], [0, 0, 1, 1], [], []>} : vector<8x12xbf16>, vector<12x256xbf16>, vector<8x256xf32> -> vector<8x256xf32>
    %54 = arith.addf %48, %53 : vector<8x256xf32>
    %55 = arith.truncf %54 : vector<8x256xf32> to vector<8x256xbf16>
    %c0_26 = arith.constant 0 : index
    %c0_27 = arith.constant 0 : index
    %c0_28 = arith.constant 0 : index
    %56 = vector.load %arg3[%c0_26, %c0_27, %c0_28] : memref<1x8x256xbf16, #tpu.memory_space<vmem>>, vector<1x8x256xbf16>
    %57 = vector.shape_cast %56 : vector<1x8x256xbf16> to vector<8x256xbf16>
    %58 = vector.shape_cast %55 : vector<8x256xbf16> to vector<1x8x256xbf16>
    tpu.vector_store %arg3[%c0_26, %c0_27, %c0_28], %58 {strides = array<i32>} : memref<1x8x256xbf16, #tpu.memory_space<vmem>>, vector<1x8x256xbf16>,
    %cst_29 = arith.constant dense<0.000000e+00> : vector<8xf32>
    %59 = vector.multi_reduction <add>, %54, %cst_29 [1] : vector<8x256xf32> to vector<8xf32>
    %60 = vector.shape_cast %59 : vector<8xf32> to vector<8x1xf32>
    %c0_30 = arith.constant 0 : index
    %c0_31 = arith.constant 0 : index
    %c0_32 = arith.constant 0 : index
    %61 = vector.load %arg4[%c0_30, %c0_31, %c0_32] : memref<1x8x1xf32, #tpu.memory_space<vmem>>, vector<1x8x1xf32>
    %62 = vector.shape_cast %61 : vector<1x8x1xf32> to vector<8x1xf32>
    %63 = vector.shape_cast %60 : vector<8x1xf32> to vector<1x8x1xf32>
    tpu.vector_store %arg4[%c0_30, %c0_31, %c0_32], %63 {strides = array<i32>} : memref<1x8x1xf32, #tpu.memory_space<vmem>>, vector<1x8x1xf32>,
    %64 = arith.mulf %54, %54 : vector<8x256xf32>
    %cst_33 = arith.constant dense<0.000000e+00> : vector<8xf32>
    %65 = vector.multi_reduction <add>, %64, %cst_33 [1] : vector<8x256xf32> to vector<8xf32>
    %66 = vector.shape_cast %65 : vector<8xf32> to vector<8x1xf32>
    %c0_34 = arith.constant 0 : index
    %c0_35 = arith.constant 0 : index
    %c0_36 = arith.constant 0 : index
    %67 = vector.load %arg5[%c0_34, %c0_35, %c0_36] : memref<1x8x1xf32, #tpu.memory_space<vmem>>, vector<1x8x1xf32>
    %68 = vector.shape_cast %67 : vector<1x8x1xf32> to vector<8x1xf32>
    %69 = vector.shape_cast %66 : vector<8x1xf32> to vector<1x8x1xf32>
    tpu.vector_store %arg5[%c0_34, %c0_35, %c0_36], %69 {strides = array<i32>} : memref<1x8x1xf32, #tpu.memory_space<vmem>>, vector<1x8x1xf32>,
    return
  }
  func.func @transform_0(%arg0: i32) -> (i32, i32, i32) {
    %c0_i32 = arith.constant 0 : i32
    %c0_i32_0 = arith.constant 0 : i32
    %c0_i32_1 = arith.constant 0 : i32
    return %arg0, %c0_i32, %c0_i32_0 : i32, i32, i32
  }
  func.func @transform_1(%arg0: i32) -> (i32, i32, i32) {
    %c0_i32 = arith.constant 0 : i32
    %c0_i32_0 = arith.constant 0 : i32
    %c0_i32_1 = arith.constant 0 : i32
    %c0_i32_2 = arith.constant 0 : i32
    return %c0_i32, %c0_i32_0, %c0_i32_1 : i32, i32, i32
  }
  func.func @transform_2(%arg0: i32) -> (i32, i32, i32) {
    %c0_i32 = arith.constant 0 : i32
    %c0_i32_0 = arith.constant 0 : i32
    %c0_i32_1 = arith.constant 0 : i32
    return %arg0, %c0_i32, %c0_i32_0 : i32, i32, i32
  }
  func.func @transform_3(%arg0: i32) -> (i32, i32, i32) {
    %c0_i32 = arith.constant 0 : i32
    %c0_i32_0 = arith.constant 0 : i32
    %c0_i32_1 = arith.constant 0 : i32
    return %arg0, %c0_i32, %c0_i32_0 : i32, i32, i32
  }
  func.func @transform_4(%arg0: i32) -> (i32, i32, i32) {
    %c0_i32 = arith.constant 0 : i32
    %c0_i32_0 = arith.constant 0 : i32
    %c0_i32_1 = arith.constant 0 : i32
    return %arg0, %c0_i32, %c0_i32_0 : i32, i32, i32
  }
}

module attributes {stable_mosaic.version = 11 : i64} {
  func.func @kernel(%arg0: i32, %arg1: memref<1x8x256xbf16, #tpu.memory_space<vmem>>, %arg2: memref<8x1xf32, #tpu.memory_space<vmem>>, %arg3: memref<8x1xf32, #tpu.memory_space<vmem>>, %arg4: memref<3x8x24xbf16, #tpu.memory_space<vmem>>, %arg5: memref<1x8x256xbf16, #tpu.memory_space<vmem>>, %arg6: memref<1x8x1xf32, #tpu.memory_space<vmem>>, %arg7: memref<1x8x1xf32, #tpu.memory_space<vmem>>, %arg8: memref<24x288xf32, #tpu.memory_space<vmem>>) attributes {dimension_semantics = [#tpu.dimension_semantics<parallel>], iteration_bounds = array<i64: 2>, scalar_prefetch = 0 : i64, scratch_operands = 1 : i64, tpu.core_type = #tpu.core_type<tc>, window_params = [{transform_indices = @transform_0, window_bounds = array<i64: 1, 8, 256>}, {pipeline_mode = #tpu.pipeline_mode<synchronous>, transform_indices = @transform_1, window_bounds = array<i64: 8, 1>}, {pipeline_mode = #tpu.pipeline_mode<synchronous>, transform_indices = @transform_2, window_bounds = array<i64: 8, 1>}, {pipeline_mode = #tpu.pipeline_mode<synchronous>, transform_indices = @transform_3, window_bounds = array<i64: 3, 8, 24>}, {transform_indices = @transform_4, window_bounds = array<i64: 1, 8, 256>}, {transform_indices = @transform_5, window_bounds = array<i64: 1, 8, 1>}, {transform_indices = @transform_6, window_bounds = array<i64: 1, 8, 1>}]} {
    %c0 = arith.constant 0 : index
    %c0_0 = arith.constant 0 : index
    %c0_1 = arith.constant 0 : index
    %0 = vector.load %arg1[%c0, %c0_0, %c0_1] : memref<1x8x256xbf16, #tpu.memory_space<vmem>>, vector<1x8x256xbf16>
    %1 = vector.shape_cast %0 : vector<1x8x256xbf16> to vector<8x256xbf16>
    %2 = arith.extf %1 : vector<8x256xbf16> to vector<8x256xf32>
    %c0_2 = arith.constant 0 : index
    %c0_3 = arith.constant 0 : index
    %3 = vector.load %arg2[%c0_2, %c0_3] : memref<8x1xf32, #tpu.memory_space<vmem>>, vector<8x1xf32>
    %4 = vector.broadcast %3 : vector<8x1xf32> to vector<8x256xf32>
    %5 = arith.mulf %2, %4 : vector<8x256xf32>
    %c0_4 = arith.constant 0 : index
    %c0_5 = arith.constant 0 : index
    %6 = vector.load %arg3[%c0_4, %c0_5] : memref<8x1xf32, #tpu.memory_space<vmem>>, vector<8x1xf32>
    %7 = vector.broadcast %6 : vector<8x1xf32> to vector<8x256xf32>
    %8 = arith.addf %5, %7 : vector<8x256xf32>
    %cst = arith.constant 0.000000e+00 : f32
    %9 = vector.broadcast %cst : f32 to vector<8x256xf32>
    %10 = arith.maximumf %8, %9 : vector<8x256xf32>
    %11 = tpu.iota {dimensions = array<i32: 1>} : vector<1x256xi32>
    %c16_i32 = arith.constant 16 : i32
    %c0_i32 = arith.constant 0 : i32
    %12 = arith.cmpi eq, %c16_i32, %c0_i32 : i32
    %c1_i32 = arith.constant 1 : i32
    %13 = arith.select %12, %c1_i32, %c16_i32 : i32
    %14 = vector.broadcast %13 : i32 to vector<1x256xi32>
    %15 = arith.remsi %11, %14 : vector<1x256xi32>
    %c0_i32_6 = arith.constant 0 : i32
    %16 = vector.broadcast %c0_i32_6 : i32 to vector<1x256xi32>
    %17 = arith.cmpi ne, %15, %16 : vector<1x256xi32>
    %c0_i32_7 = arith.constant 0 : i32
    %18 = vector.broadcast %c0_i32_7 : i32 to vector<1x256xi32>
    %19 = arith.cmpi slt, %15, %18 : vector<1x256xi32>
    %c0_i32_8 = arith.constant 0 : i32
    %20 = arith.cmpi slt, %13, %c0_i32_8 : i32
    %21 = vector.broadcast %20 : i1 to vector<1x256xi1>
    %22 = vector.broadcast %21 : vector<1x256xi1> to vector<1x256xi1>
    %23 = arith.xori %19, %22 : vector<1x256xi1>
    %24 = arith.andi %23, %17 : vector<1x256xi1>
    %25 = vector.broadcast %13 : i32 to vector<1x256xi32>
    %26 = arith.addi %15, %25 : vector<1x256xi32>
    %27 = arith.select %24, %26, %15 : vector<1x256xi1>, vector<1x256xi32>
    %cst_9 = arith.constant 0.000000e+00 : f32
    %28 = vector.broadcast %cst_9 : f32 to vector<8x256xf32>
    %cst_10 = arith.constant 0.000000e+00 : f32
    %29 = vector.broadcast %cst_10 : f32 to vector<24x288xf32>
    %c0_11 = arith.constant 0 : index
    %c0_12 = arith.constant 0 : index
    %30 = vector.load %arg8[%c0_11, %c0_12] : memref<24x288xf32, #tpu.memory_space<vmem>>, vector<24x288xf32>
    tpu.vector_store %arg8[%c0_11, %c0_12], %29 {strides = array<i32>} : memref<24x288xf32, #tpu.memory_space<vmem>>, vector<24x288xf32>,
    %c15_i32 = arith.constant 15 : i32
    %31 = vector.broadcast %c15_i32 : i32 to vector<1x256xi32>
    %32 = arith.cmpi eq, %27, %31 : vector<1x256xi32>
    %33 = vector.shape_cast %32 : vector<1x256xi1> to vector<1x256xi1>
    %34 = vector.broadcast %33 : vector<1x256xi1> to vector<8x256xi1>
    %35 = arith.select %34, %28, %10 : vector<8x256xi1>, vector<8x256xf32>
    %c0_13 = arith.constant 0 : index
    %c17 = arith.constant 17 : index
    %36 = vector.load %arg8[%c0_13, %c17] : memref<24x288xf32, #tpu.memory_space<vmem>>, vector<8x256xf32>
    tpu.vector_store %arg8[%c0_13, %c17], %35 {strides = array<i32>} : memref<24x288xf32, #tpu.memory_space<vmem>>, vector<8x256xf32>,
    %c8 = arith.constant 8 : index
    %c16 = arith.constant 16 : index
    %37 = vector.load %arg8[%c8, %c16] : memref<24x288xf32, #tpu.memory_space<vmem>>, vector<8x256xf32>
    tpu.vector_store %arg8[%c8, %c16], %10 {strides = array<i32>} : memref<24x288xf32, #tpu.memory_space<vmem>>, vector<8x256xf32>,
    %c0_i32_14 = arith.constant 0 : i32
    %38 = vector.broadcast %c0_i32_14 : i32 to vector<1x256xi32>
    %39 = arith.cmpi eq, %27, %38 : vector<1x256xi32>
    %40 = vector.shape_cast %39 : vector<1x256xi1> to vector<1x256xi1>
    %41 = vector.broadcast %40 : vector<1x256xi1> to vector<8x256xi1>
    %42 = arith.select %41, %28, %10 : vector<8x256xi1>, vector<8x256xf32>
    %c16_15 = arith.constant 16 : index
    %c15 = arith.constant 15 : index
    %43 = vector.load %arg8[%c16_15, %c15] : memref<24x288xf32, #tpu.memory_space<vmem>>, vector<8x256xf32>
    tpu.vector_store %arg8[%c16_15, %c15], %42 {strides = array<i32>} : memref<24x288xf32, #tpu.memory_space<vmem>>, vector<8x256xf32>,
    %cst_16 = arith.constant 0.000000e+00 : f32
    %44 = vector.broadcast %cst_16 : f32 to vector<8x256xf32>
    %c0_17 = arith.constant 0 : index
    %c0_18 = arith.constant 0 : index
    %45 = vector.load %arg8[%c0_17, %c0_18] : memref<24x288xf32, #tpu.memory_space<vmem>>, vector<24x256xf32>
    %46 = arith.truncf %45 : vector<24x256xf32> to vector<24x256xbf16>
    %c0_19 = arith.constant 0 : index
    %c0_20 = arith.constant 0 : index
    %c0_21 = arith.constant 0 : index
    %47 = vector.load %arg4[%c0_19, %c0_20, %c0_21] : memref<3x8x24xbf16, #tpu.memory_space<vmem>>, vector<1x8x24xbf16>
    %48 = vector.shape_cast %47 : vector<1x8x24xbf16> to vector<8x24xbf16>
    %cst_22 = arith.constant dense<0.000000e+00> : vector<8x256xf32>
    %49 = tpu.matmul %48, %46, %cst_22 {dimension_numbers = #tpu.dot_dimension_numbers<[1], [0], [0], [1], [0, 0, 1, 1], [], []>} : vector<8x24xbf16>, vector<24x256xbf16>, vector<8x256xf32> -> vector<8x256xf32>
    %50 = arith.addf %44, %49 : vector<8x256xf32>
    %c0_23 = arith.constant 0 : index
    %c16_24 = arith.constant 16 : index
    %51 = vector.load %arg8[%c0_23, %c16_24] : memref<24x288xf32, #tpu.memory_space<vmem>>, vector<24x256xf32>
    %52 = arith.truncf %51 : vector<24x256xf32> to vector<24x256xbf16>
    %c1 = arith.constant 1 : index
    %c0_25 = arith.constant 0 : index
    %c0_26 = arith.constant 0 : index
    %53 = vector.load %arg4[%c1, %c0_25, %c0_26] : memref<3x8x24xbf16, #tpu.memory_space<vmem>>, vector<1x8x24xbf16>
    %54 = vector.shape_cast %53 : vector<1x8x24xbf16> to vector<8x24xbf16>
    %cst_27 = arith.constant dense<0.000000e+00> : vector<8x256xf32>
    %55 = tpu.matmul %54, %52, %cst_27 {dimension_numbers = #tpu.dot_dimension_numbers<[1], [0], [0], [1], [0, 0, 1, 1], [], []>} : vector<8x24xbf16>, vector<24x256xbf16>, vector<8x256xf32> -> vector<8x256xf32>
    %56 = arith.addf %50, %55 : vector<8x256xf32>
    %c0_28 = arith.constant 0 : index
    %c32 = arith.constant 32 : index
    %57 = vector.load %arg8[%c0_28, %c32] : memref<24x288xf32, #tpu.memory_space<vmem>>, vector<24x256xf32>
    %58 = arith.truncf %57 : vector<24x256xf32> to vector<24x256xbf16>
    %c2 = arith.constant 2 : index
    %c0_29 = arith.constant 0 : index
    %c0_30 = arith.constant 0 : index
    %59 = vector.load %arg4[%c2, %c0_29, %c0_30] : memref<3x8x24xbf16, #tpu.memory_space<vmem>>, vector<1x8x24xbf16>
    %60 = vector.shape_cast %59 : vector<1x8x24xbf16> to vector<8x24xbf16>
    %cst_31 = arith.constant dense<0.000000e+00> : vector<8x256xf32>
    %61 = tpu.matmul %60, %58, %cst_31 {dimension_numbers = #tpu.dot_dimension_numbers<[1], [0], [0], [1], [0, 0, 1, 1], [], []>} : vector<8x24xbf16>, vector<24x256xbf16>, vector<8x256xf32> -> vector<8x256xf32>
    %62 = arith.addf %56, %61 : vector<8x256xf32>
    %63 = arith.truncf %62 : vector<8x256xf32> to vector<8x256xbf16>
    %c0_32 = arith.constant 0 : index
    %c0_33 = arith.constant 0 : index
    %c0_34 = arith.constant 0 : index
    %64 = vector.load %arg5[%c0_32, %c0_33, %c0_34] : memref<1x8x256xbf16, #tpu.memory_space<vmem>>, vector<1x8x256xbf16>
    %65 = vector.shape_cast %64 : vector<1x8x256xbf16> to vector<8x256xbf16>
    %66 = vector.shape_cast %63 : vector<8x256xbf16> to vector<1x8x256xbf16>
    tpu.vector_store %arg5[%c0_32, %c0_33, %c0_34], %66 {strides = array<i32>} : memref<1x8x256xbf16, #tpu.memory_space<vmem>>, vector<1x8x256xbf16>,
    %cst_35 = arith.constant dense<0.000000e+00> : vector<8xf32>
    %67 = vector.multi_reduction <add>, %62, %cst_35 [1] : vector<8x256xf32> to vector<8xf32>
    %68 = vector.shape_cast %67 : vector<8xf32> to vector<8x1xf32>
    %c0_36 = arith.constant 0 : index
    %c0_37 = arith.constant 0 : index
    %c0_38 = arith.constant 0 : index
    %69 = vector.load %arg6[%c0_36, %c0_37, %c0_38] : memref<1x8x1xf32, #tpu.memory_space<vmem>>, vector<1x8x1xf32>
    %70 = vector.shape_cast %69 : vector<1x8x1xf32> to vector<8x1xf32>
    %71 = vector.shape_cast %68 : vector<8x1xf32> to vector<1x8x1xf32>
    tpu.vector_store %arg6[%c0_36, %c0_37, %c0_38], %71 {strides = array<i32>} : memref<1x8x1xf32, #tpu.memory_space<vmem>>, vector<1x8x1xf32>,
    %72 = arith.mulf %62, %62 : vector<8x256xf32>
    %cst_39 = arith.constant dense<0.000000e+00> : vector<8xf32>
    %73 = vector.multi_reduction <add>, %72, %cst_39 [1] : vector<8x256xf32> to vector<8xf32>
    %74 = vector.shape_cast %73 : vector<8xf32> to vector<8x1xf32>
    %c0_40 = arith.constant 0 : index
    %c0_41 = arith.constant 0 : index
    %c0_42 = arith.constant 0 : index
    %75 = vector.load %arg7[%c0_40, %c0_41, %c0_42] : memref<1x8x1xf32, #tpu.memory_space<vmem>>, vector<1x8x1xf32>
    %76 = vector.shape_cast %75 : vector<1x8x1xf32> to vector<8x1xf32>
    %77 = vector.shape_cast %74 : vector<8x1xf32> to vector<1x8x1xf32>
    tpu.vector_store %arg7[%c0_40, %c0_41, %c0_42], %77 {strides = array<i32>} : memref<1x8x1xf32, #tpu.memory_space<vmem>>, vector<1x8x1xf32>,
    return
  }
  func.func @transform_0(%arg0: i32) -> (i32, i32, i32) {
    %c0_i32 = arith.constant 0 : i32
    %c0_i32_0 = arith.constant 0 : i32
    %c0_i32_1 = arith.constant 0 : i32
    return %arg0, %c0_i32, %c0_i32_0 : i32, i32, i32
  }
  func.func @transform_1(%arg0: i32) -> (i32, i32) {
    %c0_i32 = arith.constant 0 : i32
    %c0_i32_0 = arith.constant 0 : i32
    %c0_i32_1 = arith.constant 0 : i32
    return %c0_i32, %c0_i32_0 : i32, i32
  }
  func.func @transform_2(%arg0: i32) -> (i32, i32) {
    %c0_i32 = arith.constant 0 : i32
    %c0_i32_0 = arith.constant 0 : i32
    %c0_i32_1 = arith.constant 0 : i32
    return %c0_i32, %c0_i32_0 : i32, i32
  }
  func.func @transform_3(%arg0: i32) -> (i32, i32, i32) {
    %c0_i32 = arith.constant 0 : i32
    %c0_i32_0 = arith.constant 0 : i32
    %c0_i32_1 = arith.constant 0 : i32
    %c0_i32_2 = arith.constant 0 : i32
    return %c0_i32, %c0_i32_0, %c0_i32_1 : i32, i32, i32
  }
  func.func @transform_4(%arg0: i32) -> (i32, i32, i32) {
    %c0_i32 = arith.constant 0 : i32
    %c0_i32_0 = arith.constant 0 : i32
    %c0_i32_1 = arith.constant 0 : i32
    return %arg0, %c0_i32, %c0_i32_0 : i32, i32, i32
  }
  func.func @transform_5(%arg0: i32) -> (i32, i32, i32) {
    %c0_i32 = arith.constant 0 : i32
    %c0_i32_0 = arith.constant 0 : i32
    %c0_i32_1 = arith.constant 0 : i32
    return %arg0, %c0_i32, %c0_i32_0 : i32, i32, i32
  }
  func.func @transform_6(%arg0: i32) -> (i32, i32, i32) {
    %c0_i32 = arith.constant 0 : i32
    %c0_i32_0 = arith.constant 0 : i32
    %c0_i32_1 = arith.constant 0 : i32
    return %arg0, %c0_i32, %c0_i32_0 : i32, i32, i32
  }
}

module attributes {stable_mosaic.version = 11 : i64} {
  func.func @_bn_relu_pool_kernel(%arg0: i32, %arg1: i32, %arg2: memref<1x8x256xbf16, #tpu.memory_space<vmem>>, %arg3: memref<1x8x8x2x8x2xbf16, #tpu.memory_space<vmem>>, %arg4: memref<8x1xf32, #tpu.memory_space<vmem>>, %arg5: memref<8x1xf32, #tpu.memory_space<vmem>>, %arg6: memref<1x8x256xf32, #tpu.memory_space<vmem>>, %arg7: memref<1x8x8x8xf32, #tpu.memory_space<vmem>>) attributes {dimension_semantics = [#tpu.dimension_semantics<parallel>, #tpu.dimension_semantics<parallel>], iteration_bounds = array<i64: 2, 1>, scalar_prefetch = 0 : i64, scratch_operands = 0 : i64, tpu.core_type = #tpu.core_type<tc>, window_params = [{transform_indices = @transform_0, window_bounds = array<i64: 1, 8, 256>}, {transform_indices = @transform_1, window_bounds = array<i64: 1, 8, 8, 2, 8, 2>}, {pipeline_mode = #tpu.pipeline_mode<synchronous>, transform_indices = @transform_2, window_bounds = array<i64: 8, 1>}, {pipeline_mode = #tpu.pipeline_mode<synchronous>, transform_indices = @transform_3, window_bounds = array<i64: 8, 1>}, {transform_indices = @transform_4, window_bounds = array<i64: 1, 8, 256>}, {transform_indices = @transform_5, window_bounds = array<i64: 1, 8, 8, 8>}]} {
    %c0 = arith.constant 0 : index
    %c0_0 = arith.constant 0 : index
    %0 = vector.load %arg4[%c0, %c0_0] : memref<8x1xf32, #tpu.memory_space<vmem>>, vector<8x1xf32>
    %c0_1 = arith.constant 0 : index
    %c0_2 = arith.constant 0 : index
    %1 = vector.load %arg5[%c0_1, %c0_2] : memref<8x1xf32, #tpu.memory_space<vmem>>, vector<8x1xf32>
    %c0_3 = arith.constant 0 : index
    %c0_4 = arith.constant 0 : index
    %c0_5 = arith.constant 0 : index
    %2 = vector.load %arg2[%c0_3, %c0_4, %c0_5] : memref<1x8x256xbf16, #tpu.memory_space<vmem>>, vector<1x8x256xbf16>
    %3 = vector.shape_cast %2 : vector<1x8x256xbf16> to vector<8x256xbf16>
    %4 = arith.extf %3 : vector<8x256xbf16> to vector<8x256xf32>
    %5 = vector.broadcast %0 : vector<8x1xf32> to vector<8x256xf32>
    %6 = arith.mulf %4, %5 : vector<8x256xf32>
    %7 = vector.broadcast %1 : vector<8x1xf32> to vector<8x256xf32>
    %8 = arith.addf %6, %7 : vector<8x256xf32>
    %cst = arith.constant 0.000000e+00 : f32
    %9 = vector.broadcast %cst : f32 to vector<8x256xf32>
    %10 = arith.maximumf %8, %9 : vector<8x256xf32>
    %c0_6 = arith.constant 0 : index
    %c0_7 = arith.constant 0 : index
    %c0_8 = arith.constant 0 : index
    %11 = vector.load %arg6[%c0_6, %c0_7, %c0_8] : memref<1x8x256xf32, #tpu.memory_space<vmem>>, vector<1x8x256xf32>
    %12 = vector.shape_cast %11 : vector<1x8x256xf32> to vector<8x256xf32>
    %13 = vector.shape_cast %10 : vector<8x256xf32> to vector<1x8x256xf32>
    tpu.vector_store %arg6[%c0_6, %c0_7, %c0_8], %13 {strides = array<i32>} : memref<1x8x256xf32, #tpu.memory_space<vmem>>, vector<1x8x256xf32>,
    %14 = vector.shape_cast %0 : vector<8x1xf32> to vector<8x1x1x1x1xf32>
    %15 = vector.shape_cast %1 : vector<8x1xf32> to vector<8x1x1x1x1xf32>
    %c0_9 = arith.constant 0 : index
    %c0_10 = arith.constant 0 : index
    %c0_11 = arith.constant 0 : index
    %c0_12 = arith.constant 0 : index
    %c0_13 = arith.constant 0 : index
    %c0_14 = arith.constant 0 : index
    %16 = vector.load %arg3[%c0_9, %c0_10, %c0_11, %c0_12, %c0_13, %c0_14] : memref<1x8x8x2x8x2xbf16, #tpu.memory_space<vmem>>, vector<1x8x8x2x8x2xbf16>
    %17 = vector.shape_cast %16 : vector<1x8x8x2x8x2xbf16> to vector<8x8x2x8x2xbf16>
    %18 = arith.extf %17 : vector<8x8x2x8x2xbf16> to vector<8x8x2x8x2xf32>
    %19 = vector.broadcast %14 : vector<8x1x1x1x1xf32> to vector<8x8x2x8x2xf32>
    %20 = arith.mulf %18, %19 : vector<8x8x2x8x2xf32>
    %21 = vector.broadcast %15 : vector<8x1x1x1x1xf32> to vector<8x8x2x8x2xf32>
    %22 = arith.addf %20, %21 : vector<8x8x2x8x2xf32>
    %cst_15 = arith.constant 0.000000e+00 : f32
    %23 = vector.broadcast %cst_15 : f32 to vector<8x8x2x8x2xf32>
    %24 = arith.maximumf %22, %23 : vector<8x8x2x8x2xf32>
    %cst_16 = arith.constant dense<0xFF800000> : vector<8x8x8x2xf32>
    %25 = vector.multi_reduction <maximumf>, %24, %cst_16 [2] : vector<8x8x2x8x2xf32> to vector<8x8x8x2xf32>
    %cst_17 = arith.constant dense<0xFF800000> : vector<8x8x8xf32>
    %26 = vector.multi_reduction <maximumf>, %25, %cst_17 [3] : vector<8x8x8x2xf32> to vector<8x8x8xf32>
    %c0_18 = arith.constant 0 : index
    %c0_19 = arith.constant 0 : index
    %c0_20 = arith.constant 0 : index
    %c0_21 = arith.constant 0 : index
    %27 = vector.load %arg7[%c0_18, %c0_19, %c0_20, %c0_21] : memref<1x8x8x8xf32, #tpu.memory_space<vmem>>, vector<1x8x8x8xf32>
    %28 = vector.shape_cast %27 : vector<1x8x8x8xf32> to vector<8x8x8xf32>
    %29 = vector.shape_cast %26 : vector<8x8x8xf32> to vector<1x8x8x8xf32>
    tpu.vector_store %arg7[%c0_18, %c0_19, %c0_20, %c0_21], %29 {strides = array<i32>} : memref<1x8x8x8xf32, #tpu.memory_space<vmem>>, vector<1x8x8x8xf32>,
    return
  }
  func.func @transform_0(%arg0: i32, %arg1: i32) -> (i32, i32, i32) {
    %c0_i32 = arith.constant 0 : i32
    %c0_i32_0 = arith.constant 0 : i32
    return %arg0, %c0_i32, %arg1 : i32, i32, i32
  }
  func.func @transform_1(%arg0: i32, %arg1: i32) -> (i32, i32, i32, i32, i32, i32) {
    %c0_i32 = arith.constant 0 : i32
    %c0_i32_0 = arith.constant 0 : i32
    %c0_i32_1 = arith.constant 0 : i32
    %c0_i32_2 = arith.constant 0 : i32
    %c0_i32_3 = arith.constant 0 : i32
    return %arg0, %c0_i32, %arg1, %c0_i32_0, %c0_i32_1, %c0_i32_2 : i32, i32, i32, i32, i32, i32
  }
  func.func @transform_2(%arg0: i32, %arg1: i32) -> (i32, i32) {
    %c0_i32 = arith.constant 0 : i32
    %c0_i32_0 = arith.constant 0 : i32
    %c0_i32_1 = arith.constant 0 : i32
    return %c0_i32, %c0_i32_0 : i32, i32
  }
  func.func @transform_3(%arg0: i32, %arg1: i32) -> (i32, i32) {
    %c0_i32 = arith.constant 0 : i32
    %c0_i32_0 = arith.constant 0 : i32
    %c0_i32_1 = arith.constant 0 : i32
    return %c0_i32, %c0_i32_0 : i32, i32
  }
  func.func @transform_4(%arg0: i32, %arg1: i32) -> (i32, i32, i32) {
    %c0_i32 = arith.constant 0 : i32
    %c0_i32_0 = arith.constant 0 : i32
    return %arg0, %c0_i32, %arg1 : i32, i32, i32
  }
  func.func @transform_5(%arg0: i32, %arg1: i32) -> (i32, i32, i32, i32) {
    %c0_i32 = arith.constant 0 : i32
    %c0_i32_0 = arith.constant 0 : i32
    %c0_i32_1 = arith.constant 0 : i32
    return %arg0, %c0_i32, %arg1, %c0_i32_0 : i32, i32, i32, i32
  }
}

</mosaic_0001>

<bundles_post_ra>
// kernel: encoder_forward.4
= control target key start
LH: loop header
LB: loop body
LE: loop exit
PB: predicated region body
PF: predicated region fallthrough
CT: control target
= control target key end

     0   :  { %s839_s21 = smov 0   ;;  %s896_s0 = inlined_call_operand.vmem [shape: bf16[2,8,256], index: 0, kind: input, shape index: {}]   ;;  %s897_s1 = inlined_call_operand.vmem [shape: f32[8,1], index: 1, kind: input, shape index: {}]   ;;  %s898_s2 = inlined_call_operand.vmem [shape: f32[8,1], index: 2, kind: input, shape index: {}]   ;;  %s899_s3 = inlined_call_operand.vmem [shape: bf16[3,8,24], index: 3, kind: input, shape index: {}]   ;;  %s900_s4 = inlined_call_operand.vmem [shape: bf16[2,8,256], index: 4, kind: output, shape index: {0}]   ;;  %s901_s5 = inlined_call_operand.vmem [shape: f32[2,8,1], index: 5, kind: output, shape index: {1}]   ;;  %s902_s6 = inlined_call_operand.vmem [shape: f32[2,8,1], index: 6, kind: output, shape index: {2}]  }
   0x1 LB: > { %s748_s22 = sadd.s32 4294967295, %s795_s21   ;;  %p752_p0 = scmp.ge.s32.totalorder %s795_s21, 1  ;;  %s795_s21 = sphi %s839_s21, %s17_s21  }
   0x2   : > { %p217_p1 = scmp.lt.s32.totalorder %s795_s21, 3 }
   0x4   : > { %p218_p2 = pnand %p752_p0, %p217_p1 }
   0x5   : > { %p255_p3 = scmp.lt.s32.totalorder (!%p218_p2), %s748_s22, 1  ;;  %s799_s7 = smov (!%p218_p2), 15  }
   0x6   : > { %221 = sbr.rel (%p218_p2) target bundleno = 755 (0x2f3), region = 36  ;;  %s800_s8 = smov (!%p218_p2), 17  }
   0x7   : > { %s801_s9 = smov (!%p218_p2), 16   ;;  %s802_s10 = smov (!%p218_p2), 112  }
   0x8   : > { %s803_s13 = smov (!%p218_p2), 96  }
   0xb   : > { %v277_v0 = vld [vmem:[%s897_s1] sm:$0xff]  ;;  %v797_v1 = vmov 0   ;;  %v798_v3 = vmov 0.0   ;;  %s904_s22 = smov (!%p255_p3, %s748_s22), 1  ;;  %v295_v4 = vlaneseq  ;;  %vm324_vm0 = vcmask 261120  }
   0xc   : > { %788 = vset.pattern.permute.xlu0 %v797_v1  ;;  %479 = vmatprep.mubr.bf16.mxu0 %v797_v1  ;;  %v285_v2 = vld [vmem:[%s898_s2] sm:$0xff]  ;;  %329 = vst [vmem:[#allocation2 + $0x30] sm:$0xff] %v798_v3  ;;  %322 = vst [vmem:[#allocation2] sm:$0xff] %v798_v3  ;;  %s856_s27 = sshll.u32 %s904_s22, 3  ;;  %vm389_vm5 = vcmask 1047672   ;;  %vm351_vm6 = vcmask 1047688  }
   0xd   : > { %280 = vperm.xlu0 %788, %v277_v0   ;;  %529 = vmatprep.mubr.bf16.mxu1 %v797_v1  ;;  %326 = vst [vmem:[#allocation2 + $0x18] sm:$0xff] %v798_v3  ;;  %s259_s30 = scalar_lea.vmem %s896_s0, %s856_s27  ;;  %v296_v6 = vand.u32 127, %v295_v4  ;;  %331 = vst.msk [vmem:[#allocation2 + $0x40] sm:$0xff] %vm324_vm0, %v798_v3  ;;  %vm384_vm7 = vcmask 121856   ;;  %vm366_vm8 = vcmask 1047680   ;;  %vm440_vm9 = vcmask 1043456   ;;  %s264_s20 = scalar_lea.vmem %s900_s4, %s856_s27 }
   0xe   : > { %v274_v5 = vld [vmem:[%s259_s30] sm:$0xff]  ;;  %325 = vst.msk [vmem:[#allocation2 + $0x10] sm:$0xff] %vm324_vm0, %v798_v3  ;;  %328 = vst.msk [vmem:[#allocation2 + $0x28] sm:$0xff] %vm324_vm0, %v798_v3  ;;  %vm346_vm10 = vcmask 138240   ;;  %vm361_vm11 = vcmask 130048   ;;  %vm436_vm12 = vcmask 195584   ;;  %s268_s24 = scalar_lea.vmem %s901_s5, %s856_s27  ;;  %s272_s28 = scalar_lea.vmem %s902_s6, %s856_s27 }
   0xf   : > { %v275_v7 = vunpack.c.l.bf16 %v274_v5  ;;  %v276_v8 = vunpack.c.h.bf16 %v274_v5  ;;  %v302_v10 = vand.u32 15, %v296_v6  ;;  %v297_v11 = vadd.s32 128, %v296_v6  ;;  %v403_v43 = vld [vmem:[%s899_s3] sm:$0xf]  ;;  %v759_v58 = vld [vmem:[%s899_s3 + $0x4] sm:$0xf] }
  0x10   : > { %vm429_vm13 = vcmask 916480   ;;  %vm552_vm14 = vcmask 785408   ;;  %vm623_vm15 = vcmask 7168  }
  0x11   : > { %288 = vperm.xlu0 %788, %v285_v2   ;;  %vm370_vm1 = vcmp.eq.s32.totalorder %v302_v10, 0  ;;  %vm332_vm2 = vcmp.eq.s32.totalorder %v302_v10, 15  ;;  %v309_v17 = vand.u32 15, %v297_v11 }
  0x13   : > { %vm371_vm3 = vcmp.eq.s32.totalorder %v309_v17, 0  ;;  %vm333_vm4 = vcmp.eq.s32.totalorder %v309_v17, 15 }
  0x88   : > { %v281_v9 = vpop.permute.xlu0 %280 }
  0x89   : > { %v283_v12 = vmul.f32 %v281_v9, %v275_v7  ;;  %v284_v13 = vmul.f32 %v281_v9, %v276_v8  ;;  %v764_v7 = vld [vmem:[%s899_s3 + $0x8] sm:$0xf] }
  0x8c   : > { %v289_v14 = vpop.permute.xlu0 %288 }
  0x8d   : > { %v291_v15 = vadd.f32 %v289_v14, %v283_v12  ;;  %v292_v16 = vadd.f32 %v289_v14, %v284_v13 }
  0x8f   : > { %v293_v18 = vmax.f32 %v291_v15, 0.0  ;;  %v294_v19 = vmax.f32 %v292_v16, 0.0 }
  0x91   : > { %v376_v20 = vsel %vm370_vm1, 0.0, %v293_v18  ;;  %v338_v21 = vsel %vm332_vm2, 0.0, %v293_v18  ;;  %v377_v22 = vsel %vm371_vm3, 0.0, %v294_v19  ;;  %v339_v23 = vsel %vm333_vm4, 0.0, %v294_v19 }
  0x92   : > { %380 = vrot.lane.b32.xlu1 %v376_v20, %s799_s7  ;;  %342 = vrot.lane.b32.xlu0 %v338_v21, %s800_s8 }
  0x96   : > { %382 = vrot.lane.b32.xlu1 %v377_v22, %s799_s7  ;;  %357 = vrot.lane.b32.xlu0 %v293_v18, %s801_s9 }
  0x9a   : > { %344 = vrot.lane.b32.xlu1 %v339_v23, %s800_s8 }
  0x9e   : > { %359 = vrot.lane.b32.xlu1 %v294_v19, %s801_s9 }
 0x104   : > { %v381_v24 = vpop.permute.xlu1 %380  ;;  %v343_v25 = vpop.permute.xlu0 %342 }
 0x105   : > { %390 = vst.msk [vmem:[#allocation2 + $0x30] sm:$0xff] %vm389_vm5, %v381_v24 }
 0x106   : > { %352 = vst.msk [vmem:[#allocation2] sm:$0xff] %vm351_vm6, %v343_v25 }
 0x108   : > { %v383_v26 = vpop.permute.xlu1 %382  ;;  %v358_v27 = vpop.permute.xlu0 %357 }
 0x109   : > { %v385_v28 = vsel %vm384_vm7, %v381_v24, %v383_v26  ;;  %392 = vst.msk [vmem:[#allocation2 + $0x40] sm:$0xff] %vm384_vm7, %v383_v26 }
 0x10a   : > { %367 = vst.msk [vmem:[#allocation2 + $0x18] sm:$0xff] %vm366_vm8, %v358_v27  ;;  %v402_v29 = vpack.c.bf16 %v385_v28, %v385_v28 }
 0x10c   : > { %v345_v30 = vpop.permute.xlu1 %344  ;;  %v397_v31 = vld [vmem:[#allocation2 + $0x30] sm:$0xff]  ;;  %762 = vmatprep.subr.msk.bf16.mxu1 %vm440_vm9, %v402_v29 }
 0x10d   : > { %v347_v32 = vsel %vm346_vm10, %v343_v25, %v345_v30  ;;  %354 = vst.msk [vmem:[#allocation2 + $0x10] sm:$0xff] %vm346_vm10, %v345_v30  ;;  %v401_v33 = vpack.c.bf16 %v397_v31, %v397_v31  ;;  %v393_v37 = vld [vmem:[#allocation2] sm:$0xff] }
 0x10f   : > { %423 = vrot.lane.b32.xlu0 %v401_v33, %s802_s10  ;;  %v492_v34 = vsel %vm440_vm9, %v401_v33, 0 }
 0x110   : > { %v360_v35 = vpop.permute.xlu1 %359  ;;  %v406_v36 = vld [vmem:[#allocation2 + $0x40] sm:$0xff]  ;;  %510 = vmatpush1.bf16.msra.mxu1 %v492_v34 }
 0x111   : > { %v395_v38 = vld [vmem:[#allocation2 + $0x18] sm:$0xff]  ;;  %v362_v39 = vsel %vm361_vm11, %v358_v27, %v360_v35  ;;  %369 = vst.msk [vmem:[#allocation2 + $0x28] sm:$0xff] %vm361_vm11, %v360_v35  ;;  %v408_v40 = vpack.c.bf16 %v406_v36, %v406_v36 }
 0x112   : > { %v399_v41 = vpack.c.bf16 %v395_v38, %v393_v37  ;;  %v400_v42 = vpack.c.bf16 %v362_v39, %v347_v32 }
 0x113   : > { %427 = vrot.lane.b32.xlu0 %v408_v40, %s802_s10 }
 0x114   : > { %417 = vrot.lane.b32.xlu1 %v399_v41, %s802_s10  ;;  %511 = vmatprep.subr.bf16.mxu1 %v400_v42  ;;  %v404_v44 = vld [vmem:[#allocation2 + $0x10] sm:$0xff] }
 0x115   : > { %512 = vmatpush1.bf16.msra.mxu1 %v399_v41 }
 0x118   : > { %425 = vrot.lane.b32.xlu1 %v402_v29, %s802_s10  ;;  %v405_v45 = vld [vmem:[#allocation2 + $0x28] sm:$0xff]  ;;  %763 = vmatmul.mubr.msk.bf16.vlgmr.msra.gmra.mxu1 %vm436_vm12, %v403_v43 }
 0x119   : > { %v407_v46 = vpack.c.bf16 %v405_v45, %v404_v44 }
 0x11b   : > { %421 = vrot.lane.b32.xlu0 %v407_v46, %s802_s10 }
 0x11c   : > { %419 = vrot.lane.b32.xlu1 %v400_v42, %s802_s10 }
 0x11f   : > { %546 = vrot.lane.b32.xlu0 %v401_v33, %s803_s13 }
 0x120   : > { %548 = vrot.lane.b32.xlu1 %v402_v29, %s803_s13 }
 0x123   : > { %550 = vrot.lane.b32.xlu0 %v408_v40, %s803_s13 }
 0x124   : > { %542 = vrot.lane.b32.xlu1 %v400_v42, %s803_s13 }
 0x127   : > { %544 = vrot.lane.b32.xlu0 %v407_v46, %s803_s13 }
 0x128   : > { %540 = vrot.lane.b32.xlu1 %v399_v41, %s803_s13 }
 0x181   : > { %v424_v47 = vpop.permute.xlu0 %423 }
 0x185   : > { %v428_v49 = vpop.permute.xlu0 %427 }
 0x186   : > { %v418_v48 = vpop.permute.xlu1 %417 }
 0x18a   : > { %v426_v50 = vpop.permute.xlu1 %425 }
 0x18b   : > { %v433_v51 = vsel %vm429_vm13, %v426_v50, %v428_v49  ;;  %v432_v52 = vsel %vm429_vm13, %v424_v47, %v426_v50 }
 0x18c   : > { %760 = vmatprep.subr.msk.bf16.mxu0 %vm440_vm9, %v433_v51  ;;  %v442_v53 = vsel %vm440_vm9, %v432_v52, 0 }
 0x18d   : > { %460 = vmatpush1.bf16.msra.mxu0 %v442_v53  ;;  %v422_v54 = vpop.permute.xlu0 %421 }
 0x18e   : > { %v420_v55 = vpop.permute.xlu1 %419 }
 0x18f   : > { %v431_v56 = vsel %vm429_vm13, %v420_v55, %v422_v54  ;;  %v430_v57 = vsel %vm429_vm13, %v418_v48, %v420_v55 }
 0x190   : > { %461 = vmatprep.subr.bf16.mxu0 %v431_v56 }
 0x191   : > { %462 = vmatpush1.bf16.msra.mxu0 %v430_v57  ;;  %v547_v59 = vpop.permute.xlu0 %546 }
 0x192   : > { %v549_v60 = vpop.permute.xlu1 %548 }
 0x193   : > { %v555_v61 = vsel %vm552_vm14, %v547_v59, %v549_v60 }
 0x194   : > { %761 = vmatmul.mubr.msk.bf16.vlgmr.msra.gmra.mxu0 %vm436_vm12, %v759_v58  ;;  %v563_v2 = vsel %vm440_vm9, %v555_v61, 0 }
 0x195   : > { %600 = vmatprep.mubr.bf16.mxu0 %v797_v1  ;;  %v551_v62 = vpop.permute.xlu0 %550 }
 0x196   : > { %v543_v63 = vpop.permute.xlu1 %542  ;;  %v556_v0 = vsel %vm552_vm14, %v549_v60, %v551_v62 }
 0x197   : > { %765 = vmatprep.subr.msk.bf16.mxu0 %vm440_vm9, %v556_v0 }
 0x198   : > { %581 = vmatpush1.bf16.msra.mxu0 %v563_v2 }
 0x199   : > { %v545_v3 = vpop.permute.xlu0 %544 }
 0x19a   : > { %v541_v4 = vpop.permute.xlu1 %540  ;;  %v554_v6 = vsel %vm552_vm14, %v543_v63, %v545_v3 }
 0x19b   : > { %v553_v5 = vsel %vm552_vm14, %v541_v4, %v543_v63  ;;  %582 = vmatprep.subr.bf16.mxu0 %v554_v6 }
 0x19c   : > { %583 = vmatpush1.bf16.msra.mxu0 %v553_v5 }
 0x19f   : > { %766 = vmatmul.mubr.msk.bf16.vlgmr.msra.gmra.mxu0 %vm436_vm12, %v764_v7 }
 0x1d8   : > { %v531_v1 = vpop.f32.mrf.mxu1 }
 0x1da   : > { %v533_v8 = vpop.f32.mrf.mxu1 }
 0x1dc   : > { %v535_v9 = vpop.f32.mrf.mxu1 }
 0x1de   : > { %v536_v10 = vpop.f32.mrf.mxu1 }
 0x254   : > { %v481_v11 = vpop.f32.mrf.mxu0 }
 0x255   : > { %v532_v15 = vadd.f32 %v531_v1, %v481_v11 }
 0x256   : > { %v483_v12 = vpop.f32.mrf.mxu0 }
 0x257   : > { %v534_v17 = vadd.f32 %v533_v8, %v483_v12 }
 0x258   : > { %v485_v13 = vpop.f32.mrf.mxu0 }
 0x25a   : > { %v486_v14 = vpop.f32.mrf.mxu0 }
 0x25f   : > { %v602_v16 = vpop.f32.mrf.mxu0 }
 0x260   : > { %v609_v18 = vadd.f32 %v602_v16, %v532_v15 }
 0x261   : > { %v604_v19 = vpop.f32.mrf.mxu0 }
 0x262   : > { %v610_v20 = vadd.f32 %v604_v19, %v534_v17  ;;  %v625_v24 = vmul.f32 %v609_v18, %v609_v18 }
 0x263   : > { %v606_v21 = vpop.f32.mrf.mxu0 }
 0x264   : > { %v772_v22 = vpack.c.bf16 %v610_v20, %v609_v18  ;;  %v620_v23 = vadd.f32 %v610_v20, %v609_v18  ;;  %v626_v25 = vmul.f32 %v610_v20, %v610_v20 }
 0x265   : > { %v607_v26 = vpop.f32.mrf.mxu0 }
 0x266   : > { %619 = vst [vmem:[%s264_s20] sm:$0xff] %v772_v22  ;;  %621 = vadd.xlane.f32.xlu0 %v620_v23  ;;  %v627_v27 = vadd.f32 %v626_v25, %v625_v24 }
 0x268   : > { %628 = vadd.xlane.f32.xlu1 %v627_v27 }
 0x2ef   : > { %v622_v28 = vpop.xlane.xlu0 %621 }
 0x2f0   : > { %624 = vst.msk [vmem:[%s268_s24] sm:$0xff] %vm623_vm15, %v622_v28 }
 0x2f1   : > { %v629_v29 = vpop.xlane.xlu1 %628 }
 0x2f2   : > { %630 = vst.msk [vmem:[%s272_s28] sm:$0xff] %vm623_vm15, %v629_v29 }
 0x2f3 PF: > { %s17_s21 = sadd.s32 1, %s795_s21  }
 0x2f4   : > { %p14_p4 = scmp.ge.s32.totalorder %s17_s21, 4  }
 0x2f6   :  { %16 = sbr.rel (!%p14_p4) target bundleno = 1 (0x1), region = 92 }

// kernel: encoder_forward.3
= control target key start
LH: loop header
LB: loop body
LE: loop exit
PB: predicated region body
PF: predicated region fallthrough
CT: control target
= control target key end

     0   :  { %s744_s15 = smov 0   ;;  %s789_s0 = inlined_call_operand.vmem [shape: bf16[2,4,256], index: 0, kind: input, shape index: {}]   ;;  %s790_s1 = inlined_call_operand.vmem [shape: bf16[3,8,12], index: 1, kind: input, shape index: {}]   ;;  %s791_s2 = inlined_call_operand.vmem [shape: bf16[2,8,256], index: 2, kind: output, shape index: {0}]   ;;  %s792_s3 = inlined_call_operand.vmem [shape: f32[2,8,1], index: 3, kind: output, shape index: {1}]   ;;  %s793_s4 = inlined_call_operand.vmem [shape: f32[2,8,1], index: 4, kind: output, shape index: {2}]  }
   0x1 LB: > { %s649_s16 = sadd.s32 4294967295, %s710_s15   ;;  %p653_p0 = scmp.ge.s32.totalorder %s710_s15, 1  ;;  %s710_s15 = sphi %s744_s15, %s15_s15  }
   0x2   : > { %p167_p1 = scmp.lt.s32.totalorder %s710_s15, 3 }
   0x4   : > { %p168_p2 = pnand %p653_p0, %p167_p1 }
   0x5   : > { %p201_p3 = scmp.lt.s32.totalorder (!%p168_p2), %s649_s16, 1  ;;  %s713_s21 = smov (!%p168_p2), 17  }
   0x6   : > { %171 = sbr.rel (%p168_p2) target bundleno = 627 (0x273), region = 28  ;;  %s714_s22 = smov (!%p168_p2), 15  }
   0x7   : > { %s715_s23 = smov (!%p168_p2), 16   ;;  %s717_s24 = smov (!%p168_p2), 112  }
   0x8   : > { %s718_s27 = smov (!%p168_p2), 96  }
   0xb   : > { %v222_v0 = vlaneseq  ;;  %vm251_vm0 = vcmask 261120   ;;  %v712_v1 = vmov 0.0   ;;  %s795_s16 = smov (!%p201_p3, %s649_s16), 1  ;;  %vm255_vm1 = vcmask 257024   ;;  %v329_v40 = vld [vmem:[%s790_s1] sm:$0xf] }
   0xc   : > { %249 = vst [vmem:[#allocation2] sm:$0xff] %v712_v1  ;;  %250 = vst [vmem:[#allocation2 + $0x8] sm:$0xff] %v712_v1  ;;  %s671_s17 = sshll.u32 %s795_s16, 2  ;;  %vm274_vm6 = vcmask 138240   ;;  %vm279_vm7 = vcmask 1043592   ;;  %vm282_vm8 = vcmask 134144  }
   0xd   : > { %252 = vst.msk [vmem:[#allocation2 + $0x10] sm:$0xff] %vm251_vm0, %v712_v1  ;;  %253 = vst [vmem:[#allocation2 + $0x18] sm:$0xf] %v712_v1  ;;  %v223_v2 = vand.u32 127, %v222_v0  ;;  %s205_s20 = scalar_lea.vmem %s789_s0, %s671_s17  ;;  %vm313_vm9 = vcmask 121856   ;;  %vm318_vm10 = vcmask 1043576  }
   0xe   : > { %254 = vst [vmem:[#allocation2 + $0x20] sm:$0xf] %v712_v1  ;;  %256 = vst.msk [vmem:[#allocation2 + $0x28] sm:$0xf] %vm255_vm1, %v712_v1  ;;  %v220_v5 = vld [vmem:[%s205_s20] sm:$0xf] }
   0xf   : > { %v224_v3 = vadd.s32 128, %v223_v2  ;;  %v229_v4 = vand.u32 15, %v223_v2  ;;  %v221_v7 = vunpack.c.l.bf16 %v220_v5  ;;  %vm321_vm11 = vcmask 117760   ;;  %v660_v48 = vld [vmem:[%s790_s1 + $0x4] sm:$0xf]  ;;  %s672_s6 = sshll.u32 %s795_s16, 3 }
  0x10   : > { %vm289_vm12 = vcmask 130048   ;;  %vm294_vm13 = vcmask 1047684   ;;  %vm297_vm14 = vcmask 130052   ;;  %v716_v30 = vmov 0   ;;  %v665_v54 = vld [vmem:[%s790_s1 + $0x8] sm:$0xf]  ;;  %s210_s9 = scalar_lea.vmem %s791_s2, %s672_s6  ;;  %s214_s12 = scalar_lea.vmem %s792_s3, %s672_s6 }
  0x11   : > { %v236_v6 = vand.u32 15, %v224_v3  ;;  %vm257_vm2 = vcmp.eq.s32.totalorder %v229_v4, 15  ;;  %vm299_vm3 = vcmp.eq.s32.totalorder %v229_v4, 0  ;;  %v264_v8 = vcombine.high %v221_v7, %v221_v7  ;;  %390 = vmatprep.mubr.bf16.mxu0 %v716_v30  ;;  %440 = vmatprep.mubr.bf16.mxu1 %v716_v30  ;;  %s218_s16 = scalar_lea.vmem %s793_s4, %s672_s6 }
  0x12   : > { %v266_v9 = vsel %vm257_vm2, 0.0, %v221_v7  ;;  %v305_v10 = vsel %vm299_vm3, 0.0, %v221_v7  ;;  %v284_v11 = vcombine.low %v221_v7, %v221_v7  ;;  %vm351_vm15 = vcmask 1045504  }
  0x13   : > { %vm258_vm4 = vcmp.eq.s32.totalorder %v236_v6, 15  ;;  %vm300_vm5 = vcmp.eq.s32.totalorder %v236_v6, 0  ;;  %vm347_vm0 = vcmask 97280   ;;  %vm344_vm1 = vcmask 916480  }
  0x14   : > { %v267_v12 = vsel %vm258_vm4, 0.0, %v264_v8  ;;  %v306_v13 = vsel %vm300_vm5, 0.0, %v264_v8  ;;  %v694_v16 = vpack.i.bf16 %v221_v7, %v284_v11  ;;  %vm457_vm2 = vcmask 785408  }
  0x15   : > { %v689_v14 = vpack.i.bf16 %v267_v12, %v266_v9  ;;  %v699_v15 = vpack.i.bf16 %v306_v13, %v305_v10  ;;  %vm524_vm3 = vcmask 7168  }
  0x17   : > { %690 = vrot.lane.b32.xlu0 %v689_v14, %s713_s21  ;;  %700 = vrot.lane.b32.xlu1 %v699_v15, %s714_s22 }
  0x1b   : > { %695 = vrot.lane.b32.xlu0 %v694_v16, %s715_s23 }
  0x89   : > { %v691_v17 = vpop.permute.xlu0 %690  ;;  %v701_v18 = vpop.permute.xlu1 %700 }
  0x8a   : > { %v693_v19 = vunpack.i.h.bf16 %v691_v17  ;;  %v692_v20 = vunpack.i.l.bf16 %v691_v17  ;;  %v703_v21 = vunpack.i.h.bf16 %v701_v18  ;;  %v702_v22 = vunpack.i.l.bf16 %v701_v18 }
  0x8c   : > { %283 = vst.msk [vmem:[#allocation2 + $0x10] sm:$0xf] %vm282_vm8, %v693_v19  ;;  %v275_v23 = vsel %vm274_vm6, %v692_v20, %v693_v19  ;;  %v314_v24 = vsel %vm313_vm9, %v702_v22, %v703_v21 }
  0x8d   : > { %280 = vst.msk [vmem:[#allocation2] sm:$0xf] %vm279_vm7, %v692_v20  ;;  %281 = vst [vmem:[#allocation2 + $0x8] sm:$0xf] %v275_v23  ;;  %v696_v25 = vpop.permute.xlu0 %695 }
  0x8e   : > { %322 = vst.msk [vmem:[#allocation2 + $0x28] sm:$0xf] %vm321_vm11, %v703_v21  ;;  %320 = vst [vmem:[#allocation2 + $0x20] sm:$0xf] %v314_v24  ;;  %v698_v26 = vunpack.i.h.bf16 %v696_v25  ;;  %v697_v27 = vunpack.i.l.bf16 %v696_v25 }
  0x8f   : > { %319 = vst.msk [vmem:[#allocation2 + $0x18] sm:$0xf] %vm318_vm10, %v702_v22 }
  0x90   : > { %298 = vst.msk [vmem:[#allocation2 + $0x10] sm:$0xf0] %vm297_vm14, %v698_v26  ;;  %v290_v28 = vsel %vm289_vm12, %v697_v27, %v698_v26 }
  0x91   : > { %295 = vst.msk [vmem:[#allocation2] sm:$0xf0] %vm294_vm13, %v697_v27  ;;  %296 = vst [vmem:[#allocation2 + $0x8] sm:$0xf0] %v290_v28 }
  0x95   : > { %v326_v31 = vld [vmem:[#allocation2 + $0x20] sm:$0xf]  ;;  %v331_v37 = vld [vmem:[#allocation2 + $0x28] sm:$0xf] }
  0x96   : > { %v325_v29 = vld [vmem:[#allocation2 + $0x18] sm:$0xf] }
  0x97   : > { %v330_v36 = vld [vmem:[#allocation2 + $0x10] sm:$0xff] }
  0x98   : > { %v323_v32 = vld [vmem:[#allocation2] sm:$0xff]  ;;  %v324_v34 = vld [vmem:[#allocation2 + $0x8] sm:$0xff]  ;;  %v332_v39 = vpack.c.bf16 %v331_v37, %v330_v36 }
  0x99   : > { %v327_v33 = vpack.c.bf16 %v325_v29, %v323_v32  ;;  %v328_v35 = vpack.c.bf16 %v326_v31, %v324_v34 }
  0x9b   : > { %338 = vrot.lane.b32.xlu1 %v327_v33, %s717_s24  ;;  %v403_v38 = vsel %vm351_vm15, %v327_v33, 0  ;;  %340 = vrot.lane.b32.xlu0 %v328_v35, %s717_s24 }
  0x9c   : > { %663 = vmatprep.subr.msk.bf16.mxu1 %vm351_vm15, %v328_v35 }
  0x9d   : > { %423 = vmatpush1.bf16.msra.mxu1 %v403_v38 }
  0x9f   : > { %342 = vrot.lane.b32.xlu1 %v332_v39, %s717_s24  ;;  %451 = vrot.lane.b32.xlu0 %v327_v33, %s718_s27 }
  0xa0   : > { %664 = vmatmul.mubr.msk.bf16.vlgmr.msra.gmra.mxu1 %vm347_vm0, %v329_v40 }
  0xa3   : > { %453 = vrot.lane.b32.xlu1 %v328_v35, %s718_s27  ;;  %455 = vrot.lane.b32.xlu0 %v332_v39, %s718_s27 }
 0x10d   : > { %v339_v41 = vpop.permute.xlu1 %338  ;;  %v341_v42 = vpop.permute.xlu0 %340 }
 0x10e   : > { %v345_v43 = vsel %vm344_vm1, %v339_v41, %v341_v42 }
 0x10f   : > { %v353_v47 = vsel %vm351_vm15, %v345_v43, 0 }
 0x111   : > { %v343_v44 = vpop.permute.xlu1 %342  ;;  %v452_v45 = vpop.permute.xlu0 %451 }
 0x112   : > { %v346_v46 = vsel %vm344_vm1, %v341_v42, %v343_v44 }
 0x113   : > { %661 = vmatprep.subr.msk.bf16.mxu0 %vm351_vm15, %v346_v46 }
 0x114   : > { %373 = vmatpush1.bf16.msra.mxu0 %v353_v47 }
 0x115   : > { %v454_v49 = vpop.permute.xlu1 %453  ;;  %v456_v51 = vpop.permute.xlu0 %455 }
 0x116   : > { %v458_v50 = vsel %vm457_vm2, %v452_v45, %v454_v49  ;;  %v459_v53 = vsel %vm457_vm2, %v454_v49, %v456_v51 }
 0x117   : > { %v464_v52 = vsel %vm351_vm15, %v458_v50, 0  ;;  %662 = vmatmul.mubr.msk.bf16.vlgmr.msra.gmra.mxu0 %vm347_vm0, %v660_v48  ;;  %666 = vmatprep.subr.msk.bf16.mxu0 %vm351_vm15, %v459_v53 }
 0x118   : > { %501 = vmatprep.mubr.bf16.mxu0 %v716_v30  ;;  %484 = vmatpush1.bf16.msra.mxu0 %v464_v52 }
 0x11f   : > { %667 = vmatmul.mubr.msk.bf16.vlgmr.msra.gmra.mxu0 %vm347_vm0, %v665_v54 }
 0x160   : > { %v442_v55 = vpop.f32.mrf.mxu1 }
 0x162   : > { %v444_v56 = vpop.f32.mrf.mxu1 }
 0x164   : > { %v446_v57 = vpop.f32.mrf.mxu1 }
 0x166   : > { %v447_v58 = vpop.f32.mrf.mxu1 }
 0x1d7   : > { %v392_v59 = vpop.f32.mrf.mxu0 }
 0x1d8   : > { %v443_v63 = vadd.f32 %v442_v55, %v392_v59 }
 0x1d9   : > { %v394_v60 = vpop.f32.mrf.mxu0 }
 0x1da   : > { %v445_v1 = vadd.f32 %v444_v56, %v394_v60 }
 0x1db   : > { %v396_v61 = vpop.f32.mrf.mxu0 }
 0x1dd   : > { %v397_v62 = vpop.f32.mrf.mxu0 }
 0x1df   : > { %v503_v0 = vpop.f32.mrf.mxu0 }
 0x1e0   : > { %v510_v2 = vadd.f32 %v503_v0, %v443_v63 }
 0x1e1   : > { %v505_v3 = vpop.f32.mrf.mxu0 }
 0x1e2   : > { %v511_v4 = vadd.f32 %v505_v3, %v445_v1  ;;  %v526_v8 = vmul.f32 %v510_v2, %v510_v2 }
 0x1e3   : > { %v507_v5 = vpop.f32.mrf.mxu0 }
 0x1e4   : > { %v673_v6 = vpack.c.bf16 %v511_v4, %v510_v2  ;;  %v521_v7 = vadd.f32 %v511_v4, %v510_v2  ;;  %v527_v9 = vmul.f32 %v511_v4, %v511_v4 }
 0x1e5   : > { %v508_v10 = vpop.f32.mrf.mxu0 }
 0x1e6   : > { %522 = vadd.xlane.f32.xlu1 %v521_v7  ;;  %v528_v11 = vadd.f32 %v527_v9, %v526_v8  ;;  %520 = vst [vmem:[%s210_s9] sm:$0xff] %v673_v6 }
 0x1e8   : > { %529 = vadd.xlane.f32.xlu0 %v528_v11 }
 0x26f   : > { %v523_v12 = vpop.xlane.xlu1 %522 }
 0x270   : > { %525 = vst.msk [vmem:[%s214_s12] sm:$0xff] %vm524_vm3, %v523_v12 }
 0x271   : > { %v530_v13 = vpop.xlane.xlu0 %529 }
 0x272   : > { %531 = vst.msk [vmem:[%s218_s16] sm:$0xff] %vm524_vm3, %v530_v13 }
 0x273 PF: > { %s15_s15 = sadd.s32 1, %s710_s15  }
 0x274   : > { %p12_p4 = scmp.ge.s32.totalorder %s15_s15, 4  }
 0x276   :  { %14 = sbr.rel (!%p12_p4) target bundleno = 1 (0x1), region = 84 }

// kernel: encoder_forward.5
= control target key start
LH: loop header
LB: loop body
LE: loop exit
PB: predicated region body
PF: predicated region fallthrough
CT: control target
= control target key end

     0   :  { %11 = vsyncpa [#allocation3], 0  ;;  %s4071_s0 = inlined_call_operand.vmem [shape: bf16[2,8,256], index: 0, kind: input, shape index: {}]   ;;  %s4072_s1 = inlined_call_operand.vmem [shape: bf16[2,8,8,2,8,2], index: 1, kind: input, shape index: {}]   ;;  %s4073_s2 = inlined_call_operand.vmem [shape: f32[8,1], index: 2, kind: input, shape index: {}]   ;;  %s4074_s3 = inlined_call_operand.vmem [shape: f32[8,1], index: 3, kind: input, shape index: {}]   ;;  %s4075_s4 = inlined_call_operand.vmem [shape: f32[2,8,256], index: 4, kind: output, shape index: {0}]   ;;  %s4076_s5 = inlined_call_operand.hbm [shape: f32[2,8,8,8], index: 5, kind: output, shape index: {1}]  }
   0x1   :  { %13 = vsyncpa [#allocation3 + $0x1], 0  ;;  %s2672_s18 = smov 0   ;;  %s2674_s19 = smov 0  }
   0x2   :  { %s2676_s20 = smov 0   ;;  %s2678_s21 = smov 0  }
   0x3   :  { %s2680_s22 = smov 0   ;;  %s2682_s23 = smov 0  }
   0x4 LB: > { %s2156_s24 = sadd.s32 4294967295, %s2635_s23   ;;  %s2157_s25 = sadd.s32 4294967294, %s2635_s23   ;;  %s2635_s23 = sphi %s2682_s23, %s19_s23   ;;  %s2631_s22 = sphi %s2680_s22, %s4337_s22   ;;  %s2627_s21 = sphi %s2678_s21, %s4336_s21   ;;  %s2623_s20 = sphi %s2676_s20, %s4335_s20   ;;  %s2619_s19 = sphi %s2674_s19, %s4334_s19   ;;  %s2615_s18 = sphi %s2672_s18, %s4333_s18  }
   0x5   : > { %s31_s26 = sadd.s32 1, %s2631_s22  ;;  %s166_s27 = sadd.s32 1, %s2623_s20 }
   0x6   : > { %p33_p0 = scmp.ge.s32.totalorder %s31_s26, 2  ;;  %p176_p1 = scmp.ne.s32.totalorder %s2623_s20, %s2619_s19 }
   0x7   : > { %p177_p2 = scmp.eq.s32.totalorder %s2156_s24, 1  ;;  %p182_p3 = scmp.ne.s32.totalorder %s2619_s19, %s2615_s18 }
   0x8   : > { %s4339_s26 = smov (%p33_p0, %s31_s26), 0  ;;  %p183_p5 = scmp.eq.s32.totalorder %s2157_s25, 1 }
   0x9   : > { %p2712_p4 = por %p177_p2, %p176_p1  ;;  %s161_s29 = ssub.s32 %s2631_s22, %s4339_s26 }
   0xa   : > { %p2160_p6 = scmp.ge.s32.totalorder %s2635_s23, 1  ;;  %p164_p7 = scmp.eq.s32.totalorder %s161_s29, 0 }
   0xb   : > { %p2719_p8 = por %p183_p5, %p182_p3  ;;  %p234_p9 = scmp.lt.s32.totalorder %s2635_s23, 3 }
   0xc   : > { %s2725_s6 = scalar_select %p164_p7, %s2623_s20, %s166_s27  }
   0xd   : > { %p235_p10 = pnand %p2160_p6, %p234_p9 }
   0xf   : > { %238 = sbr.rel (%p235_p10) target bundleno = 509 (0x1fd), region = 36 }
  0x14   : > { %v316_v0 = vld [vmem:[%s4073_s2] sm:$0xff]  ;;  %v343_v1 = vlaneseq  ;;  %v2637_v2 = vmov 0   ;;  %v2638_v3 = vmov 1966171168   ;;  %p286_p11 = scmp.lt.s32.totalorder %s2627_s21, 1  ;;  %vm1205_vm0 = vcmask 15360  }
  0x15   : > { %2555 = vset.pattern.permute.xlu0 %v2637_v2  ;;  %v341_v4 = vunpack.c.l.s4 %v2638_v3  ;;  %2556 = vset.pattern.permute.xlu1 %v2637_v2  ;;  %v339_v8 = vcombine.high %v316_v0, %v316_v0  ;;  %v317_v9 = vld [vmem:[%s4074_s3] sm:$0xff]  ;;  %vm1912_vm1 = vcmask 1041409   ;;  %vm1914_vm2 = vcmask 1042434   ;;  %s282_s9 = sand.u32 1, %s2619_s19   ;;  %s2639_s24 = smov [#allocation2]  }
  0x16   : > { %v344_v5 = vshrl.u32 %v343_v1, 7  ;;  %v1655_v6 = vand.u32 127, %v343_v1  ;;  %323 = vperm.xlu0 %2555, %v316_v0   ;;  %v388_v28 = vcombine.high %v317_v9, %v317_v9  ;;  %s2737_s11 = scalar_select %p286_p11, %s2627_s21, 1  ;;  %vm1916_vm3 = vcmask 1043459  }
  0x17   : > { %v342_v7 = vunpack.c.0.s8 %v341_v4  ;;  %vm1918_vm4 = vcmask 1044484   ;;  %vm1920_vm5 = vcmask 1045509   ;;  %s2161_s10 = sshll.u32 %s282_s9, 6  ;;  %vm1922_vm6 = vcmask 1046534  }
  0x18   : > { %v2733_v10 = vsub.s32 %v1655_v6, %v344_v5  ;;  %v695_v12 = vsub.s32 0, %v344_v5  ;;  %s2173_s12 = sshll.u32 %s2737_s11, 3  ;;  %s2174_s13 = sshll.u32 %s2737_s11, 9  ;;  %vm1924_vm7 = vcmask 1047559   ;;  %vm1983_vm8 = vcmask 64512  }
  0x19   : > { %v345_v11 = vsub.s32 %v342_v7, %v344_v5  ;;  %s293_s16 = scalar_lea.vmem %s4071_s0, %s2173_s12  ;;  %s2747_s25 = scalar_lea.vmem %s4072_s1, %s2174_s13 }
  0x1a   : > { %4149 = vst [vmem:[#allocation5_spill] sm:$0xff] %v2733_v10  ;;  %330 = vperm.xlu0 %2555, %v317_v9   ;;  %v2749_v54 = vld [vmem:[%s293_s16] sm:$0xff]  ;;  %v2752_v55 = vld [vmem:[%s2747_s25 + $0x8] sm:$0xff]   ;;  %v2766_v61 = vld [vmem:[%s2747_s25 + $0x10] sm:$0xff]   ;;  %s2175_s27 = sshll.u32 %s2737_s11, 4  ;;  %s3847_s11 = scalar_lea.vmem [#allocation2], %s2161_s10 }
  0x1b   : > { %v346_v13 = vrot.slane %v316_v0, %v345_v11  ;;  %v353_v14 = vrot.slane %v339_v8, %v345_v11  ;;  %v395_v23 = vrot.slane %v317_v9, %v345_v11  ;;  %v402_v33 = vrot.slane %v388_v28, %v345_v11  ;;  %v2755_v56 = vld [vmem:[%s2747_s25 + $0x100] sm:$0xff]   ;;  %v2769_v62 = vld [vmem:[%s2747_s25 + $0x30] sm:$0xff]   ;;  %v2776_v3 = vld [vmem:[%s2747_s25 + $0x118] sm:$0xff]   ;;  %s314_s8 = scalar_lea.vmem %s4075_s4, %s2175_s27  ;;  %s2176_s12 = sshll.u32 %s2627_s21, 10 }
  0x1c   : > { %v2758_v57 = vld [vmem:[%s2747_s25] sm:$0xff]   ;;  %v319_v59 = vunpack.c.l.bf16 %v2749_v54  ;;  %v320_v60 = vunpack.c.h.bf16 %v2749_v54  ;;  %v2779_v4 = vld [vmem:[%s2747_s25 + $0x108] sm:$0xff]   ;;  %v2786_v9 = vld [vmem:[%s2747_s25 + $0x18] sm:$0xff]   ;;  %s2020_s13 = sshll.u32 %s3847_s11, 4  ;;  %s4016_s16 = scalar_lea.hbm %s4076_s5, %s2176_s12  ;;  %s4018_s13 = int_to_ptr.vmem [resolvable:$true] %s2020_s13 }
  0x1d   : > { %v354_v15 = vcombine.high %v346_v13, %v346_v13  ;;  %v362_v16 = vrot.slane %v346_v13, %v345_v11  ;;  %v369_v17 = vrot.slane %v353_v14, %v345_v11  ;;  %v355_v18 = vcombine.high %v353_v14, %v353_v14  ;;  %v2761_v58 = vld [vmem:[%s2747_s25 + $0x20] sm:$0xff]   ;;  %v2943_v2 = vld [vmem:[%s2747_s25 + $0xc8] sm:$0xff]   ;;  %v3004_v8 = vld [vmem:[%s2747_s25 + $0x130] sm:$0xff]   ;;  %s4026_s21 = scalar_lea.sflag [#allocation3], %s282_s9  ;;  %s2559_s17 = scalar_lea.vmem %s4018_s13, 1024 }
  0x1e   : > { %v411_v29 = vrot.slane %v395_v23, %v345_v11  ;;  %v403_v34 = vcombine.high %v395_v23, %v395_v23  ;;  %v418_v39 = vrot.slane %v402_v33, %v345_v11  ;;  %v404_v44 = vcombine.high %v402_v33, %v402_v33  ;;  %v2809_v23 = vld [vmem:[%s2747_s25 + $0x50] sm:$0xff]   ;;  %v2816_v28 = vld [vmem:[%s2747_s25 + $0x60] sm:$0xff]   ;;  %4165 = vst [vmem:[#allocation21_spill] sm:$0xff] %v2943_v2  ;;  %v2991_v54 = vld [vmem:[%s2747_s25 + $0x128] sm:$0xff]   ;;  %p2560_p12 = scmp.ne.s32.totalorder %s4018_s13, %s2559_s17 }
  0x1f   : > { %v696_v19 = vrot.slane %v362_v16, %v695_v12  ;;  %v384_v20 = vcombine.high %v362_v16, %v362_v16  ;;  %v712_v21 = vrot.slane %v369_v17, %v695_v12  ;;  %v376_v22 = vrot.slane %v354_v15, %v345_v11  ;;  %v2796_v16 = vld [vmem:[%s2747_s25 + $0x28] sm:$0xff]   ;;  %v2958_v33 = vld [vmem:[%s2747_s25 + $0x120] sm:$0xff]   ;;  %4174 = vst [vmem:[#allocation30_spill] sm:$0xff] %v2991_v54 }
  0x20   : > { %v385_v24 = vcombine.high %v369_v17, %v369_v17  ;;  %v383_v27 = vrot.slane %v355_v18, %v345_v11  ;;  %v888_v35 = vrot.slane %v411_v29, %v695_v12  ;;  %v433_v37 = vcombine.high %v411_v29, %v411_v29  ;;  %v2799_v17 = vld [vmem:[%s2747_s25 + $0x38] sm:$0xff]   ;;  %v2819_v29 = vld [vmem:[%s2747_s25 + $0x48] sm:$0xff]   ;;  %4168 = vst [vmem:[#allocation24_spill] sm:$0xff] %v2958_v33  ;;  %v2988_v7 = vld [vmem:[%s2747_s25 + $0x1e0] sm:$0xff]   ;;  %p2561_p13 = pnand %p2560_p12, %p2712_p4 }
  0x21   : > { %726 = vperm.xlu1 %2556, %v696_v19   ;;  %742 = vperm.xlu0 %2555, %v712_v21   ;;  %v700_v25 = vrot.slane %v376_v22, %v695_v12  ;;  %v704_v26 = vrot.slane %v384_v20, %v695_v12  ;;  %v386_v32 = vcombine.high %v376_v22, %v376_v22  ;;  %v2804_v20 = vld [vmem:[%s2747_s25 + $0x40] sm:$0xff]   ;;  %v2899_v21 = vld [vmem:[%s2747_s25 + $0x198] sm:$0xff]   ;;  %v2965_v15 = vld [vmem:[%s2747_s25 + $0x1c8] sm:$0xff]   ;;  %v4187_v5 = vunpack.c.h.bf16 %v2761_v58 }
  0x22   : > { %v720_v30 = vrot.slane %v385_v24, %v695_v12  ;;  %v716_v31 = vrot.slane %v383_v27, %v695_v12  ;;  %v387_v38 = vcombine.high %v383_v27, %v383_v27  ;;  %v896_v40 = vrot.slane %v433_v37, %v695_v12  ;;  %4157 = vst [vmem:[#allocation13_spill] sm:$0xff] %v2899_v21  ;;  %v2926_v18 = vld [vmem:[%s2747_s25 + $0x158] sm:$0xff]   ;;  %v2936_v37 = vld [vmem:[%s2747_s25 + $0xd0] sm:$0xff]   ;;  %v2976_v24 = vld [vmem:[%s2747_s25 + $0x160] sm:$0xff]   ;;  %p2562_p0 = pneg %p2561_p13 }
  0x23   : > { %v708_v36 = vrot.slane %v386_v32, %v695_v12  ;;  %v425_v42 = vrot.slane %v403_v34, %v345_v11  ;;  %v904_v43 = vrot.slane %v418_v39, %v695_v12  ;;  %v434_v46 = vcombine.high %v418_v39, %v418_v39  ;;  %v2826_v34 = vld [vmem:[%s2747_s25 + $0x70] sm:$0xff]   ;;  %v2916_v32 = vld [vmem:[%s2747_s25 + $0xc0] sm:$0xff]   ;;  %4162 = vst [vmem:[#allocation18_spill] sm:$0xff] %v2926_v18  ;;  %v2973_v39 = vld [vmem:[%s2747_s25 + $0xd8] sm:$0xff]  }
  0x24   : > { %v724_v41 = vrot.slane %v387_v38, %v695_v12  ;;  %v432_v50 = vrot.slane %v404_v44, %v345_v11  ;;  %v2789_v11 = vld [vmem:[%s2747_s25 + $0x110] sm:$0xff]   ;;  %v2876_v44 = vld [vmem:[%s2747_s25 + $0xa8] sm:$0xff]   ;;  %v2889_v38 = vld [vmem:[%s2747_s25 + $0x180] sm:$0xff]   ;;  %4160 = vst [vmem:[#allocation16_spill] sm:$0xff] %v2916_v32  ;;  %v4188_v13 = vunpack.c.l.bf16 %v2766_v61 }
  0x25   : > { %730 = vperm.xlu1 %2556, %v700_v25   ;;  %734 = vperm.xlu0 %2555, %v704_v26   ;;  %v892_v45 = vrot.slane %v425_v42, %v695_v12  ;;  %v435_v47 = vcombine.high %v425_v42, %v425_v42  ;;  %v912_v48 = vrot.slane %v434_v46, %v695_v12  ;;  %v2846_v46 = vld [vmem:[%s2747_s25 + $0x68] sm:$0xff]   ;;  %v2869_v42 = vld [vmem:[%s2747_s25 + $0x98] sm:$0xff]   ;;  %v2955_v25 = vld [vmem:[%s2747_s25 + $0x1d0] sm:$0xff]  }
  0x26   : > { %v908_v51 = vrot.slane %v432_v50, %v695_v12  ;;  %v436_v52 = vcombine.high %v432_v50, %v432_v50  ;;  %4151 = vst [vmem:[#allocation7_spill] sm:$0xff] %v2869_v42  ;;  %4152 = vst [vmem:[#allocation8_spill] sm:$0xff] %v2876_v44  ;;  %v2879_v26 = vld [vmem:[%s2747_s25 + $0xb8] sm:$0xff]   ;;  %v2886_v50 = vld [vmem:[%s2747_s25 + $0x140] sm:$0xff]  }
  0x27   : > { %v900_v49 = vrot.slane %v435_v47, %v695_v12  ;;  %v2849_v47 = vld [vmem:[%s2747_s25 + $0xa0] sm:$0xff]   ;;  %4153 = vst [vmem:[#allocation9_spill] sm:$0xff] %v2879_v26  ;;  %4154 = vst [vmem:[#allocation10_spill] sm:$0xff] %v2886_v50  ;;  %v3009_v0 = vld [vmem:[%s2747_s25 + $0x1a8] sm:$0xff]  }
  0x28   : > { %v916_v53 = vrot.slane %v436_v52, %v695_v12  ;;  %v2856_v52 = vld [vmem:[%s2747_s25 + $0x78] sm:$0xff]   ;;  %4155 = vst [vmem:[#allocation11_spill] sm:$0xff] %v2889_v38  ;;  %4164 = vst [vmem:[#allocation20_spill] sm:$0xff] %v2936_v37  ;;  %v3016_v63 = vld [vmem:[%s2747_s25 + $0x168] sm:$0xff]   ;;  %v4214_v37 = vunpack.c.l.bf16 %v2819_v29 }
  0x29   : > { %750 = vperm.xlu0 %2555, %v720_v30   ;;  %746 = vperm.xlu1 %2556, %v716_v31   ;;  %v2933_v31 = vld [vmem:[%s2747_s25 + $0x1c0] sm:$0xff]   ;;  %4167 = vst [vmem:[#allocation23_spill] sm:$0xff] %v2955_v25  ;;  %4169 = vst [vmem:[#allocation25_spill] sm:$0xff] %v2965_v15  ;;  %v3025_v10 = vld [vmem:[%s2747_s25 + $0xe8] sm:$0xff]  }
  0x2a   : > { %4163 = vst [vmem:[#allocation19_spill] sm:$0xff] %v2933_v31  ;;  %4170 = vst [vmem:[#allocation26_spill] sm:$0xff] %v2973_v39 }
  0x2b   : > { %4171 = vst [vmem:[#allocation27_spill] sm:$0xff] %v2976_v24  ;;  %4173 = vst [vmem:[#allocation29_spill] sm:$0xff] %v2988_v7 }
  0x2c   : > { %4176 = vst [vmem:[#allocation32_spill] sm:$0xff] %v3004_v8  ;;  %4177 = vst [vmem:[#allocation33_spill] sm:$0xff] %v3009_v0  ;;  %v4183_v0 = vunpack.c.h.bf16 %v2752_v55 }
  0x2d   : > { %918 = vperm.xlu0 %2555, %v888_v35   ;;  %738 = vperm.xlu1 %2556, %v708_v36   ;;  %v2829_v35 = vld [vmem:[%s2747_s25 + $0x80] sm:$0xff]   ;;  %v2906_v36 = vld [vmem:[%s2747_s25 + $0x148] sm:$0xff]   ;;  %4178 = vst [vmem:[#allocation34_spill] sm:$0xff] %v3016_v63  ;;  %4179 = vst [vmem:[#allocation35_spill] sm:$0xff] %v3025_v10  ;;  %v4185_v63 = vunpack.c.h.bf16 %v2758_v57 }
  0x2e   : > { %4158 = vst [vmem:[#allocation14_spill] sm:$0xff] %v2906_v36 }
  0x31   : > { %926 = vperm.xlu0 %2555, %v896_v40   ;;  %754 = vperm.xlu1 %2556, %v724_v41   ;;  %v2836_v40 = vld [vmem:[%s2747_s25 + $0x58] sm:$0xff]   ;;  %v2839_v41 = vld [vmem:[%s2747_s25 + $0x90] sm:$0xff]  }
  0x35   : > { %934 = vperm.xlu0 %2555, %v904_v43   ;;  %922 = vperm.xlu1 %2556, %v892_v45   ;;  %v2909_v45 = vld [vmem:[%s2747_s25 + $0x188] sm:$0xff]   ;;  %v2946_v43 = vld [vmem:[%s2747_s25 + $0xe0] sm:$0xff]  }
  0x36   : > { %4159 = vst [vmem:[#allocation15_spill] sm:$0xff] %v2909_v45  ;;  %4166 = vst [vmem:[#allocation22_spill] sm:$0xff] %v2946_v43 }
  0x39   : > { %942 = vperm.xlu0 %2555, %v912_v48   ;;  %930 = vperm.xlu1 %2556, %v900_v49   ;;  %v2866_v49 = vld [vmem:[%s2747_s25 + $0xb0] sm:$0xff]  }
  0x3a   : > { %4150 = vst [vmem:[#allocation6_spill] sm:$0xff] %v2866_v49  ;;  %v2896_v48 = vld [vmem:[%s2747_s25 + $0x150] sm:$0xff]  }
  0x3b   : > { %4156 = vst [vmem:[#allocation12_spill] sm:$0xff] %v2896_v48 }
  0x3d   : > { %938 = vperm.xlu1 %2556, %v908_v51   ;;  %v2919_v51 = vld [vmem:[%s2747_s25 + $0x190] sm:$0xff]  }
  0x3e   : > { %4161 = vst [vmem:[#allocation17_spill] sm:$0xff] %v2919_v51 }
  0x41   : > { %946 = vperm.xlu1 %2556, %v916_v53   ;;  %v2859_v53 = vld [vmem:[%s2747_s25 + $0x88] sm:$0xff]  }
  0x91   : > { %v324_v30 = vpop.permute.xlu0 %323 }
  0x92   : > { %v326_v27 = vmul.f32 %v324_v30, %v319_v59  ;;  %v327_v1 = vmul.f32 %v324_v30, %v320_v60  ;;  %v2981_v60 = vld [vmem:[%s2747_s25 + $0x1d8] sm:$0xff]   ;;  %v4184_v30 = vunpack.c.l.bf16 %v2758_v57 }
  0x93   : > { %4172 = vst [vmem:[#allocation28_spill] sm:$0xff] %v2981_v60  ;;  %v4199_v60 = vunpack.c.l.bf16 %v2776_v3 }
  0x95   : > { %v331_v59 = vpop.permute.xlu0 %330 }
  0x96   : > { %v333_v22 = vadd.f32 %v331_v59, %v326_v27  ;;  %v334_v12 = vadd.f32 %v331_v59, %v327_v1  ;;  %v3001_v59 = vld [vmem:[%s2747_s25 + $0x1a0] sm:$0xff]   ;;  %v3028_v27 = vld [vmem:[%s2747_s25 + $0xf0] sm:$0xff]   ;;  %v4182_v1 = vunpack.c.l.bf16 %v2752_v55  ;;  %v4190_v55 = vunpack.c.l.bf16 %v2769_v62 }
  0x97   : > { %4175 = vst [vmem:[#allocation31_spill] sm:$0xff] %v3001_v59  ;;  %4180 = vst [vmem:[#allocation36_spill] sm:$0xff] %v3028_v27 }
  0x98   : > { %v335_v19 = vmax.f32 %v333_v22, 0.0  ;;  %v336_v14 = vmax.f32 %v334_v12, 0.0  ;;  %v4186_v22 = vunpack.c.l.bf16 %v2761_v58  ;;  %v4193_v58 = vunpack.c.h.bf16 %v2786_v9 }
  0x9a   : > { %337 = vst [vmem:[%s314_s8] sm:$0xff] %v335_v19  ;;  %338 = vst [vmem:[%s314_s8 + $0x8] sm:$0xff] %v336_v14 }
  0x9c   : > { %v727_v19 = vpop.permute.xlu1 %726  ;;  %v3032_v12 = vpop.permute.xlu0 %742 }
  0x9d   : > { %4181 = vst [vmem:[#allocation37_spill] sm:$0xff] %v3032_v12  ;;  %v759_v8 = vmul.f32 %v4182_v1, %v727_v19  ;;  %v760_v59 = vmul.f32 %v4183_v0, %v727_v19  ;;  %v757_v14 = vmul.f32 %v4184_v30, %v727_v19  ;;  %v758_v54 = vmul.f32 %v4185_v63, %v727_v19 }
  0x9e   : > { %v765_v33 = vmul.f32 %v4186_v22, %v727_v19  ;;  %v766_v6 = vmul.f32 %v4187_v5, %v727_v19  ;;  %v761_v27 = vmul.f32 %v4188_v13, %v727_v19  ;;  %v4189_v1 = vunpack.c.h.bf16 %v2766_v61 }
  0x9f   : > { %v3056_v0 = vmul.f32 %v4190_v55, %v727_v19  ;;  %v4191_v30 = vunpack.c.h.bf16 %v2769_v62  ;;  %v4192_v63 = vunpack.c.l.bf16 %v2786_v9  ;;  %v3068_v5 = vmul.f32 %v4193_v58, %v727_v19 }
  0xa0   : > { %v762_v10 = vmul.f32 %v4189_v1, %v727_v19  ;;  %v731_v13 = vpop.permute.xlu1 %730  ;;  %v3070_v7 = vpop.permute.xlu0 %734  ;;  %v4195_v61 = vunpack.c.l.bf16 %v2755_v56  ;;  %v4196_v62 = vunpack.c.h.bf16 %v2755_v56  ;;  %v4198_v9 = vunpack.c.h.bf16 %v2796_v16 }
  0xa1   : > { %v3060_v57 = vmul.f32 %v4191_v30, %v727_v19  ;;  %v3064_v22 = vmul.f32 %v4192_v63, %v727_v19  ;;  %4194 = vst [vmem:[#allocation38_spill] sm:$0xff] %v3070_v7  ;;  %v4197_v30 = vunpack.c.l.bf16 %v2796_v16  ;;  %v3093_v24 = vmul.f32 %v4199_v60, %v3032_v12 }
  0xa2   : > { %v3075_v1 = vmul.f32 %v4195_v61, %v3032_v12  ;;  %v3080_v55 = vmul.f32 %v4196_v62, %v3032_v12  ;;  %v3088_v58 = vmul.f32 %v4198_v9, %v727_v19  ;;  %v4200_v61 = vunpack.c.h.bf16 %v2776_v3 }
  0xa3   : > { %v3084_v63 = vmul.f32 %v4197_v30, %v727_v19  ;;  %v4201_v56 = vunpack.c.l.bf16 %v2799_v17  ;;  %v4202_v30 = vunpack.c.h.bf16 %v2799_v17  ;;  %v4203_v16 = vunpack.c.l.bf16 %v2804_v20 }
  0xa4   : > { %v3098_v39 = vmul.f32 %v4200_v61, %v3032_v12  ;;  %v4204_v60 = vunpack.c.h.bf16 %v2804_v20  ;;  %v4205_v3 = vunpack.c.l.bf16 %v2779_v4  ;;  %v4209_v20 = vunpack.c.l.bf16 %v2789_v11 }
  0xa5   : > { %v3102_v62 = vmul.f32 %v4201_v56, %v727_v19  ;;  %v3106_v43 = vmul.f32 %v4202_v30, %v727_v19  ;;  %v3110_v9 = vmul.f32 %v4203_v16, %v731_v13  ;;  %v4206_v56 = vunpack.c.h.bf16 %v2779_v4  ;;  %v3144_v4 = vpop.permute.xlu0 %750 }
  0xa6   : > { %v3114_v15 = vmul.f32 %v4204_v60, %v731_v13  ;;  %v3119_v61 = vmul.f32 %v4205_v3, %v3032_v12  ;;  %v4207_v19 = vunpack.c.l.bf16 %v2809_v23  ;;  %v4208_v16 = vunpack.c.h.bf16 %v2809_v23  ;;  %4211 = vst [vmem:[#allocation39_spill] sm:$0xff] %v3144_v4 }
  0xa7   : > { %v3124_v17 = vmul.f32 %v4206_v56, %v3032_v12  ;;  %v3137_v60 = vmul.f32 %v4209_v20, %v3032_v12  ;;  %v4210_v3 = vunpack.c.h.bf16 %v2789_v11  ;;  %v4212_v56 = vunpack.c.l.bf16 %v2816_v28  ;;  %v3162_v11 = vpop.permute.xlu1 %746 }
  0xa8   : > { %v3128_v30 = vmul.f32 %v4207_v19, %v731_v13  ;;  %v3132_v25 = vmul.f32 %v4208_v16, %v731_v13  ;;  %v4213_v23 = vunpack.c.h.bf16 %v2816_v28  ;;  %v3156_v18 = vmul.f32 %v4214_v37, %v731_v13  ;;  %4216 = vst [vmem:[#allocation40_spill] sm:$0xff] %v3162_v11 }
  0xa9   : > { %v3142_v2 = vmul.f32 %v4210_v3, %v3032_v12  ;;  %v3148_v19 = vmul.f32 %v4212_v56, %v731_v13  ;;  %v4215_v20 = vunpack.c.h.bf16 %v2819_v29  ;;  %v4217_v3 = vunpack.c.l.bf16 %v2826_v34 }
  0xaa   : > { %v3152_v16 = vmul.f32 %v4213_v23, %v731_v13  ;;  %v4218_v56 = vunpack.c.h.bf16 %v2826_v34  ;;  %v4219_v28 = vunpack.c.l.bf16 %v2836_v40  ;;  %v4220_v37 = vunpack.c.h.bf16 %v2836_v40 }
  0xab   : > { %v3160_v31 = vmul.f32 %v4215_v20, %v731_v13  ;;  %v3166_v12 = vmul.f32 %v4217_v3, %v731_v13  ;;  %v4221_v29 = vunpack.c.l.bf16 %v2829_v35  ;;  %v4222_v3 = vunpack.c.h.bf16 %v2829_v35  ;;  %v3246_v50 = vpop.permute.xlu1 %738 }
  0xac   : > { %v3170_v51 = vmul.f32 %v4218_v56, %v731_v13  ;;  %v3174_v23 = vmul.f32 %v4219_v28, %v731_v13  ;;  %v3178_v32 = vmul.f32 %v4220_v37, %v731_v13  ;;  %v4223_v34 = vunpack.c.l.bf16 %v2846_v46  ;;  %4233 = vst [vmem:[#allocation41_spill] sm:$0xff] %v3246_v50 }
  0xad   : > { %v3183_v20 = vmul.f32 %v4221_v29, %v3070_v7  ;;  %v3188_v45 = vmul.f32 %v4222_v3, %v3070_v7  ;;  %v4224_v28 = vunpack.c.h.bf16 %v2846_v46  ;;  %v4225_v40 = vunpack.c.l.bf16 %v2839_v41  ;;  %v3216_v46 = vpop.permute.xlu0 %918 }
  0xae   : > { %v3192_v56 = vmul.f32 %v4223_v34, %v731_v13  ;;  %v4226_v29 = vunpack.c.h.bf16 %v2839_v41  ;;  %v4227_v35 = vunpack.c.l.bf16 %v2856_v52  ;;  %v4228_v34 = vunpack.c.h.bf16 %v2856_v52 }
  0xaf   : > { %v3196_v21 = vmul.f32 %v4224_v28, %v731_v13  ;;  %v3201_v37 = vmul.f32 %v4225_v40, %v3070_v7  ;;  %v4229_v28 = vunpack.c.l.bf16 %v2849_v47  ;;  %v4230_v41 = vunpack.c.h.bf16 %v2849_v47 }
  0xb0   : > { %v3206_v36 = vmul.f32 %v4226_v29, %v3070_v7  ;;  %v3210_v3 = vmul.f32 %v4227_v35, %v731_v13  ;;  %v3214_v48 = vmul.f32 %v4228_v34, %v731_v13  ;;  %v4231_v35 = vunpack.c.l.bf16 %v2859_v53 }
  0xb1   : > { %v3221_v40 = vmul.f32 %v4229_v28, %v3070_v7  ;;  %v3226_v29 = vmul.f32 %v4230_v41, %v3070_v7  ;;  %v4232_v52 = vunpack.c.h.bf16 %v2859_v53  ;;  %v951_v34 = vadd.f32 %v3216_v46, %v759_v8  ;;  %v3248_v42 = vpop.permute.xlu0 %926 }
  0xb2   : > { %v3231_v26 = vmul.f32 %v4231_v35, %v3070_v7  ;;  %v952_v28 = vadd.f32 %v3216_v46, %v760_v59  ;;  %v949_v38 = vadd.f32 %v3216_v46, %v757_v14  ;;  %v950_v47 = vadd.f32 %v3216_v46, %v758_v54 }
  0xb3   : > { %v3236_v13 = vmul.f32 %v4232_v52, %v3070_v7  ;;  %v957_v41 = vadd.f32 %v3216_v46, %v765_v33  ;;  %v958_v4 = vadd.f32 %v3216_v46, %v766_v6  ;;  %v953_v35 = vadd.f32 %v3216_v46, %v761_v27 }
  0xb4   : > { %v954_v44 = vadd.f32 %v3216_v46, %v762_v10  ;;  %v1079_v53 = vmax.f32 %v951_v34, 0.0  ;;  %v1080_v52 = vmax.f32 %v952_v28, 0.0  ;;  %v1077_v11 = vmax.f32 %v949_v38, 0.0 }
  0xb5   : > { %v1078_v8 = vmax.f32 %v950_v47, 0.0  ;;  %v1085_v59 = vmax.f32 %v957_v41, 0.0  ;;  %v1086_v14 = vmax.f32 %v958_v4, 0.0  ;;  %v1081_v49 = vmax.f32 %v953_v35, 0.0  ;;  %v3260_v41 = vpop.permute.xlu0 %934 }
  0xb6   : > { %v1082_v54 = vmax.f32 %v954_v44, 0.0  ;;  %v1209_v33 = vsel %vm1205_vm0, %v1079_v53, -inf  ;;  %v1210_v6 = vsel %vm1205_vm0, %v1080_v52, -inf  ;;  %v1206_v27 = vsel %vm1205_vm0, %v1077_v11, -inf }
  0xb7   : > { %v1207_v10 = vsel %vm1205_vm0, %v1078_v8, -inf  ;;  %v1211_v7 = vmax.f32 %v1209_v33, %v1210_v6  ;;  %v1218_v34 = vsel %vm1205_vm0, %v1085_v59, -inf  ;;  %v1219_v38 = vsel %vm1205_vm0, %v1086_v14, -inf  ;;  %v3266_v8 = vpop.permute.xlu1 %754 }
  0xb8   : > { %v1208_v50 = vmax.f32 %v1206_v27, %v1207_v10  ;;  %v1220_v28 = vmax.f32 %v1218_v34, %v1219_v38  ;;  %v1212_v47 = vsel %vm1205_vm0, %v1081_v49, -inf  ;;  %v1213_v4 = vsel %vm1205_vm0, %v1082_v54, -inf }
  0xb9   : > { %v961_v44 = vadd.f32 %v3216_v46, %v3056_v0  ;;  %v1401_v11 = vsel %vm1205_vm0, %v1211_v7, -inf  ;;  %v1214_v53 = vmax.f32 %v1212_v47, %v1213_v4  ;;  %v962_v52 = vadd.f32 %v3216_v46, %v3060_v57 }
  0xba   : > { %v1398_v35 = vsel %vm1205_vm0, %v1208_v50, -inf  ;;  %1402 = vmax.xlane.f32.xlu1 %v1401_v11  ;;  %v1410_v49 = vsel %vm1205_vm0, %v1220_v28, -inf  ;;  %v955_v0 = vadd.f32 %v3216_v46, %v3064_v22  ;;  %v956_v14 = vadd.f32 %v3216_v46, %v3068_v5 }
  0xbb   : > { %1399 = vmax.xlane.f32.xlu0 %v1398_v35  ;;  %v1089_v59 = vmax.f32 %v961_v44, 0.0  ;;  %v1404_v7 = vsel %vm1205_vm0, %v1214_v53, -inf  ;;  %v1090_v50 = vmax.f32 %v962_v52, 0.0  ;;  %v1013_v54 = vadd.f32 %v3260_v41, %v3075_v1  ;;  %v3288_v35 = vpop.permute.xlu1 %922 }
  0xbc   : > { %v1014_v57 = vadd.f32 %v3260_v41, %v3080_v55  ;;  %v1083_v6 = vmax.f32 %v955_v0, 0.0  ;;  %v1084_v27 = vmax.f32 %v956_v14, 0.0  ;;  %v959_v10 = vadd.f32 %v3216_v46, %v3084_v63 }
  0xbd   : > { %v1224_v33 = vsel %vm1205_vm0, %v1089_v59, -inf  ;;  %v1225_v22 = vsel %vm1205_vm0, %v1090_v50, -inf  ;;  %v1141_v34 = vmax.f32 %v1013_v54, 0.0  ;;  %v960_v38 = vadd.f32 %v3216_v46, %v3088_v58 }
  0xbe   : > { %v1142_v5 = vmax.f32 %v1014_v57, 0.0  ;;  %1411 = vmax.xlane.f32.xlu1 %v1410_v49  ;;  %v1226_v1 = vmax.f32 %v1224_v33, %v1225_v22  ;;  %v1215_v28 = vsel %vm1205_vm0, %v1083_v6, -inf  ;;  %v1216_v55 = vsel %vm1205_vm0, %v1084_v27, -inf }
  0xbf   : > { %1405 = vmax.xlane.f32.xlu0 %v1404_v7  ;;  %v1087_v47 = vmax.f32 %v959_v10, 0.0  ;;  %v1217_v4 = vmax.f32 %v1215_v28, %v1216_v55  ;;  %v1302_v44 = vsel %vm1205_vm0, %v1141_v34, -inf  ;;  %v1088_v11 = vmax.f32 %v960_v38, 0.0 }
  0xc0   : > { %v1303_v63 = vsel %vm1205_vm0, %v1142_v5, -inf  ;;  %v1416_v53 = vsel %vm1205_vm0, %v1226_v1, -inf  ;;  %v1019_v49 = vadd.f32 %v3260_v41, %v3093_v24  ;;  %v1020_v14 = vadd.f32 %v3260_v41, %v3098_v39 }
  0xc1   : > { %v1304_v52 = vmax.f32 %v1302_v44, %v1303_v63  ;;  %v1221_v58 = vsel %vm1205_vm0, %v1087_v47, -inf  ;;  %v1407_v59 = vsel %vm1205_vm0, %v1217_v4, -inf  ;;  %v1222_v0 = vsel %vm1205_vm0, %v1088_v11, -inf }
  0xc2   : > { %v963_v7 = vadd.f32 %v3216_v46, %v3102_v62  ;;  %1417 = vmax.xlane.f32.xlu1 %v1416_v53  ;;  %v1223_v54 = vmax.f32 %v1221_v58, %v1222_v0  ;;  %v1147_v57 = vmax.f32 %v1019_v49, 0.0  ;;  %v964_v33 = vadd.f32 %v3216_v46, %v3106_v43 }
  0xc3   : > { %1408 = vmax.xlane.f32.xlu0 %v1407_v59  ;;  %v1494_v50 = vsel %vm1205_vm0, %v1304_v52, -inf  ;;  %v1148_v24 = vmax.f32 %v1020_v14, 0.0  ;;  %v965_v27 = vadd.f32 %v3288_v35, %v3110_v9  ;;  %v966_v39 = vadd.f32 %v3288_v35, %v3114_v15 }
  0xc4   : > { %v1091_v6 = vmax.f32 %v963_v7, 0.0  ;;  %v1413_v10 = vsel %vm1205_vm0, %v1223_v54, -inf  ;;  %v1311_v62 = vsel %vm1205_vm0, %v1147_v57, -inf  ;;  %v1092_v22 = vmax.f32 %v964_v33, 0.0 }
  0xc5   : > { %v1015_v34 = vadd.f32 %v3260_v41, %v3119_v61  ;;  %v1312_v5 = vsel %vm1205_vm0, %v1148_v24, -inf  ;;  %v1093_v46 = vmax.f32 %v965_v27, 0.0  ;;  %v1094_v38 = vmax.f32 %v966_v39, 0.0 }
  0xc6   : > { %v1227_v43 = vsel %vm1205_vm0, %v1091_v6, -inf  ;;  %1495 = vmax.xlane.f32.xlu1 %v1494_v50  ;;  %v1313_v9 = vmax.f32 %v1311_v62, %v1312_v5  ;;  %v1228_v1 = vsel %vm1205_vm0, %v1092_v22, -inf  ;;  %v1016_v15 = vadd.f32 %v3260_v41, %v3124_v17 }
  0xc7   : > { %1414 = vmax.xlane.f32.xlu0 %v1413_v10  ;;  %v1143_v28 = vmax.f32 %v1015_v34, 0.0  ;;  %v1229_v55 = vmax.f32 %v1227_v43, %v1228_v1  ;;  %v1230_v47 = vsel %vm1205_vm0, %v1093_v46, -inf  ;;  %v1231_v61 = vsel %vm1205_vm0, %v1094_v38, -inf }
  0xc8   : > { %v969_v4 = vadd.f32 %v3288_v35, %v3128_v30  ;;  %v1503_v44 = vsel %vm1205_vm0, %v1313_v9, -inf  ;;  %v1232_v63 = vmax.f32 %v1230_v47, %v1231_v61  ;;  %v1144_v11 = vmax.f32 %v1016_v15, 0.0 }
  0xc9   : > { %v1305_v53 = vsel %vm1205_vm0, %v1143_v28, -inf  ;;  %v1419_v52 = vsel %vm1205_vm0, %v1229_v55, -inf  ;;  %v970_v17 = vadd.f32 %v3288_v35, %v3132_v25  ;;  %v1017_v49 = vadd.f32 %v3260_v41, %v3137_v60 }
  0xca   : > { %v1097_v58 = vmax.f32 %v969_v4, 0.0  ;;  %1504 = vmax.xlane.f32.xlu1 %v1503_v44  ;;  %v1422_v59 = vsel %vm1205_vm0, %v1232_v63, -inf  ;;  %v1306_v30 = vsel %vm1205_vm0, %v1144_v11, -inf  ;;  %v1018_v0 = vadd.f32 %v3260_v41, %v3142_v2 }
  0xcb   : > { %1420 = vmax.xlane.f32.xlu0 %v1419_v52  ;;  %v973_v14 = vadd.f32 %v3288_v35, %v3148_v19  ;;  %v1307_v7 = vmax.f32 %v1305_v53, %v1306_v30  ;;  %v1098_v50 = vmax.f32 %v970_v17, 0.0  ;;  %v1145_v54 = vmax.f32 %v1017_v49, 0.0 }
  0xcc   : > { %v1236_v25 = vsel %vm1205_vm0, %v1097_v58, -inf  ;;  %v1146_v57 = vmax.f32 %v1018_v0, 0.0  ;;  %v974_v60 = vadd.f32 %v3288_v35, %v3152_v16  ;;  %v967_v24 = vadd.f32 %v3288_v35, %v3156_v18 }
  0xcd   : > { %v1101_v33 = vmax.f32 %v973_v14, 0.0  ;;  %v1497_v6 = vsel %vm1205_vm0, %v1307_v7, -inf  ;;  %v1237_v2 = vsel %vm1205_vm0, %v1098_v50, -inf  ;;  %v1308_v27 = vsel %vm1205_vm0, %v1145_v54, -inf }
  0xce   : > { %v968_v19 = vadd.f32 %v3288_v35, %v3160_v31  ;;  %1423 = vmax.xlane.f32.xlu1 %v1422_v59  ;;  %v1238_v39 = vmax.f32 %v1236_v25, %v1237_v2  ;;  %v1309_v10 = vsel %vm1205_vm0, %v1146_v57, -inf  ;;  %v1102_v62 = vmax.f32 %v974_v60, 0.0 }
  0xcf   : > { %1498 = vmax.xlane.f32.xlu0 %v1497_v6  ;;  %v1242_v16 = vsel %vm1205_vm0, %v1101_v33, -inf  ;;  %v1310_v22 = vmax.f32 %v1308_v27, %v1309_v10  ;;  %v1095_v34 = vmax.f32 %v967_v24, 0.0  ;;  %v977_v5 = vadd.f32 %v3288_v35, %v3166_v12 }
  0xd0   : > { %v1096_v18 = vmax.f32 %v968_v19, 0.0  ;;  %v1428_v43 = vsel %vm1205_vm0, %v1238_v39, -inf  ;;  %v1243_v46 = vsel %vm1205_vm0, %v1102_v62, -inf  ;;  %v978_v31 = vadd.f32 %v3288_v35, %v3170_v51  ;;  %v3387_v19 = vpop.permute.xlu1 %930 }
  0xd1   : > { %v971_v38 = vadd.f32 %v3288_v35, %v3174_v23  ;;  %v1500_v9 = vsel %vm1205_vm0, %v1310_v22, -inf  ;;  %v1244_v1 = vmax.f32 %v1242_v16, %v1243_v46  ;;  %v1233_v15 = vsel %vm1205_vm0, %v1095_v34, -inf }
  0xd2   : > { %v1234_v28 = vsel %vm1205_vm0, %v1096_v18, -inf  ;;  %1429 = vmax.xlane.f32.xlu1 %v1428_v43  ;;  %v1105_v55 = vmax.f32 %v977_v5, 0.0  ;;  %v1106_v47 = vmax.f32 %v978_v31, 0.0  ;;  %v972_v61 = vadd.f32 %v3288_v35, %v3178_v32 }
  0xd3   : > { %1501 = vmax.xlane.f32.xlu0 %v1500_v9  ;;  %v1235_v12 = vmax.f32 %v1233_v15, %v1234_v28  ;;  %v1434_v51 = vsel %vm1205_vm0, %v1244_v1, -inf  ;;  %v1099_v4 = vmax.f32 %v971_v38, 0.0  ;;  %v981_v23 = vadd.f32 %v3248_v42, %v3183_v20  ;;  %v4234_v9 = vld [vmem:[#allocation38_spill] sm:$0xff] }
  0xd4   : > { %v982_v44 = vadd.f32 %v3248_v42, %v3188_v45  ;;  %v1248_v11 = vsel %vm1205_vm0, %v1105_v55, -inf  ;;  %v1249_v53 = vsel %vm1205_vm0, %v1106_v47, -inf  ;;  %v1100_v52 = vmax.f32 %v972_v61, 0.0 }
  0xd5   : > { %v1425_v63 = vsel %vm1205_vm0, %v1235_v12, -inf  ;;  %v1250_v17 = vmax.f32 %v1248_v11, %v1249_v53  ;;  %v1239_v58 = vsel %vm1205_vm0, %v1099_v4, -inf  ;;  %v1109_v32 = vmax.f32 %v981_v23, 0.0  ;;  %v3412_v4 = vpop.permute.xlu1 %938  ;;  %v4238_v53 = vld [vmem:[#allocation7_spill] sm:$0xff] }
  0xd6   : > { %v1110_v49 = vmax.f32 %v982_v44, 0.0  ;;  %1435 = vmax.xlane.f32.xlu1 %v1434_v51  ;;  %v1240_v59 = vsel %vm1205_vm0, %v1100_v52, -inf  ;;  %v975_v20 = vadd.f32 %v3288_v35, %v3192_v56  ;;  %v976_v45 = vadd.f32 %v3288_v35, %v3196_v21 }
  0xd7   : > { %1426 = vmax.xlane.f32.xlu0 %v1425_v63  ;;  %v985_v30 = vadd.f32 %v3248_v42, %v3201_v37  ;;  %v1440_v0 = vsel %vm1205_vm0, %v1250_v17, -inf  ;;  %v1241_v14 = vmax.f32 %v1239_v58, %v1240_v59  ;;  %v1254_v7 = vsel %vm1205_vm0, %v1109_v32, -inf  ;;  %v4242_v59 = vld [vmem:[#allocation10_spill] sm:$0xff] }
  0xd8   : > { %v1255_v50 = vsel %vm1205_vm0, %v1110_v49, -inf  ;;  %v1103_v54 = vmax.f32 %v975_v20, 0.0  ;;  %v1104_v57 = vmax.f32 %v976_v45, 0.0  ;;  %v986_v60 = vadd.f32 %v3248_v42, %v3206_v36  ;;  %v4241_v49 = vld [vmem:[#allocation40_spill] sm:$0xff] }
  0xd9   : > { %v1256_v25 = vmax.f32 %v1254_v7, %v1255_v50  ;;  %v1431_v56 = vsel %vm1205_vm0, %v1241_v14, -inf  ;;  %v1113_v33 = vmax.f32 %v985_v30, 0.0  ;;  %v979_v21 = vadd.f32 %v3288_v35, %v3210_v3 }
  0xda   : > { %v980_v37 = vadd.f32 %v3288_v35, %v3214_v48  ;;  %1441 = vmax.xlane.f32.xlu1 %v1440_v0  ;;  %v1245_v6 = vsel %vm1205_vm0, %v1103_v54, -inf  ;;  %v1246_v2 = vsel %vm1205_vm0, %v1104_v57, -inf  ;;  %v1114_v27 = vmax.f32 %v986_v60, 0.0 }
  0xdb   : > { %1432 = vmax.xlane.f32.xlu0 %v1431_v56  ;;  %v1446_v24 = vsel %vm1205_vm0, %v1256_v25, -inf  ;;  %v1247_v36 = vmax.f32 %v1245_v6, %v1246_v2  ;;  %v1260_v39 = vsel %vm1205_vm0, %v1113_v33, -inf  ;;  %v1107_v10 = vmax.f32 %v979_v21, 0.0 }
  0xdc   : > { %v1108_v62 = vmax.f32 %v980_v37, 0.0  ;;  %v1261_v3 = vsel %vm1205_vm0, %v1114_v27, -inf  ;;  %v989_v48 = vadd.f32 %v3248_v42, %v3221_v40  ;;  %v990_v35 = vadd.f32 %v3248_v42, %v3226_v29  ;;  %v4245_v37 = vld [vmem:[#allocation8_spill] sm:$0xff] }
  0xdd   : > { %v983_v16 = vadd.f32 %v3248_v42, %v3231_v26  ;;  %v1437_v22 = vsel %vm1205_vm0, %v1247_v36, -inf  ;;  %v1262_v34 = vmax.f32 %v1260_v39, %v1261_v3  ;;  %v1251_v18 = vsel %vm1205_vm0, %v1107_v10, -inf  ;;  %v4235_v26 = vld [vmem:[#allocation6_spill] sm:$0xff]  ;;  %v3441_v10 = vpop.permute.xlu0 %942 }
  0xde   : > { %v1252_v5 = vsel %vm1205_vm0, %v1108_v62, -inf  ;;  %1447 = vmax.xlane.f32.xlu1 %v1446_v24  ;;  %v1117_v46 = vmax.f32 %v989_v48, 0.0  ;;  %v1118_v31 = vmax.f32 %v990_v35, 0.0  ;;  %v984_v40 = vadd.f32 %v3248_v42, %v3236_v13 }
  0xdf   : > { %1438 = vmax.xlane.f32.xlu0 %v1437_v22  ;;  %v1253_v43 = vmax.f32 %v1251_v18, %v1252_v5  ;;  %v1452_v29 = vsel %vm1205_vm0, %v1262_v34, -inf  ;;  %v1111_v38 = vmax.f32 %v983_v16, 0.0  ;;  %v4236_v1 = vunpack.c.l.bf16 %v4235_v26  ;;  %v4248_v16 = vld [vmem:[#allocation39_spill] sm:$0xff] }
  0xe0   : > { %v4237_v28 = vunpack.c.h.bf16 %v4235_v26  ;;  %v1266_v47 = vsel %vm1205_vm0, %v1117_v46, -inf  ;;  %v1267_v61 = vsel %vm1205_vm0, %v1118_v31, -inf  ;;  %v1112_v51 = vmax.f32 %v984_v40, 0.0  ;;  %v4249_v22 = vld [vmem:[#allocation11_spill] sm:$0xff] }
  0xe1   : > { %v801_v15 = vmul.f32 %v4236_v1, %v4234_v9  ;;  %v1443_v55 = vsel %vm1205_vm0, %v1253_v43, -inf  ;;  %v1268_v13 = vmax.f32 %v1266_v47, %v1267_v61  ;;  %v1257_v23 = vsel %vm1205_vm0, %v1111_v38, -inf }
  0xe2   : > { %v802_v12 = vmul.f32 %v4237_v28, %v4234_v9  ;;  %1453 = vmax.xlane.f32.xlu1 %v1452_v29  ;;  %v1258_v11 = vsel %vm1205_vm0, %v1112_v51, -inf  ;;  %v4239_v52 = vunpack.c.l.bf16 %v4238_v53  ;;  %v4240_v58 = vunpack.c.h.bf16 %v4238_v53 }
  0xe3   : > { %v993_v44 = vadd.f32 %v3248_v42, %v801_v15  ;;  %1444 = vmax.xlane.f32.xlu0 %v1443_v55  ;;  %v4243_v20 = vunpack.c.l.bf16 %v4242_v59  ;;  %v1458_v30 = vsel %vm1205_vm0, %v1268_v13, -inf  ;;  %v1259_v0 = vmax.f32 %v1257_v23, %v1258_v11  ;;  %v4252_v55 = vld [vmem:[#allocation9_spill] sm:$0xff] }
  0xe4   : > { %v994_v63 = vadd.f32 %v3248_v42, %v802_v12  ;;  %v795_v17 = vmul.f32 %v4239_v52, %v4234_v9  ;;  %v796_v32 = vmul.f32 %v4240_v58, %v4234_v9  ;;  %v4244_v54 = vunpack.c.h.bf16 %v4242_v59  ;;  %v4255_v59 = vld [vmem:[#allocation12_spill] sm:$0xff] }
  0xe5   : > { %v837_v45 = vmul.f32 %v4243_v20, %v4241_v49  ;;  %v1121_v14 = vmax.f32 %v993_v44, 0.0  ;;  %v1449_v56 = vsel %vm1205_vm0, %v1259_v0, -inf  ;;  %v4246_v24 = vunpack.c.l.bf16 %v4245_v37 }
  0xe6   : > { %v1122_v7 = vmax.f32 %v994_v63, 0.0  ;;  %v987_v50 = vadd.f32 %v3248_v42, %v795_v17  ;;  %v988_v25 = vadd.f32 %v3248_v42, %v796_v32  ;;  %v838_v57 = vmul.f32 %v4244_v54, %v4241_v49  ;;  %1459 = vmax.xlane.f32.xlu1 %v1458_v30 }
  0xe7   : > { %v1029_v60 = vadd.f32 %v3412_v4, %v837_v45  ;;  %v1272_v33 = vsel %vm1205_vm0, %v1121_v14, -inf  ;;  %v799_v6 = vmul.f32 %v4246_v24, %v4234_v9  ;;  %1450 = vmax.xlane.f32.xlu0 %v1449_v56  ;;  %v4247_v3 = vunpack.c.h.bf16 %v4245_v37 }
  0xe8   : > { %v1273_v21 = vsel %vm1205_vm0, %v1122_v7, -inf  ;;  %v1115_v27 = vmax.f32 %v987_v50, 0.0  ;;  %v1116_v36 = vmax.f32 %v988_v25, 0.0  ;;  %v1030_v39 = vadd.f32 %v3412_v4, %v838_v57 }
  0xe9   : > { %v1274_v2 = vmax.f32 %v1272_v33, %v1273_v21  ;;  %v1157_v62 = vmax.f32 %v1029_v60, 0.0  ;;  %v800_v48 = vmul.f32 %v4247_v3, %v4234_v9  ;;  %v991_v35 = vadd.f32 %v3248_v42, %v799_v6  ;;  %v4258_v60 = vld [vmem:[#allocation14_spill] sm:$0xff] }
  0xea   : > { %v4250_v34 = vunpack.c.l.bf16 %v4249_v22  ;;  %v1263_v43 = vsel %vm1205_vm0, %v1115_v27, -inf  ;;  %v1264_v46 = vsel %vm1205_vm0, %v1116_v36, -inf  ;;  %v1158_v31 = vmax.f32 %v1030_v39, 0.0 }
  0xeb   : > { %v1464_v5 = vsel %vm1205_vm0, %v1274_v2, -inf  ;;  %v1265_v40 = vmax.f32 %v1263_v43, %v1264_v46  ;;  %v1326_v29 = vsel %vm1205_vm0, %v1157_v62, -inf  ;;  %v992_v38 = vadd.f32 %v3248_v42, %v800_v48 }
  0xec   : > { %v853_v18 = vmul.f32 %v4250_v34, %v4248_v16  ;;  %v1119_v26 = vmax.f32 %v991_v35, 0.0  ;;  %1465 = vmax.xlane.f32.xlu1 %v1464_v5  ;;  %v1327_v1 = vsel %vm1205_vm0, %v1158_v31, -inf  ;;  %v4251_v15 = vunpack.c.h.bf16 %v4249_v22  ;;  %v4261_v35 = vld [vmem:[#allocation13_spill] sm:$0xff] }
  0xed   : > { %v4253_v47 = vunpack.c.l.bf16 %v4252_v55  ;;  %v1455_v51 = vsel %vm1205_vm0, %v1265_v40, -inf  ;;  %v1328_v13 = vmax.f32 %v1326_v29, %v1327_v1  ;;  %v1120_v23 = vmax.f32 %v992_v38, 0.0 }
  0xee   : > { %v854_v28 = vmul.f32 %v4251_v15, %v4248_v16  ;;  %v1045_v12 = vadd.f32 %v3441_v10, %v853_v18  ;;  %v1269_v44 = vsel %vm1205_vm0, %v1119_v26, -inf  ;;  %1456 = vmax.xlane.f32.xlu0 %v1455_v51  ;;  %v4254_v53 = vunpack.c.h.bf16 %v4252_v55 }
  0xef   : > { %v803_v61 = vmul.f32 %v4253_v47, %v4234_v9  ;;  %v1518_v58 = vsel %vm1205_vm0, %v1328_v13, -inf  ;;  %v1270_v32 = vsel %vm1205_vm0, %v1120_v23, -inf  ;;  %v4256_v20 = vunpack.c.l.bf16 %v4255_v59 }
  0xf0   : > { %v1046_v63 = vadd.f32 %v3441_v10, %v854_v28  ;;  %v1173_v11 = vmax.f32 %v1045_v12, 0.0  ;;  %v804_v52 = vmul.f32 %v4254_v53, %v4234_v9  ;;  %v4257_v30 = vunpack.c.h.bf16 %v4255_v59  ;;  %1519 = vmax.xlane.f32.xlu1 %v1518_v58  ;;  %v4264_v28 = vld [vmem:[#allocation15_spill] sm:$0xff]  ;;  %v4267_v58 = vld [vmem:[#allocation41_spill] sm:$0xff] }
  0xf1   : > { %v995_v17 = vadd.f32 %v3248_v42, %v803_v61  ;;  %v841_v45 = vmul.f32 %v4256_v20, %v4241_v49  ;;  %v1271_v14 = vmax.f32 %v1269_v44, %v1270_v32  ;;  %v4259_v56 = vunpack.c.l.bf16 %v4258_v60  ;;  %v4268_v32 = vld [vmem:[#allocation16_spill] sm:$0xff] }
  0xf2   : > { %v842_v0 = vmul.f32 %v4257_v30, %v4241_v49  ;;  %v1174_v7 = vmax.f32 %v1046_v63, 0.0  ;;  %v1350_v50 = vsel %vm1205_vm0, %v1173_v11, -inf  ;;  %v996_v9 = vadd.f32 %v3248_v42, %v804_v52 }
  0xf3   : > { %v1123_v25 = vmax.f32 %v995_v17, 0.0  ;;  %v1033_v54 = vadd.f32 %v3412_v4, %v841_v45  ;;  %v839_v33 = vmul.f32 %v4259_v56, %v4241_v49  ;;  %v1461_v21 = vsel %vm1205_vm0, %v1271_v14, -inf }
  0xf4   : > { %v1034_v57 = vadd.f32 %v3412_v4, %v842_v0  ;;  %v1351_v37 = vsel %vm1205_vm0, %v1174_v7, -inf  ;;  %v1124_v24 = vmax.f32 %v996_v9, 0.0  ;;  %v4260_v6 = vunpack.c.h.bf16 %v4258_v60  ;;  %1462 = vmax.xlane.f32.xlu0 %v1461_v21  ;;  %v4271_v0 = vld [vmem:[#allocation17_spill] sm:$0xff] }
  0xf5   : > { %v1352_v42 = vmax.f32 %v1350_v50, %v1351_v37  ;;  %v1275_v27 = vsel %vm1205_vm0, %v1123_v25, -inf  ;;  %v1161_v36 = vmax.f32 %v1033_v54, 0.0  ;;  %v1031_v3 = vadd.f32 %v3412_v4, %v839_v33 }
  0xf6   : > { %v840_v2 = vmul.f32 %v4260_v6, %v4241_v49  ;;  %v1162_v39 = vmax.f32 %v1034_v57, 0.0  ;;  %v1276_v62 = vsel %vm1205_vm0, %v1124_v24, -inf  ;;  %v4262_v22 = vunpack.c.l.bf16 %v4261_v35 }
  0xf7   : > { %v1542_v18 = vsel %vm1205_vm0, %v1352_v42, -inf  ;;  %v1277_v5 = vmax.f32 %v1275_v27, %v1276_v62  ;;  %v1332_v43 = vsel %vm1205_vm0, %v1161_v36, -inf  ;;  %v1159_v40 = vmax.f32 %v1031_v3, 0.0  ;;  %v3537_v42 = vpop.permute.xlu1 %946 }
  0xf8   : > { %v1032_v48 = vadd.f32 %v3412_v4, %v840_v2  ;;  %v859_v34 = vmul.f32 %v4262_v22, %v4248_v16  ;;  %v1333_v46 = vsel %vm1205_vm0, %v1162_v39, -inf  ;;  %1543 = vmax.xlane.f32.xlu1 %v1542_v18  ;;  %v4263_v38 = vunpack.c.h.bf16 %v4261_v35  ;;  %v4274_v35 = vld [vmem:[#allocation19_spill] sm:$0xff] }
  0xf9   : > { %v1334_v31 = vmax.f32 %v1332_v43, %v1333_v46  ;;  %v1467_v1 = vsel %vm1205_vm0, %v1277_v5, -inf  ;;  %v4265_v12 = vunpack.c.l.bf16 %v4264_v28  ;;  %v4266_v47 = vunpack.c.h.bf16 %v4264_v28  ;;  %v4277_v28 = vld [vmem:[#allocation18_spill] sm:$0xff] }
  0xfa   : > { %v1160_v29 = vmax.f32 %v1032_v48, 0.0  ;;  %v860_v26 = vmul.f32 %v4263_v38, %v4248_v16  ;;  %v1051_v15 = vadd.f32 %v3441_v10, %v859_v34  ;;  %1468 = vmax.xlane.f32.xlu0 %v1467_v1  ;;  %v1329_v13 = vsel %vm1205_vm0, %v1159_v40, -inf }
  0xfb   : > { %v855_v55 = vmul.f32 %v4265_v12, %v4248_v16  ;;  %v856_v61 = vmul.f32 %v4266_v47, %v4248_v16  ;;  %v1524_v51 = vsel %vm1205_vm0, %v1334_v31, -inf  ;;  %v4269_v59 = vunpack.c.l.bf16 %v4268_v32 }
  0xfc   : > { %v1330_v23 = vsel %vm1205_vm0, %v1160_v29, -inf  ;;  %v1052_v44 = vadd.f32 %v3441_v10, %v860_v26  ;;  %v1179_v11 = vmax.f32 %v1051_v15, 0.0  ;;  %1525 = vmax.xlane.f32.xlu1 %v1524_v51  ;;  %v4270_v45 = vunpack.c.h.bf16 %v4268_v32  ;;  %v4280_v51 = vld [vmem:[#allocation20_spill] sm:$0xff] }
  0xfd   : > { %v1331_v63 = vmax.f32 %v1329_v13, %v1330_v23  ;;  %v1047_v53 = vadd.f32 %v3441_v10, %v855_v55  ;;  %v1048_v52 = vadd.f32 %v3441_v10, %v856_v61  ;;  %v805_v20 = vmul.f32 %v4269_v59, %v4267_v58 }
  0xfe   : > { %v1180_v17 = vmax.f32 %v1052_v44, 0.0  ;;  %v806_v30 = vmul.f32 %v4270_v45, %v4267_v58  ;;  %v4272_v14 = vunpack.c.l.bf16 %v4271_v0  ;;  %v1359_v9 = vsel %vm1205_vm0, %v1179_v11, -inf }
  0xff   : > { %v1521_v50 = vsel %vm1205_vm0, %v1331_v63, -inf  ;;  %v1175_v25 = vmax.f32 %v1047_v53, 0.0  ;;  %v1176_v54 = vmax.f32 %v1048_v52, 0.0  ;;  %v997_v60 = vadd.f32 %v3387_v19, %v805_v20 }
 0x100   : > { %v857_v7 = vmul.f32 %v4272_v14, %v4248_v16  ;;  %1522 = vmax.xlane.f32.xlu0 %v1521_v50  ;;  %v1360_v57 = vsel %vm1205_vm0, %v1180_v17, -inf  ;;  %v998_v56 = vadd.f32 %v3387_v19, %v806_v30  ;;  %v4273_v33 = vunpack.c.h.bf16 %v4271_v0  ;;  %v4283_v14 = vld [vmem:[#allocation21_spill] sm:$0xff] }
 0x101   : > { %v1361_v37 = vmax.f32 %v1359_v9, %v1360_v57  ;;  %v1353_v24 = vsel %vm1205_vm0, %v1175_v25, -inf  ;;  %v1354_v6 = vsel %vm1205_vm0, %v1176_v54, -inf  ;;  %v1125_v36 = vmax.f32 %v997_v60, 0.0 }
 0x102   : > { %v858_v21 = vmul.f32 %v4273_v33, %v4248_v16  ;;  %v1049_v2 = vadd.f32 %v3441_v10, %v857_v7  ;;  %v1355_v27 = vmax.f32 %v1353_v24, %v1354_v6  ;;  %v1126_v39 = vmax.f32 %v998_v56, 0.0 }
 0x103   : > { %v1551_v3 = vsel %vm1205_vm0, %v1361_v37, -inf  ;;  %v4275_v22 = vunpack.c.l.bf16 %v4274_v35  ;;  %v4276_v18 = vunpack.c.h.bf16 %v4274_v35  ;;  %v1278_v46 = vsel %vm1205_vm0, %v1125_v36, -inf  ;;  %v4286_v37 = vld [vmem:[#allocation23_spill] sm:$0xff] }
 0x104   : > { %v1050_v62 = vadd.f32 %v3441_v10, %v858_v21  ;;  %v1177_v48 = vmax.f32 %v1049_v2, 0.0  ;;  %1552 = vmax.xlane.f32.xlu1 %v1551_v3  ;;  %v1545_v43 = vsel %vm1205_vm0, %v1355_v27, -inf  ;;  %v1279_v31 = vsel %vm1205_vm0, %v1126_v39, -inf }
 0x105   : > { %v869_v34 = vmul.f32 %v4275_v22, %v3266_v8  ;;  %v870_v5 = vmul.f32 %v4276_v18, %v3266_v8  ;;  %1546 = vmax.xlane.f32.xlu0 %v1545_v43  ;;  %v1280_v29 = vmax.f32 %v1278_v46, %v1279_v31  ;;  %v4278_v12 = vunpack.c.l.bf16 %v4277_v28  ;;  %v4289_v43 = vld [vmem:[#allocation25_spill] sm:$0xff] }
 0x106   : > { %v1178_v40 = vmax.f32 %v1050_v62, 0.0  ;;  %v1356_v38 = vsel %vm1205_vm0, %v1177_v48, -inf  ;;  %v4279_v47 = vunpack.c.h.bf16 %v4277_v28  ;;  %v4281_v13 = vunpack.c.l.bf16 %v4280_v51 }
 0x107   : > { %v1061_v26 = vadd.f32 %v3537_v42, %v869_v34  ;;  %v1062_v1 = vadd.f32 %v3537_v42, %v870_v5  ;;  %v843_v55 = vmul.f32 %v4278_v12, %v4241_v49  ;;  %v1470_v44 = vsel %vm1205_vm0, %v1280_v29, -inf }
 0x108   : > { %v1357_v15 = vsel %vm1205_vm0, %v1178_v40, -inf  ;;  %v844_v61 = vmul.f32 %v4279_v47, %v4241_v49  ;;  %v809_v23 = vmul.f32 %v4281_v13, %v4267_v58  ;;  %1471 = vmax.xlane.f32.xlu1 %v1470_v44  ;;  %v4282_v32 = vunpack.c.h.bf16 %v4280_v51  ;;  %v4292_v51 = vld [vmem:[#allocation22_spill] sm:$0xff] }
 0x109   : > { %v1358_v63 = vmax.f32 %v1356_v38, %v1357_v15  ;;  %v1189_v11 = vmax.f32 %v1061_v26, 0.0  ;;  %v1190_v53 = vmax.f32 %v1062_v1, 0.0  ;;  %v1035_v52 = vadd.f32 %v3412_v4, %v843_v55 }
 0x10a   : > { %v1036_v17 = vadd.f32 %v3412_v4, %v844_v61  ;;  %v810_v59 = vmul.f32 %v4282_v32, %v4267_v58  ;;  %v1001_v20 = vadd.f32 %v3387_v19, %v809_v23  ;;  %v4284_v7 = vunpack.c.l.bf16 %v4283_v14 }
 0x10b   : > { %v1548_v45 = vsel %vm1205_vm0, %v1358_v63, -inf  ;;  %v1374_v30 = vsel %vm1205_vm0, %v1189_v11, -inf  ;;  %v1375_v0 = vsel %vm1205_vm0, %v1190_v53, -inf  ;;  %v1163_v25 = vmax.f32 %v1035_v52, 0.0 }
 0x10c   : > { %v807_v50 = vmul.f32 %v4284_v7, %v4267_v58  ;;  %1549 = vmax.xlane.f32.xlu0 %v1548_v45  ;;  %v1376_v9 = vmax.f32 %v1374_v30, %v1375_v0  ;;  %v1164_v54 = vmax.f32 %v1036_v17, 0.0  ;;  %v1002_v57 = vadd.f32 %v3387_v19, %v810_v59  ;;  %v4295_v45 = vld [vmem:[#allocation26_spill] sm:$0xff] }
 0x10d   : > { %v1129_v60 = vmax.f32 %v1001_v20, 0.0  ;;  %v4285_v56 = vunpack.c.h.bf16 %v4283_v14  ;;  %v4287_v24 = vunpack.c.l.bf16 %v4286_v37  ;;  %v1335_v27 = vsel %vm1205_vm0, %v1163_v25, -inf }
 0x10e   : > { %v999_v21 = vadd.f32 %v3387_v19, %v807_v50  ;;  %v1566_v2 = vsel %vm1205_vm0, %v1376_v9, -inf  ;;  %v1336_v36 = vsel %vm1205_vm0, %v1164_v54, -inf  ;;  %v1130_v39 = vmax.f32 %v1002_v57, 0.0 }
 0x10f   : > { %v808_v33 = vmul.f32 %v4285_v56, %v4267_v58  ;;  %v873_v6 = vmul.f32 %v4287_v24, %v3266_v8  ;;  %1567 = vmax.xlane.f32.xlu1 %v1566_v2  ;;  %v1337_v62 = vmax.f32 %v1335_v27, %v1336_v36  ;;  %v1284_v3 = vsel %vm1205_vm0, %v1129_v60, -inf  ;;  %v4298_v24 = vld [vmem:[#allocation27_spill] sm:$0xff] }
 0x110   : > { %v1127_v35 = vmax.f32 %v999_v21, 0.0  ;;  %v1285_v22 = vsel %vm1205_vm0, %v1130_v39, -inf  ;;  %v4288_v34 = vunpack.c.h.bf16 %v4286_v37  ;;  %v4290_v46 = vunpack.c.l.bf16 %v4289_v43 }
 0x111   : > { %v1000_v48 = vadd.f32 %v3387_v19, %v808_v33  ;;  %v1065_v5 = vadd.f32 %v3537_v42, %v873_v6  ;;  %v1527_v40 = vsel %vm1205_vm0, %v1337_v62, -inf  ;;  %v1286_v29 = vmax.f32 %v1284_v3, %v1285_v22 }
 0x112   : > { %v874_v18 = vmul.f32 %v4288_v34, %v3266_v8  ;;  %v871_v31 = vmul.f32 %v4290_v46, %v3266_v8  ;;  %v1281_v26 = vsel %vm1205_vm0, %v1127_v35, -inf  ;;  %1528 = vmax.xlane.f32.xlu0 %v1527_v40  ;;  %v4291_v28 = vunpack.c.h.bf16 %v4289_v43  ;;  %v4301_v43 = vld [vmem:[#allocation28_spill] sm:$0xff] }
 0x113   : > { %v1128_v38 = vmax.f32 %v1000_v48, 0.0  ;;  %v1193_v15 = vmax.f32 %v1065_v5, 0.0  ;;  %v1476_v47 = vsel %vm1205_vm0, %v1286_v29, -inf  ;;  %v4293_v13 = vunpack.c.l.bf16 %v4292_v51 }
 0x114   : > { %v1066_v1 = vadd.f32 %v3537_v42, %v874_v18  ;;  %v872_v12 = vmul.f32 %v4291_v28, %v3266_v8  ;;  %v1063_v55 = vadd.f32 %v3537_v42, %v871_v31  ;;  %v4294_v44 = vunpack.c.h.bf16 %v4292_v51  ;;  %1477 = vmax.xlane.f32.xlu1 %v1476_v47  ;;  %v4304_v51 = vld [vmem:[#allocation29_spill] sm:$0xff] }
 0x115   : > { %v1282_v61 = vsel %vm1205_vm0, %v1128_v38, -inf  ;;  %v813_v23 = vmul.f32 %v4293_v13, %v4267_v58  ;;  %v1380_v52 = vsel %vm1205_vm0, %v1193_v15, -inf  ;;  %v4296_v30 = vunpack.c.l.bf16 %v4295_v45 }
 0x116   : > { %v814_v63 = vmul.f32 %v4294_v44, %v4267_v58  ;;  %v1283_v11 = vmax.f32 %v1281_v26, %v1282_v61  ;;  %v1194_v53 = vmax.f32 %v1066_v1, 0.0  ;;  %v1064_v17 = vadd.f32 %v3537_v42, %v872_v12 }
 0x117   : > { %v1191_v32 = vmax.f32 %v1063_v55, 0.0  ;;  %v1005_v59 = vadd.f32 %v3387_v19, %v813_v23  ;;  %v811_v0 = vmul.f32 %v4296_v30, %v4267_v58  ;;  %v4297_v9 = vunpack.c.h.bf16 %v4295_v45 }
 0x118   : > { %v1006_v20 = vadd.f32 %v3387_v19, %v814_v63  ;;  %v1473_v14 = vsel %vm1205_vm0, %v1283_v11, -inf  ;;  %v1381_v7 = vsel %vm1205_vm0, %v1194_v53, -inf  ;;  %v1192_v50 = vmax.f32 %v1064_v17, 0.0  ;;  %v4307_v11 = vld [vmem:[#allocation37_spill] sm:$0xff]  ;;  %v4308_v53 = vld [vmem:[#allocation24_spill] sm:$0xff] }
 0x119   : > { %v812_v25 = vmul.f32 %v4297_v9, %v4267_v58  ;;  %1474 = vmax.xlane.f32.xlu0 %v1473_v14  ;;  %v1382_v54 = vmax.f32 %v1380_v52, %v1381_v7  ;;  %v1377_v57 = vsel %vm1205_vm0, %v1191_v32, -inf  ;;  %v1133_v60 = vmax.f32 %v1005_v59, 0.0 }
 0x11a   : > { %v1134_v56 = vmax.f32 %v1006_v20, 0.0  ;;  %v1378_v33 = vsel %vm1205_vm0, %v1192_v50, -inf  ;;  %v1003_v21 = vadd.f32 %v3387_v19, %v811_v0  ;;  %v4299_v6 = vunpack.c.l.bf16 %v4298_v24 }
 0x11b   : > { %v1004_v37 = vadd.f32 %v3387_v19, %v812_v25  ;;  %v1572_v27 = vsel %vm1205_vm0, %v1382_v54, -inf  ;;  %v1379_v36 = vmax.f32 %v1377_v57, %v1378_v33  ;;  %v1290_v39 = vsel %vm1205_vm0, %v1133_v60, -inf }
 0x11c   : > { %v845_v2 = vmul.f32 %v4299_v6, %v4241_v49  ;;  %v1291_v62 = vsel %vm1205_vm0, %v1134_v56, -inf  ;;  %1573 = vmax.xlane.f32.xlu1 %v1572_v27  ;;  %v1131_v48 = vmax.f32 %v1003_v21, 0.0  ;;  %v4300_v22 = vunpack.c.h.bf16 %v4298_v24  ;;  %v4311_v6 = vld [vmem:[#allocation30_spill] sm:$0xff] }
 0x11d   : > { %v1292_v3 = vmax.f32 %v1290_v39, %v1291_v62  ;;  %v1132_v35 = vmax.f32 %v1004_v37, 0.0  ;;  %v1569_v18 = vsel %vm1205_vm0, %v1379_v36, -inf  ;;  %v4302_v46 = vunpack.c.l.bf16 %v4301_v43 }
 0x11e   : > { %v846_v34 = vmul.f32 %v4300_v22, %v4241_v49  ;;  %v1037_v5 = vadd.f32 %v3412_v4, %v845_v2  ;;  %v4303_v40 = vunpack.c.h.bf16 %v4301_v43  ;;  %1570 = vmax.xlane.f32.xlu0 %v1569_v18  ;;  %v1287_v26 = vsel %vm1205_vm0, %v1131_v48, -inf }
 0x11f   : > { %v875_v31 = vmul.f32 %v4302_v46, %v3266_v8  ;;  %v1482_v38 = vsel %vm1205_vm0, %v1292_v3, -inf  ;;  %v1288_v1 = vsel %vm1205_vm0, %v1132_v35, -inf  ;;  %v4305_v13 = vunpack.c.l.bf16 %v4304_v51  ;;  %v4314_v46 = vld [vmem:[#allocation31_spill] sm:$0xff] }
 0x120   : > { %v876_v29 = vmul.f32 %v4303_v40, %v3266_v8  ;;  %v1038_v15 = vadd.f32 %v3412_v4, %v846_v34  ;;  %v1289_v28 = vmax.f32 %v1287_v26, %v1288_v1  ;;  %v1165_v12 = vmax.f32 %v1037_v5, 0.0  ;;  %1483 = vmax.xlane.f32.xlu1 %v1482_v38  ;;  %v4317_v26 = vld [vmem:[#allocation33_spill] sm:$0xff] }
 0x121   : > { %v1067_v55 = vadd.f32 %v3537_v42, %v875_v31  ;;  %v877_v23 = vmul.f32 %v4305_v13, %v3266_v8  ;;  %v4306_v44 = vunpack.c.h.bf16 %v4304_v51  ;;  %v4309_v52 = vunpack.c.l.bf16 %v4308_v53 }
 0x122   : > { %v1068_v47 = vadd.f32 %v3537_v42, %v876_v29  ;;  %v1166_v61 = vmax.f32 %v1038_v15, 0.0  ;;  %v1479_v32 = vsel %vm1205_vm0, %v1289_v28, -inf  ;;  %v1338_v59 = vsel %vm1205_vm0, %v1165_v12, -inf }
 0x123   : > { %v878_v63 = vmul.f32 %v4306_v44, %v3266_v8  ;;  %v829_v17 = vmul.f32 %v4309_v52, %v4307_v11  ;;  %v1195_v20 = vmax.f32 %v1067_v55, 0.0  ;;  %1480 = vmax.xlane.f32.xlu0 %v1479_v32  ;;  %v1069_v0 = vadd.f32 %v3537_v42, %v877_v23 }
 0x124   : > { %v1196_v45 = vmax.f32 %v1068_v47, 0.0  ;;  %v1339_v30 = vsel %vm1205_vm0, %v1166_v61, -inf  ;;  %v4310_v7 = vunpack.c.h.bf16 %v4308_v53  ;;  %v4312_v2 = vunpack.c.l.bf16 %v4311_v6 }
 0x125   : > { %v1070_v14 = vadd.f32 %v3537_v42, %v878_v63  ;;  %v1340_v9 = vmax.f32 %v1338_v59, %v1339_v30  ;;  %v1383_v25 = vsel %vm1205_vm0, %v1195_v20, -inf  ;;  %v1021_v57 = vadd.f32 %v3260_v41, %v829_v17  ;;  %v4320_v17 = vld [vmem:[#allocation35_spill] sm:$0xff] }
 0x126   : > { %v830_v50 = vmul.f32 %v4310_v7, %v4307_v11  ;;  %v1384_v54 = vsel %vm1205_vm0, %v1196_v45, -inf  ;;  %v1197_v56 = vmax.f32 %v1069_v0, 0.0  ;;  %v831_v27 = vmul.f32 %v4312_v2, %v4307_v11 }
 0x127   : > { %v1385_v60 = vmax.f32 %v1383_v25, %v1384_v54  ;;  %v1198_v33 = vmax.f32 %v1070_v14, 0.0  ;;  %v1530_v37 = vsel %vm1205_vm0, %v1340_v9, -inf  ;;  %v1149_v24 = vmax.f32 %v1021_v57, 0.0  ;;  %v4323_v25 = vld [vmem:[#allocation36_spill] sm:$0xff] }
 0x128   : > { %v1022_v21 = vadd.f32 %v3260_v41, %v830_v50  ;;  %v4313_v36 = vunpack.c.h.bf16 %v4311_v6  ;;  %1531 = vmax.xlane.f32.xlu1 %v1530_v37  ;;  %v1386_v3 = vsel %vm1205_vm0, %v1197_v56, -inf  ;;  %v1023_v18 = vadd.f32 %v3260_v41, %v831_v27 }
 0x129   : > { %v1575_v62 = vsel %vm1205_vm0, %v1385_v60, -inf  ;;  %v1387_v48 = vsel %vm1205_vm0, %v1198_v33, -inf  ;;  %v1314_v34 = vsel %vm1205_vm0, %v1149_v24, -inf  ;;  %v4315_v31 = vunpack.c.l.bf16 %v4314_v46 }
 0x12a   : > { %v832_v39 = vmul.f32 %v4313_v36, %v4307_v11  ;;  %v1150_v35 = vmax.f32 %v1022_v21, 0.0  ;;  %1576 = vmax.xlane.f32.xlu0 %v1575_v62  ;;  %v1388_v22 = vmax.f32 %v1386_v3, %v1387_v48  ;;  %v4316_v29 = vunpack.c.h.bf16 %v4314_v46  ;;  %v4326_v3 = vld [vmem:[#allocation34_spill] sm:$0xff] }
 0x12b   : > { %v861_v40 = vmul.f32 %v4315_v31, %v4248_v16  ;;  %v4318_v1 = vunpack.c.l.bf16 %v4317_v26  ;;  %v1151_v55 = vmax.f32 %v1023_v18, 0.0  ;;  %v4319_v13 = vunpack.c.h.bf16 %v4317_v26  ;;  %v2493_v26 = vld [vmem:[%s2747_s25 + $0x1e8] sm:$0xff]  }
 0x12c   : > { %v1024_v5 = vadd.f32 %v3260_v41, %v832_v39  ;;  %v1315_v43 = vsel %vm1205_vm0, %v1150_v35, -inf  ;;  %v862_v38 = vmul.f32 %v4316_v29, %v4248_v16  ;;  %v1578_v28 = vsel %vm1205_vm0, %v1388_v22, -inf  ;;  %v2478_v22 = vld [vmem:[%s2747_s25 + $0x170] sm:$0xff]  }
 0x12d   : > { %v863_v15 = vmul.f32 %v4318_v1, %v4248_v16  ;;  %v1316_v12 = vmax.f32 %v1314_v34, %v1315_v43  ;;  %1579 = vmax.xlane.f32.xlu1 %v1578_v28  ;;  %v1053_v61 = vadd.f32 %v3441_v10, %v861_v40  ;;  %v864_v23 = vmul.f32 %v4319_v13, %v4248_v16 }
 0x12e   : > { %v1152_v47 = vmax.f32 %v1024_v5, 0.0  ;;  %v1054_v51 = vadd.f32 %v3441_v10, %v862_v38  ;;  %v1317_v53 = vsel %vm1205_vm0, %v1151_v55, -inf  ;;  %v4321_v32 = vunpack.c.l.bf16 %v4320_v17 }
 0x12f   : > { %v1055_v44 = vadd.f32 %v3441_v10, %v863_v15  ;;  %v1506_v63 = vsel %vm1205_vm0, %v1316_v12, -inf  ;;  %v1181_v45 = vmax.f32 %v1053_v61, 0.0  ;;  %v1056_v0 = vadd.f32 %v3441_v10, %v864_v23 }
 0x130   : > { %v1318_v52 = vsel %vm1205_vm0, %v1152_v47, -inf  ;;  %v815_v59 = vmul.f32 %v4321_v32, %v4267_v58  ;;  %1507 = vmax.xlane.f32.xlu0 %v1506_v63  ;;  %v1182_v30 = vmax.f32 %v1054_v51, 0.0  ;;  %v4322_v7 = vunpack.c.h.bf16 %v4320_v17 }
 0x131   : > { %v1319_v20 = vmax.f32 %v1317_v53, %v1318_v52  ;;  %v1183_v14 = vmax.f32 %v1055_v44, 0.0  ;;  %v4324_v54 = vunpack.c.l.bf16 %v4323_v25  ;;  %v1362_v56 = vsel %vm1205_vm0, %v1181_v45, -inf  ;;  %v2494_v53 = vld [vmem:[%s2747_s25 + $0x1f0] sm:$0xff]  }
 0x132   : > { %v816_v50 = vmul.f32 %v4322_v7, %v4267_v58  ;;  %v1007_v9 = vadd.f32 %v3387_v19, %v815_v59  ;;  %v1363_v33 = vsel %vm1205_vm0, %v1182_v30, -inf  ;;  %v1184_v21 = vmax.f32 %v1056_v0, 0.0 }
 0x133   : > { %v817_v57 = vmul.f32 %v4324_v54, %v4267_v58  ;;  %v1509_v60 = vsel %vm1205_vm0, %v1319_v20, -inf  ;;  %v1364_v37 = vmax.f32 %v1362_v56, %v1363_v33  ;;  %v1365_v24 = vsel %vm1205_vm0, %v1183_v14, -inf }
 0x134   : > { %1510 = vmax.xlane.f32.xlu1 %v1509_v60  ;;  %v1008_v6 = vadd.f32 %v3387_v19, %v816_v50  ;;  %v1135_v2 = vmax.f32 %v1007_v9, 0.0  ;;  %v1366_v27 = vsel %vm1205_vm0, %v1184_v21, -inf  ;;  %v4325_v36 = vunpack.c.h.bf16 %v4323_v25 }
 0x135   : > { %v1009_v62 = vadd.f32 %v3387_v19, %v817_v57  ;;  %v4327_v48 = vunpack.c.l.bf16 %v4326_v3  ;;  %v1554_v34 = vsel %vm1205_vm0, %v1364_v37, -inf  ;;  %v1367_v18 = vmax.f32 %v1365_v24, %v1366_v27  ;;  %v2471_v24 = vld [vmem:[%s2747_s25 + $0x138] sm:$0xff]  }
 0x136   : > { %v818_v39 = vmul.f32 %v4325_v36, %v4267_v58  ;;  %v1136_v5 = vmax.f32 %v1008_v6, 0.0  ;;  %v1293_v43 = vsel %vm1205_vm0, %v1135_v2, -inf  ;;  %1555 = vmax.xlane.f32.xlu0 %v1554_v34  ;;  %v4328_v40 = vunpack.c.h.bf16 %v4326_v3  ;;  %v4329_v36 = vld [vmem:[#allocation32_spill] sm:$0xff] }
 0x137   : > { %v847_v35 = vmul.f32 %v4327_v48, %v4241_v49  ;;  %v1137_v31 = vmax.f32 %v1009_v62, 0.0  ;;  %v1557_v1 = vsel %vm1205_vm0, %v1367_v18, -inf  ;;  %v2363_v28 = vunpack.c.l.bf16 %v2478_v22 }
 0x138   : > { %v1010_v46 = vadd.f32 %v3387_v19, %v818_v39  ;;  %v848_v29 = vmul.f32 %v4328_v40, %v4241_v49  ;;  %v1294_v15 = vsel %vm1205_vm0, %v1136_v5, -inf  ;;  %v2364_v12 = vunpack.c.h.bf16 %v2478_v22  ;;  %1558 = vmax.xlane.f32.xlu1 %v1557_v1 }
 0x139   : > { %v1039_v38 = vadd.f32 %v3412_v4, %v847_v35  ;;  %v1295_v55 = vmax.f32 %v1293_v43, %v1294_v15  ;;  %v1296_v61 = vsel %vm1205_vm0, %v1137_v31, -inf  ;;  %v849_v23 = vmul.f32 %v2363_v28, %v4241_v49  ;;  %v2486_v31 = vld [vmem:[%s2747_s25 + $0x1b0] sm:$0xff]  }
 0x13a   : > { %v1138_v47 = vmax.f32 %v1010_v46, 0.0  ;;  %v1040_v51 = vadd.f32 %v3412_v4, %v848_v29  ;;  %v850_v44 = vmul.f32 %v2364_v12, %v4241_v49  ;;  %v2423_v63 = vunpack.c.l.bf16 %v2493_v26 }
 0x13b   : > { %v1167_v13 = vmax.f32 %v1039_v38, 0.0  ;;  %v1485_v52 = vsel %vm1205_vm0, %v1295_v55, -inf  ;;  %v2424_v59 = vunpack.c.h.bf16 %v2493_v26  ;;  %v1041_v30 = vadd.f32 %v3412_v4, %v849_v23 }
 0x13c   : > { %v1297_v17 = vsel %vm1205_vm0, %v1138_v47, -inf  ;;  %v1168_v32 = vmax.f32 %v1040_v51, 0.0  ;;  %1486 = vmax.xlane.f32.xlu0 %v1485_v52  ;;  %v1042_v0 = vadd.f32 %v3412_v4, %v850_v44  ;;  %v879_v7 = vmul.f32 %v2423_v63, %v3266_v8 }
 0x13d   : > { %v1298_v20 = vmax.f32 %v1296_v61, %v1297_v17  ;;  %v1341_v45 = vsel %vm1205_vm0, %v1167_v13, -inf  ;;  %v880_v50 = vmul.f32 %v2424_v59, %v3266_v8  ;;  %v2427_v9 = vunpack.c.l.bf16 %v2494_v53  ;;  %v2487_v13 = vld [vmem:[%s2747_s25 + $0x1b8] sm:$0xff]  }
 0x13e   : > { %v1342_v14 = vsel %vm1205_vm0, %v1168_v32, -inf  ;;  %v1169_v57 = vmax.f32 %v1041_v30, 0.0  ;;  %v1170_v60 = vmax.f32 %v1042_v0, 0.0  ;;  %v1071_v56 = vadd.f32 %v3537_v42, %v879_v7 }
 0x13f   : > { %v1488_v25 = vsel %vm1205_vm0, %v1298_v20, -inf  ;;  %v1343_v54 = vmax.f32 %v1341_v45, %v1342_v14  ;;  %v1072_v33 = vadd.f32 %v3537_v42, %v880_v50  ;;  %v2428_v21 = vunpack.c.h.bf16 %v2494_v53 }
 0x140   : > { %1489 = vmax.xlane.f32.xlu1 %v1488_v25  ;;  %v881_v37 = vmul.f32 %v2427_v9, %v3266_v8  ;;  %v1344_v2 = vsel %vm1205_vm0, %v1169_v57, -inf  ;;  %v1345_v27 = vsel %vm1205_vm0, %v1170_v60, -inf  ;;  %v4330_v39 = vunpack.c.l.bf16 %v4329_v36  ;;  %v2463_v25 = vld [vmem:[%s2747_s25 + $0xf8] sm:$0xff]  }
 0x141   : > { %v1533_v6 = vsel %vm1205_vm0, %v1343_v54, -inf  ;;  %v1346_v3 = vmax.f32 %v1344_v2, %v1345_v27  ;;  %v1199_v48 = vmax.f32 %v1071_v56, 0.0  ;;  %v1200_v35 = vmax.f32 %v1072_v33, 0.0  ;;  %v2479_v56 = vld [vmem:[%s2747_s25 + $0x178] sm:$0xff]  }
 0x142   : > { %v833_v62 = vmul.f32 %v4330_v39, %v4307_v11  ;;  %1534 = vmax.xlane.f32.xlu0 %v1533_v6  ;;  %v882_v22 = vmul.f32 %v2428_v21, %v3266_v8  ;;  %v1073_v34 = vadd.f32 %v3537_v42, %v881_v37  ;;  %v4331_v18 = vunpack.c.h.bf16 %v4329_v36 }
 0x143   : > { %v2335_v46 = vunpack.c.l.bf16 %v2471_v24  ;;  %v1536_v40 = vsel %vm1205_vm0, %v1346_v3, -inf  ;;  %v1389_v29 = vsel %vm1205_vm0, %v1199_v48, -inf  ;;  %v1390_v38 = vsel %vm1205_vm0, %v1200_v35, -inf }
 0x144   : > { %v834_v5 = vmul.f32 %v4331_v18, %v4307_v11  ;;  %v1025_v43 = vadd.f32 %v3260_v41, %v833_v62  ;;  %v1074_v26 = vadd.f32 %v3537_v42, %v882_v22  ;;  %1537 = vmax.xlane.f32.xlu1 %v1536_v40  ;;  %v1391_v1 = vmax.f32 %v1389_v29, %v1390_v38 }
 0x145   : > { %v1201_v15 = vmax.f32 %v1073_v34, 0.0  ;;  %v2336_v47 = vunpack.c.h.bf16 %v2471_v24  ;;  %v835_v61 = vmul.f32 %v2335_v46, %v4307_v11  ;;  %v2395_v51 = vunpack.c.l.bf16 %v2486_v31  ;;  %v2495_v46 = vld [vmem:[%s2747_s25 + $0x1f8] sm:$0xff]   ;;  %s2563_s25 = sshll.u32 %s2639_s24, 4  ;;  %s2564_s25 = int_to_ptr.vmem [resolvable:$false] %s2563_s25 }
 0x146   : > { %v1026_v28 = vadd.f32 %v3260_v41, %v834_v5  ;;  %v1153_v12 = vmax.f32 %v1025_v43, 0.0  ;;  %v1202_v55 = vmax.f32 %v1074_v26, 0.0  ;;  %v1581_v23 = vsel %vm1205_vm0, %v1391_v1, -inf  ;;  %s2565_s27 = scalar_lea.vmem %s2564_s25, 2048  ;;  %p2566_p1 = scmp.lt.s32.totalorder %s4018_s13, %s2564_s25 }
 0x147   : > { %v1392_v44 = vsel %vm1205_vm0, %v1201_v15, -inf  ;;  %1582 = vmax.xlane.f32.xlu0 %v1581_v23  ;;  %v836_v17 = vmul.f32 %v2336_v47, %v4307_v11  ;;  %v1027_v32 = vadd.f32 %v3260_v41, %v835_v61  ;;  %v2396_v59 = vunpack.c.h.bf16 %v2486_v31  ;;  %v1403_v47 = vpop.xlane.xlu1 %1402  ;;  %v1400_v61 = vpop.xlane.xlu0 %1399  ;;  %p2567_p2 = scmp.lt.s32.totalorder %s2565_s27, %s2559_s17 }
 0x148   : > { %v1154_v63 = vmax.f32 %v1026_v28, 0.0  ;;  %v1320_v53 = vsel %vm1205_vm0, %v1153_v12, -inf  ;;  %v1393_v52 = vsel %vm1205_vm0, %v1202_v55, -inf  ;;  %v865_v30 = vmul.f32 %v2395_v51, %v4248_v16 }
 0x149   : > { %v1394_v20 = vmax.f32 %v1392_v44, %v1393_v52  ;;  %v2399_v0 = vunpack.c.l.bf16 %v2487_v13  ;;  %v1028_v7 = vadd.f32 %v3260_v41, %v836_v17  ;;  %v1155_v50 = vmax.f32 %v1027_v32, 0.0  ;;  %p2568_p3 = por %p2567_p2, %p2566_p1 }
 0x14a   : > { %v1321_v45 = vsel %vm1205_vm0, %v1154_v63, -inf  ;;  %v866_v9 = vmul.f32 %v2396_v59, %v4248_v16  ;;  %v1057_v11 = vadd.f32 %v3441_v10, %v865_v30  ;;  %v2400_v57 = vunpack.c.h.bf16 %v2487_v13 }
 0x14b   : > { %v1322_v14 = vmax.f32 %v1320_v53, %v1321_v45  ;;  %v1584_v54 = vsel %vm1205_vm0, %v1394_v20, -inf  ;;  %v867_v60 = vmul.f32 %v2399_v0, %v4248_v16  ;;  %v1156_v21 = vmax.f32 %v1028_v7, 0.0  ;;  %v1412_v0 = vpop.xlane.xlu1 %1411  ;;  %v4332_v7 = vld [vmem:[#allocation5_spill] sm:$0xff]  ;;  %p2569_p5 = pnand %p2568_p3, %p2562_p0 }
 0x14c   : > { %1585 = vmax.xlane.f32.xlu1 %v1584_v54  ;;  %v1323_v37 = vsel %vm1205_vm0, %v1155_v50, -inf  ;;  %v1058_v41 = vadd.f32 %v3441_v10, %v866_v9  ;;  %v1185_v24 = vmax.f32 %v1057_v11, 0.0  ;;  %v868_v6 = vmul.f32 %v2400_v57, %v4248_v16 }
 0x14d   : > { %v1512_v33 = vsel %vm1205_vm0, %v1322_v14, -inf  ;;  %v1059_v2 = vadd.f32 %v3441_v10, %v867_v60  ;;  %v2303_v27 = vunpack.c.l.bf16 %v2463_v25  ;;  %v1324_v36 = vsel %vm1205_vm0, %v1156_v21, -inf }
 0x14e   : > { %1513 = vmax.xlane.f32.xlu0 %v1512_v33  ;;  %v1186_v39 = vmax.f32 %v1058_v41, 0.0  ;;  %v2304_v62 = vunpack.c.h.bf16 %v2463_v25  ;;  %v2367_v3 = vunpack.c.l.bf16 %v2479_v56  ;;  %v1325_v48 = vmax.f32 %v1323_v37, %v1324_v36 }
 0x14f   : > { %v1368_v35 = vsel %vm1205_vm0, %v1185_v24, -inf  ;;  %v1060_v22 = vadd.f32 %v3441_v10, %v868_v6  ;;  %v1187_v34 = vmax.f32 %v1059_v2, 0.0  ;;  %v819_v5 = vmul.f32 %v2303_v27, %v4267_v58  ;;  %v1418_v33 = vpop.xlane.xlu1 %1417 }
 0x150   : > { %v1369_v18 = vsel %vm1205_vm0, %v1186_v39, -inf  ;;  %v820_v16 = vmul.f32 %v2304_v62, %v4267_v58  ;;  %v2368_v43 = vunpack.c.h.bf16 %v2479_v56  ;;  %v1515_v31 = vsel %vm1205_vm0, %v1325_v48, -inf }
 0x151   : > { %v1370_v40 = vmax.f32 %v1368_v35, %v1369_v18  ;;  %v1188_v29 = vmax.f32 %v1060_v22, 0.0  ;;  %v1371_v38 = vsel %vm1205_vm0, %v1187_v34, -inf  ;;  %1516 = vmax.xlane.f32.xlu1 %v1515_v31  ;;  %v1011_v26 = vadd.f32 %v3387_v19, %v819_v5 }
 0x152   : > { %v1012_v10 = vadd.f32 %v3387_v19, %v820_v16  ;;  %v851_v1 = vmul.f32 %v2367_v3, %v4241_v49  ;;  %v852_v15 = vmul.f32 %v2368_v43, %v4241_v49  ;;  %v2431_v12 = vunpack.c.l.bf16 %v2495_v46 }
 0x153   : > { %v1560_v28 = vsel %vm1205_vm0, %v1370_v40, -inf  ;;  %v1372_v58 = vsel %vm1205_vm0, %v1188_v29, -inf  ;;  %v2432_v55 = vunpack.c.h.bf16 %v2495_v46  ;;  %v1139_v13 = vmax.f32 %v1011_v26, 0.0  ;;  %v1496_v39 = vpop.xlane.xlu1 %1495 }
 0x154   : > { %1561 = vmax.xlane.f32.xlu0 %v1560_v28  ;;  %v1373_v51 = vmax.f32 %v1371_v38, %v1372_v58  ;;  %v1140_v23 = vmax.f32 %v1012_v10, 0.0  ;;  %v1043_v44 = vadd.f32 %v3412_v4, %v851_v1  ;;  %v1044_v19 = vadd.f32 %v3412_v4, %v852_v15  ;;  %v1406_v4 = vpop.xlane.xlu0 %1405 }
 0x155   : > { %v883_v63 = vmul.f32 %v2431_v12, %v3266_v8  ;;  %v884_v49 = vmul.f32 %v2432_v55, %v3266_v8  ;;  %v1299_v52 = vsel %vm1205_vm0, %v1139_v13, -inf  ;;  %v1663_v8 = vrot.slane %v1403_v47, %v4332_v7 }
 0x156   : > { %v1563_v53 = vsel %vm1205_vm0, %v1373_v51, -inf  ;;  %v1300_v17 = vsel %vm1205_vm0, %v1140_v23, -inf  ;;  %v1171_v32 = vmax.f32 %v1043_v44, 0.0  ;;  %v1172_v20 = vmax.f32 %v1044_v19, 0.0 }
 0x157   : > { %1564 = vmax.xlane.f32.xlu1 %v1563_v53  ;;  %v1301_v59 = vmax.f32 %v1299_v52, %v1300_v17  ;;  %v1075_v45 = vadd.f32 %v3537_v42, %v883_v63  ;;  %v1076_v30 = vadd.f32 %v3537_v42, %v884_v49  ;;  %v1659_v50 = vrot.slane %v1400_v61, %v4332_v7  ;;  %v1505_v18 = vpop.xlane.xlu1 %1504 }
 0x158   : > { %v1347_v14 = vsel %vm1205_vm0, %v1171_v32, -inf  ;;  %v1348_v25 = vsel %vm1205_vm0, %v1172_v20, -inf  ;;  %v1667_v42 = vrot.slane %v1406_v4, %v4332_v7  ;;  %v1409_v21 = vpop.xlane.xlu0 %1408  ;;  %v1675_v27 = vrot.slane %v1412_v0, %v4332_v7 }
 0x159   : > { %v1491_v9 = vsel %vm1205_vm0, %v1301_v59, -inf  ;;  %v1203_v54 = vmax.f32 %v1075_v45, 0.0  ;;  %v1204_v11 = vmax.f32 %v1076_v30, 0.0  ;;  %v1349_v57 = vmax.f32 %v1347_v14, %v1348_v25 }
 0x15a   : > { %1492 = vmax.xlane.f32.xlu0 %v1491_v9  ;;  %v1913_v24 = vsel %vm1912_vm1, %v1663_v8, %v1659_v50  ;;  %v1671_v6 = vrot.slane %v1409_v21, %v4332_v7  ;;  %v1683_v34 = vrot.slane %v1418_v33, %v4332_v7  ;;  %v1787_v29 = vrot.slane %v1496_v39, %v4332_v7 }
 0x15b   : > { %v1395_v60 = vsel %vm1205_vm0, %v1203_v54, -inf  ;;  %v1396_v56 = vsel %vm1205_vm0, %v1204_v11, -inf  ;;  %v1539_v37 = vsel %vm1205_vm0, %v1349_v57, -inf  ;;  %v1915_v2 = vsel %vm1914_vm2, %v1667_v42, %v1913_v24  ;;  %v1424_v31 = vpop.xlane.xlu1 %1423 }
 0x15c   : > { %v1397_v41 = vmax.f32 %v1395_v60, %v1396_v56  ;;  %v1917_v36 = vsel %vm1916_vm3, %v1671_v6, %v1915_v2  ;;  %v1415_v62 = vpop.xlane.xlu0 %1414  ;;  %v1799_v28 = vrot.slane %v1505_v18, %v4332_v7  ;;  %v1691_v61 = vrot.slane %v1424_v31, %v4332_v7 }
 0x15d   : > { %v1679_v3 = vrot.slane %v1415_v62, %v4332_v7  ;;  %v1919_v35 = vsel %vm1918_vm4, %v1675_v27, %v1917_v36 }
 0x15e   : > { %1540 = vmax.xlane.f32.xlu0 %v1539_v37  ;;  %v1587_v48 = vsel %vm1205_vm0, %v1397_v41, -inf }
 0x15f   : > { %v1921_v22 = vsel %vm1920_vm5, %v1679_v3, %v1919_v35  ;;  %v1430_v10 = vpop.xlane.xlu1 %1429 }
 0x160   : > { %v1421_v5 = vpop.xlane.xlu0 %1420  ;;  %v1923_v43 = vsel %vm1922_vm6, %v1683_v34, %v1921_v22  ;;  %v1699_v23 = vrot.slane %v1430_v10, %v4332_v7 }
 0x161   : > { %v1687_v16 = vrot.slane %v1421_v5, %v4332_v7 }
 0x162   : > { %1588 = vmax.xlane.f32.xlu0 %v1587_v48 }
 0x163   : > { %v1925_v46 = vsel %vm1924_vm7, %v1687_v16, %v1923_v43  ;;  %v1436_v12 = vpop.xlane.xlu1 %1435 }
 0x164   : > { %1984 = vst.msk [vmem:[%s3847_s11] sm:$0xff] %vm1983_vm8, %v1925_v46  ;;  %v1499_v40 = vpop.xlane.xlu0 %1498  ;;  %v1707_v52 = vrot.slane %v1436_v12, %v4332_v7 }
 0x165   : > { %v1791_v38 = vrot.slane %v1499_v40, %v4332_v7 }
 0x167   : > { %v1947_v26 = vsel %vm1912_vm1, %v1791_v38, %v1787_v29  ;;  %v1442_v44 = vpop.xlane.xlu1 %1441 }
 0x168   : > { %v1502_v1 = vpop.xlane.xlu0 %1501  ;;  %v1715_v30 = vrot.slane %v1442_v44, %v4332_v7 }
 0x169   : > { %v1795_v15 = vrot.slane %v1502_v1, %v4332_v7 }
 0x16b   : > { %v1948_v58 = vsel %vm1914_vm2, %v1795_v15, %v1947_v26  ;;  %v1448_v17 = vpop.xlane.xlu1 %1447 }
 0x16c   : > { %v1427_v55 = vpop.xlane.xlu0 %1426  ;;  %v3858_v47 = vsel %vm1916_vm3, %v1799_v28, %v1948_v58  ;;  %v1723_v57 = vrot.slane %v1448_v17, %v4332_v7 }
 0x16d   : > { %v1695_v51 = vrot.slane %v1427_v55, %v4332_v7 }
 0x16f   : > { %v1926_v13 = vsel %vm1912_vm1, %v1695_v51, %v1691_v61  ;;  %v1454_v0 = vpop.xlane.xlu1 %1453 }
 0x170   : > { %v1433_v19 = vpop.xlane.xlu0 %1432  ;;  %v1927_v49 = vsel %vm1914_vm2, %v1699_v23, %v1926_v13  ;;  %v1731_v33 = vrot.slane %v1454_v0, %v4332_v7 }
 0x171   : > { %v1703_v63 = vrot.slane %v1433_v19, %v4332_v7 }
 0x173   : > { %v1928_v53 = vsel %vm1916_vm3, %v1703_v63, %v1927_v49  ;;  %v1460_v9 = vpop.xlane.xlu1 %1459 }
 0x174   : > { %v1439_v32 = vpop.xlane.xlu0 %1438  ;;  %v1929_v20 = vsel %vm1918_vm4, %v1707_v52, %v1928_v53  ;;  %v1739_v6 = vrot.slane %v1460_v9, %v4332_v7 }
 0x175   : > { %v1711_v59 = vrot.slane %v1439_v32, %v4332_v7 }
 0x177   : > { %v1930_v45 = vsel %vm1920_vm5, %v1711_v59, %v1929_v20  ;;  %v1466_v11 = vpop.xlane.xlu1 %1465 }
 0x178   : > { %v1445_v4 = vpop.xlane.xlu0 %1444  ;;  %v1931_v8 = vsel %vm1922_vm6, %v1715_v30, %v1930_v45  ;;  %v1747_v62 = vrot.slane %v1466_v11, %v4332_v7 }
 0x179   : > { %v1719_v14 = vrot.slane %v1445_v4, %v4332_v7 }
 0x17b   : > { %v1932_v50 = vsel %vm1924_vm7, %v1719_v14, %v1931_v8  ;;  %v3882_v21 = vpop.xlane.xlu1 %1519 }
 0x17c   : > { %1985 = vst.msk [vmem:[%s3847_s11 + $0x8] sm:$0xff] %vm1983_vm8, %v1932_v50  ;;  %v1451_v25 = vpop.xlane.xlu0 %1450 }
 0x17d   : > { %v1727_v54 = vrot.slane %v1451_v25, %v4332_v7 }
 0x17f   : > { %v1933_v60 = vsel %vm1912_vm1, %v1727_v54, %v1723_v57 }
 0x180   : > { %v1457_v42 = vpop.xlane.xlu0 %1456  ;;  %v1934_v37 = vsel %vm1914_vm2, %v1731_v33, %v1933_v60 }
 0x181   : > { %v1735_v56 = vrot.slane %v1457_v42, %v4332_v7  ;;  %v1544_v36 = vpop.xlane.xlu1 %1543 }
 0x182   : > { %v1851_v45 = vrot.slane %v1544_v36, %v4332_v7 }
 0x183   : > { %v1935_v41 = vsel %vm1916_vm3, %v1735_v56, %v1934_v37 }
 0x184   : > { %v1463_v24 = vpop.xlane.xlu0 %1462  ;;  %v1936_v27 = vsel %vm1918_vm4, %v1739_v6, %v1935_v41 }
 0x185   : > { %v1743_v2 = vrot.slane %v1463_v24, %v4332_v7  ;;  %v3893_v22 = vpop.xlane.xlu1 %1525 }
 0x187   : > { %v1937_v39 = vsel %vm1920_vm5, %v1743_v2, %v1936_v27 }
 0x188   : > { %v1469_v3 = vpop.xlane.xlu0 %1468  ;;  %v1938_v35 = vsel %vm1922_vm6, %v1747_v62, %v1937_v39  ;;  %v1819_v39 = vrot.slane %v3882_v21, %v4332_v7 }
 0x189   : > { %v1751_v48 = vrot.slane %v1469_v3, %v4332_v7 }
 0x18b   : > { %v1939_v34 = vsel %vm1924_vm7, %v1751_v48, %v1938_v35 }
 0x18c   : > { %1986 = vst.msk [vmem:[%s3847_s11 + $0x10] sm:$0xff] %vm1983_vm8, %v1939_v34  ;;  %v3898_v18 = vpop.xlane.xlu0 %1522  ;;  %v1827_v34 = vrot.slane %v3893_v22, %v4332_v7 }
 0x18d   : > { %v1553_v5 = vpop.xlane.xlu1 %1552 }
 0x18e   : > { %v1863_v56 = vrot.slane %v1553_v5, %v4332_v7 }
 0x190   : > { %v1547_v16 = vpop.xlane.xlu0 %1546 }
 0x191   : > { %v1472_v43 = vpop.xlane.xlu1 %1471  ;;  %v1855_v52 = vrot.slane %v1547_v16, %v4332_v7 }
 0x192   : > { %v1755_v0 = vrot.slane %v1472_v43, %v4332_v7 }
 0x193   : > { %v1961_v14 = vsel %vm1912_vm1, %v1855_v52, %v1851_v45 }
 0x195   : > { %v1550_v46 = vpop.xlane.xlu0 %1549 }
 0x196   : > { %v1859_v32 = vrot.slane %v1550_v46, %v4332_v7 }
 0x198   : > { %v3900_v31 = vpop.xlane.xlu1 %1567  ;;  %v1962_v8 = vsel %vm1914_vm2, %v1859_v32, %v1961_v14 }
 0x199   : > { %v1963_v36 = vsel %vm1916_vm3, %v1863_v56, %v1962_v8 }
 0x19b   : > { %v3902_v40 = vpop.xlane.xlu0 %1528 }
 0x19c   : > { %v1831_v21 = vrot.slane %v3902_v40, %v4332_v7 }
 0x19d   : > { %v1478_v29 = vpop.xlane.xlu1 %1477 }
 0x19e   : > { %v1763_v50 = vrot.slane %v1478_v29, %v4332_v7 }
 0x1a2   : > { %v1475_v38 = vpop.xlane.xlu0 %1474 }
 0x1a3   : > { %v1759_v59 = vrot.slane %v1475_v38, %v4332_v7 }
 0x1a5   : > { %v3904_v26 = vpop.xlane.xlu1 %1573  ;;  %v1940_v9 = vsel %vm1912_vm1, %v1759_v59, %v1755_v0 }
 0x1a6   : > { %v1941_v27 = vsel %vm1914_vm2, %v1763_v50, %v1940_v9 }
 0x1a7   : > { %v3906_v10 = vpop.xlane.xlu0 %1570 }
 0x1a8   : > { %v1887_v46 = vrot.slane %v3906_v10, %v4332_v7 }
 0x1a9   : > { %v1484_v1 = vpop.xlane.xlu1 %1483 }
 0x1aa   : > { %v1771_v2 = vrot.slane %v1484_v1, %v4332_v7 }
 0x1ac   : > { %v1481_v15 = vpop.xlane.xlu0 %1480 }
 0x1ad   : > { %v1767_v11 = vrot.slane %v1481_v15, %v4332_v7 }
 0x1af   : > { %v1942_v62 = vsel %vm1916_vm3, %v1767_v11, %v1941_v27 }
 0x1b0   : > { %v1943_v22 = vsel %vm1918_vm4, %v1771_v2, %v1942_v62 }
 0x1b1   : > { %v3908_v28 = vpop.xlane.xlu1 %1531 }
 0x1b2   : > { %v1835_v38 = vrot.slane %v3908_v28, %v4332_v7 }
 0x1b3   : > { %v3910_v58 = vpop.xlane.xlu0 %1576 }
 0x1b6   : > { %v3912_v12 = vpop.xlane.xlu1 %1579 }
 0x1b9   : > { %v1508_v55 = vpop.xlane.xlu0 %1507 }
 0x1ba   : > { %v1803_v20 = vrot.slane %v1508_v55, %v4332_v7  ;;  %v1883_v55 = vrot.slane %v3900_v31, %v4332_v7 }
 0x1bc   : > { %v1950_v25 = vsel %vm1918_vm4, %v1803_v20, %v3858_v47  ;;  %v1823_v47 = vrot.slane %v3898_v18, %v4332_v7 }
 0x1bd   : > { %v1511_v61 = vpop.xlane.xlu1 %1510 }
 0x1be   : > { %v1807_v30 = vrot.slane %v1511_v61, %v4332_v7  ;;  %v1954_v43 = vsel %vm1912_vm1, %v1823_v47, %v1819_v39 }
 0x1bf   : > { %v1556_v51 = vpop.xlane.xlu0 %1555  ;;  %v1955_v28 = vsel %vm1914_vm2, %v1827_v34, %v1954_v43 }
 0x1c0   : > { %v1951_v57 = vsel %vm1920_vm5, %v1807_v30, %v1950_v25  ;;  %v1867_v42 = vrot.slane %v1556_v51, %v4332_v7  ;;  %v1891_v51 = vrot.slane %v3904_v26, %v4332_v7  ;;  %v1899_v26 = vrot.slane %v3912_v12, %v4332_v7 }
 0x1c1   : > { %v1559_v13 = vpop.xlane.xlu1 %1558 }
 0x1c2   : > { %v1871_v33 = vrot.slane %v1559_v13, %v4332_v7  ;;  %v1964_v3 = vsel %vm1918_vm4, %v1867_v42, %v1963_v36 }
 0x1c4   : > { %v1965_v18 = vsel %vm1920_vm5, %v1871_v33, %v1964_v3 }
 0x1c5   : > { %v1487_v23 = vpop.xlane.xlu0 %1486 }
 0x1c6   : > { %v1775_v48 = vrot.slane %v1487_v23, %v4332_v7  ;;  %v1956_v23 = vsel %vm1916_vm3, %v1831_v21, %v1955_v28 }
 0x1c8   : > { %v1944_v61 = vsel %vm1920_vm5, %v1775_v48, %v1943_v22 }
 0x1c9   : > { %v1490_v44 = vpop.xlane.xlu1 %1489 }
 0x1ca   : > { %v1779_v5 = vrot.slane %v1490_v44, %v4332_v7  ;;  %v1968_v44 = vsel %vm1912_vm1, %v1887_v46, %v1883_v55 }
 0x1cb   : > { %v3914_v19 = vpop.xlane.xlu0 %1534 }
 0x1cc   : > { %v1839_v40 = vrot.slane %v3914_v19, %v4332_v7  ;;  %v1945_v13 = vsel %vm1922_vm6, %v1779_v5, %v1944_v61  ;;  %v1895_v19 = vrot.slane %v3910_v58, %v4332_v7  ;;  %v1969_v58 = vsel %vm1914_vm2, %v1891_v51, %v1968_v44 }
 0x1cd   : > { %v3916_v63 = vpop.xlane.xlu1 %1537 }
 0x1ce   : > { %v1843_v31 = vrot.slane %v3916_v63, %v4332_v7  ;;  %v1970_v12 = vsel %vm1916_vm3, %v1895_v19, %v1969_v58 }
 0x1d0   : > { %v3918_v49 = vpop.xlane.xlu0 %1582 }
 0x1d1   : > { %v1903_v59 = vrot.slane %v3918_v49, %v4332_v7  ;;  %v1971_v49 = vsel %vm1918_vm4, %v1899_v26, %v1970_v12 }
 0x1d3   : > { %v1972_v14 = vsel %vm1920_vm5, %v1903_v59, %v1971_v49 }
 0x1d5   : > { %v3920_v53 = vpop.xlane.xlu1 %1585 }
 0x1d6   : > { %v1907_v30 = vrot.slane %v3920_v53, %v4332_v7 }
 0x1d7   : > { %v1514_v17 = vpop.xlane.xlu0 %1513 }
 0x1d8   : > { %v1811_v4 = vrot.slane %v1514_v17, %v4332_v7  ;;  %v1957_v17 = vsel %vm1918_vm4, %v1835_v38, %v1956_v23  ;;  %v1973_v53 = vsel %vm1922_vm6, %v1907_v30, %v1972_v14 }
 0x1d9   : > { %v1958_v63 = vsel %vm1920_vm5, %v1839_v40, %v1957_v17 }
 0x1da   : > { %v1517_v54 = vpop.xlane.xlu1 %1516  ;;  %v1952_v37 = vsel %vm1922_vm6, %v1811_v4, %v1951_v57  ;;  %v1959_v45 = vsel %vm1922_vm6, %v1843_v31, %v1958_v63 }
 0x1db   : > { %v1815_v60 = vrot.slane %v1517_v54, %v4332_v7 }
 0x1dd   : > { %v1562_v41 = vpop.xlane.xlu0 %1561  ;;  %v1953_v24 = vsel %vm1924_vm7, %v1815_v60, %v1952_v37 }
 0x1de   : > { %v1875_v6 = vrot.slane %v1562_v41, %v4332_v7  ;;  %1988 = vst.msk [vmem:[%s3847_s11 + $0x20] sm:$0xff] %vm1983_vm8, %v1953_v24 }
 0x1e0   : > { %v1565_v35 = vpop.xlane.xlu1 %1564  ;;  %v1966_v29 = vsel %vm1922_vm6, %v1875_v6, %v1965_v18 }
 0x1e1   : > { %v1879_v16 = vrot.slane %v1565_v35, %v4332_v7 }
 0x1e3   : > { %v1967_v1 = vsel %vm1924_vm7, %v1879_v16, %v1966_v29  ;;  %v1493_v15 = vpop.xlane.xlu0 %1492 }
 0x1e4   : > { %1990 = vst.msk [vmem:[%s3847_s11 + $0x30] sm:$0xff] %vm1983_vm8, %v1967_v1  ;;  %v1783_v10 = vrot.slane %v1493_v15, %v4332_v7 }
 0x1e6   : > { %v1946_v52 = vsel %vm1924_vm7, %v1783_v10, %v1945_v13 }
 0x1e7   : > { %1987 = vst.msk [vmem:[%s3847_s11 + $0x18] sm:$0xff] %vm1983_vm8, %v1946_v52  ;;  %v1541_v32 = vpop.xlane.xlu0 %1540 }
 0x1e8   : > { %v1847_v20 = vrot.slane %v1541_v32, %v4332_v7 }
 0x1ea   : > { %v1960_v0 = vsel %vm1924_vm7, %v1847_v20, %v1959_v45 }
 0x1eb   : > { %1989 = vst.msk [vmem:[%s3847_s11 + $0x28] sm:$0xff] %vm1983_vm8, %v1960_v0  ;;  %v1589_v4 = vpop.xlane.xlu0 %1588 }
 0x1ec   : > { %v1911_v8 = vrot.slane %v1589_v4, %v4332_v7 }
 0x1ee   : > { %v1974_v50 = vsel %vm1924_vm7, %v1911_v8, %v1973_v53 }
 0x1ef   : > { %1991 = vst.msk [vmem:[%s3847_s11 + $0x38] sm:$0xff] %vm1983_vm8, %v1974_v50 }
 0x1f0   : > { %2572 = shalt.err (!%p2569_p5)
}
 0x1f1   : > { %s2573_s29 = scalar_lea.hbm %s4016_s16, 1024  ;;  %s2577_s9 = scalar_lea.hbm %s4076_s5, 2048 }
 0x1f2   : > { %p2574_p6 = scmp.ne.s32.totalorder %s4016_s16, %s2573_s29  ;;  %p2578_p10 = scmp.lt.s32.totalorder %s4016_s16, %s4076_s5 }
 0x1f3   : > { %p2579_p11 = scmp.lt.s32.totalorder %s2577_s9, %s2573_s29 }
 0x1f4   : > { %p2575_p7 = pnand %p2574_p6, %p2712_p4 }
 0x1f5   : > { %p2580_p12 = por %p2579_p11, %p2578_p10 }
 0x1f6   : > { %p2576_p9 = pneg %p2575_p7 }
 0x1f8   : > { %p2581_p13 = pnand %p2580_p12, %p2576_p9 }
 0x1fa   : > { %2584 = shalt.err (!%p2581_p13)
}
 0x1fb   : > { %s2640_s12 = smov 128   ;;  %s2641_s14 = smov 8  }
 0x1fc   : > { %2496 = dma.vmem_to_hbm [thread:$0]  (%p2712_p4), %s4018_s13, 1024, %s4016_s16, %s4026_s21, %s2640_s12, %s2640_s12, %s2641_s14  }
 0x1fd PF: > { %p2502_p0 = scmp.ge.s32.totalorder %s2635_s23, 2  ;;  %s2047_s15 = sand.u32 1, %s2615_s18  }
 0x1fe   : > { %s2048_s17 = scalar_lea.sflag [#allocation3], %s2047_s15 }
 0x1ff   : > { %p2499_p1 = pnand %p2502_p0, %p2719_p8 }
 0x201   : > { %p2500_p2 = pneg %p2499_p1 }
 0x203   : > { %2610 = dma.done.wait (%p2500_p2), %s2048_s17, 1024  }
 0x204   : > { %2612 = vsyncadd (%p2500_p2), %s2048_s17, 4294966272  ;;  %s19_s23 = sadd.s32 1, %s2635_s23   ;;  %s4333_s18 = smov %s2619_s19 }
 0x205   : > { %p16_p3 = scmp.ge.s32.totalorder %s19_s23, 4   ;;  %s4334_s19 = smov %s2623_s20 }
 0x206   : > { %s4335_s20 = smov %s2725_s6  ;;  %s4336_s21 = smov %s2631_s22 }
 0x207   : > { %s4337_s22 = smov %s4339_s26  ;;  %18 = sbr.rel (!%p16_p3) target bundleno = 4 (0x4), region = 86 }
 0x20c   :  { %2053 = vsyncpa [#allocation3], 1 }
 0x20d   :  { %2055 = vsyncpa [#allocation3 + $0x1], 1 }

</bundles_post_ra>
